<compile_context>
chip_gen: v5e
topology: v5e:2x2
jax: 0.10.0
libtpu: 0.0.40
codegen_flags: <defaults>
</compile_context>

<pallas_src>
import functools
import math

import jax
import jax.numpy as jnp
from jax import lax
from jax.experimental import pallas as pl
from jax.experimental.pallas import tpu as pltpu


# Row indices inside the packed per-layer "small params" slab (L, N_SMALL, W).
_ROW_BQKV_S, _ROW_BKV_C, _ROW_B1 = 0, 1, 2
_ROW_BO_S, _ROW_LN1_G, _ROW_LN1_B = 3, 4, 5
_ROW_BQ_C, _ROW_BO_C, _ROW_LN2_G, _ROW_LN2_B = 6, 7, 8, 9
_ROW_B2, _ROW_LN3_G, _ROW_LN3_B = 10, 11, 12
_N_SMALL = 13


# ----------------------------------------------------------------------------
# In-kernel helpers (operate on values already in VMEM / vregs)
# ----------------------------------------------------------------------------
def _layernorm(y, g, b, eps):
    # y: (M, D) f32; g/b: (1, D) f32
    mu = jnp.mean(y, axis=-1, keepdims=True)
    var = jnp.mean(jnp.square(y - mu), axis=-1, keepdims=True)
    return (y - mu) * lax.rsqrt(var + eps) * g + b


def _mha(q2d, k2d, v2d, B, Sq, Sk, H, Dh, scale):
    """Multi-head attention, batched over B, heads assembled in registers.

    q2d: (B*Sq, H*Dh) f32; k2d/v2d: (B*Sk, H*Dh) f32.  Returns (B*Sq, H*Dh) f32.
    """
    D = H * Dh
    # Single full-width scale + bf16 cast (reshape done in f32: clean layout).
    q3 = (q2d * scale).reshape(B, Sq, D).astype(jnp.bfloat16)
    k3 = k2d.reshape(B, Sk, D).astype(jnp.bfloat16)
    v3 = v2d.reshape(B, Sk, D).astype(jnp.bfloat16)

    outs = []
    for h in range(H):  # H is small & static; each step is batched over B
        qh = q3[:, :, h * Dh:(h + 1) * Dh]
        kh = k3[:, :, h * Dh:(h + 1) * Dh]
        vh = v3[:, :, h * Dh:(h + 1) * Dh]
        s = jnp.einsum("bqd,bkd->bqk", qh, kh,
                       preferred_element_type=jnp.float32)         # (B,Sq,Sk)
        mx = jnp.max(s, axis=-1, keepdims=True)
        p = jnp.exp(s - mx)
        p = p * pl.reciprocal(jnp.sum(p, axis=-1, keepdims=True), approx=True)
        outs.append(jnp.einsum("bqk,bkd->bqd", p.astype(jnp.bfloat16), vh,
                               preferred_element_type=jnp.float32))  # (B,Sq,Dh)
    # Lane-axis concat -> full-width (B, Sq, D), then merge leading dims (free).
    return jnp.concatenate(outs, axis=-1).reshape(B * Sq, D)


def _proj(x, w_ref, bias):
    # x: (M, K) f32; w_ref: (1, K, N) bf16 ref; bias: (1, N) f32
    return jnp.dot(x.astype(jnp.bfloat16), w_ref[0],
                   preferred_element_type=jnp.float32) + bias


# ----------------------------------------------------------------------------
# Fused decoder-stack kernel: grid axis = layer index (sequential dependency)
# ----------------------------------------------------------------------------
def _decoder_stack_kernel(
    # activations
    x_ref, m_ref,
    # per-layer weights (streamed, double-buffered by BlockSpec)
    wqkv_s_ref, wo_s_ref, wq_c_ref, wkv_c_ref, wo_c_ref, w1_ref, w2_ref,
    # per-layer packed small params (biases + LN gamma/beta)
    small_ref,
    # final-norm params (shared)
    lnf_g_ref, lnf_b_ref,
    # output (doubles as the layer-to-layer resident activation)
    o_ref,
    *, B, S, Sm, H, D, FF, eps):

    Dh = D // H
    scale = 1.0 / math.sqrt(Dh)

    # Initialize the resident activation from the input on the first layer.
    @pl.when(pl.program_id(0) == 0)
    def _():
        o_ref[...] = x_ref[...]

    x = o_ref[...]            # (B*S, D)  f32  (resident across layers)
    m_bf = m_ref[...]         # (B*Sm, D) bf16

    sm = small_ref[0]         # (N_SMALL, W) f32

    def row(r, width):
        return sm[r:r + 1, :width]   # (1, width) — broadcasts over rows

    # ---- self-attention sublayer (fused QKV projection) ----
    qkv = _proj(x, wqkv_s_ref, row(_ROW_BQKV_S, 3 * D))            # (B*S, 3D)
    attn = _mha(qkv[:, :D], qkv[:, D:2 * D], qkv[:, 2 * D:],
                B, S, S, H, Dh, scale)
    sa = _proj(attn, wo_s_ref, row(_ROW_BO_S, D))
    x = _layernorm(x + sa, row(_ROW_LN1_G, D), row(_ROW_LN1_B, D), eps)

    # ---- cross-attention sublayer (fused KV projection of memory m) ----
    qx = _proj(x, wq_c_ref, row(_ROW_BQ_C, D))                      # (B*S, D)
    kvm = jnp.dot(m_bf, wkv_c_ref[0],
                  preferred_element_type=jnp.float32) + row(_ROW_BKV_C, 2 * D)
    attn = _mha(qx, kvm[:, :D], kvm[:, D:], B, S, Sm, H, Dh, scale)
    ca = _proj(attn, wo_c_ref, row(_ROW_BO_C, D))
    x = _layernorm(x + ca, row(_ROW_LN2_G, D), row(_ROW_LN2_B, D), eps)

    # ---- feed-forward sublayer (w1 + ReLU + w2 fused) ----
    h1 = jnp.maximum(_proj(x, w1_ref, row(_ROW_B1, FF)), 0.0)
    ff = _proj(h1, w2_ref, row(_ROW_B2, D))
    x = _layernorm(x + ff, row(_ROW_LN3_G, D), row(_ROW_LN3_B, D), eps)

    last = pl.num_programs(0) - 1

    # Keep the activation resident for the next layer ...
    @pl.when(pl.program_id(0) != last)
    def _():
        o_ref[...] = x

    # ... or apply the final LayerNorm and let Pallas write back once.
    @pl.when(pl.program_id(0) == last)
    def _():
        o_ref[...] = _layernorm(x, lnf_g_ref[...], lnf_b_ref[...], eps)


# ----------------------------------------------------------------------------
# Host-side wrapper
# ----------------------------------------------------------------------------
_LAYER_WEIGHT_KEYS = ("wqkv_s", "wo_s", "wq_c", "wkv_c", "wo_c", "w1", "w2",
                      "small")


@functools.partial(jax.jit, static_argnames=("num_heads",))
def decoder_forward(x, m, params, num_heads):
    B, S, D = x.shape
    _, Sm, _ = m.shape
    L = params["wqkv_s"].shape[0]
    FF = params["w1"].shape[-1]

    x2d = x.reshape(B * S, D).astype(jnp.float32)
    m2d = m.reshape(B * Sm, D).astype(jnp.bfloat16)   # only used as bf16 operand

    layer_args = [params[k] for k in _LAYER_WEIGHT_KEYS]

    def layer_spec(a):
        # Per-layer stacked array (L, d1, d2): one layer's slab per grid step;
        # BlockSpec double-buffering prefetches layer l+1 during layer l.
        return pl.BlockSpec((1,) + a.shape[1:], lambda l: (l, 0, 0))

    def shared_spec(a):
        # Constant block index -> DMA'd once, stays resident; single buffer.
        return pl.BlockSpec(a.shape, lambda l: (0, 0),
                            pipeline_mode=pl.Buffered(1))

    in_specs = ([shared_spec(x2d), shared_spec(m2d)]
                + [layer_spec(a) for a in layer_args]
                + [shared_spec(params["norm_g"]), shared_spec(params["norm_b"])])

    # VMEM budget: double-buffered per-layer slab + shared/resident buffers
    # + headroom for in-kernel intermediates (keeps the weight prefetch
    # pipeline alive on v5e/v6e default scoped limits of 16/32 MiB).
    per_layer_bytes = sum(
        math.prod(a.shape[1:]) * jnp.dtype(a.dtype).itemsize for a in layer_args)
    shared_bytes = (x2d.size * 4 + m2d.size * 2 + B * S * D * 4
                    + params["norm_g"].size * 4 + params["norm_b"].size * 4)
    vmem_limit = int(min(2 * per_layer_bytes + shared_bytes + (16 << 20),
                         96 << 20))

    out2d = pl.pallas_call(
        functools.partial(_decoder_stack_kernel,
                          B=B, S=S, Sm=Sm, H=num_heads, D=D, FF=FF, eps=1e-5),
        out_shape=jax.ShapeDtypeStruct((B * S, D), jnp.float32),
        grid=(L,),
        in_specs=in_specs,
        # Constant block index across the layer axis: output block is the
        # resident layer-to-layer activation, written to HBM exactly once.
        out_specs=pl.BlockSpec((B * S, D), lambda l: (0, 0)),
        compiler_params=pltpu.CompilerParams(
            dimension_semantics=("arbitrary",),     # layers are sequential
            vmem_limit_bytes=vmem_limit),
    )(x2d, m2d, *layer_args, params["norm_g"], params["norm_b"])

    return out2d.reshape(B, S, D)


# ----------------------------------------------------------------------------
# Deterministic parameter init (weights bf16; biases / LN params packed f32)
# ----------------------------------------------------------------------------
def init_decoder_params(key, layer_num, d_model, d_ff):
    L, D, FF = layer_num, d_model, d_ff
    W = max(3 * D, FF)          # width of the packed small-params slab
    ks = jax.random.split(key, 7)
    s = 0.02

    def w(k, shape):
        return (s * jax.random.normal(k, shape, jnp.float32)).astype(jnp.bfloat16)

    small = jnp.zeros((L, _N_SMALL, W), jnp.float32)
    for r in (_ROW_LN1_G, _ROW_LN2_G, _ROW_LN3_G):   # LN gammas = 1
        small = small.at[:, r, :D].set(1.0)

    return {
        "wqkv_s": w(ks[0], (L, D, 3 * D)),
        "wo_s":   w(ks[1], (L, D, D)),
        "wq_c":   w(ks[2], (L, D, D)),
        "wkv_c":  w(ks[3], (L, D, 2 * D)),
        "wo_c":   w(ks[4], (L, D, D)),
        "w1":     w(ks[5], (L, D, FF)),
        "w2":     w(ks[6], (L, FF, D)),
        "small":  small,                              # packed biases + LN params
        "norm_g": jnp.ones((1, D), jnp.float32),
        "norm_b": jnp.zeros((1, D), jnp.float32),
    }


# ----------------------------------------------------------------------------
if __name__ == "__main__":
    # Small, lane-aligned shapes: D and FF multiples of 128, S multiple of 8.
    B, S, Sm, D, H, FF, LAYERS = 2, 8, 8, 128, 4, 256, 2

    root = jax.random.PRNGKey(0)
    k_x, k_m, k_p = jax.random.split(root, 3)
    x = jax.random.normal(k_x, (B, S, D), jnp.float32)    # target sequence
    m = jax.random.normal(k_m, (B, Sm, D), jnp.float32)   # encoder memory
    params = init_decoder_params(k_p, LAYERS, D, FF)

    out = decoder_forward(x, m, params, num_heads=H)
    out = jax.block_until_ready(out)

    assert out.shape == (B, S, D)
    assert bool(jnp.all(jnp.isfinite(out)))
    print("KERNEL_OK")
</pallas_src>

<mosaic_0001>
module attributes {stable_mosaic.version = 11 : i64} {
  func.func @_decoder_stack_kernel(%arg0: i32, %arg1: memref<16x128xf32, #tpu.memory_space<vmem>>, %arg2: memref<16x128xbf16, #tpu.memory_space<vmem>>, %arg3: memref<1x128x384xbf16, #tpu.memory_space<vmem>>, %arg4: memref<1x128x128xbf16, #tpu.memory_space<vmem>>, %arg5: memref<1x128x128xbf16, #tpu.memory_space<vmem>>, %arg6: memref<1x128x256xbf16, #tpu.memory_space<vmem>>, %arg7: memref<1x128x128xbf16, #tpu.memory_space<vmem>>, %arg8: memref<1x128x256xbf16, #tpu.memory_space<vmem>>, %arg9: memref<1x256x128xbf16, #tpu.memory_space<vmem>>, %arg10: memref<1x13x384xf32, #tpu.memory_space<vmem>>, %arg11: memref<1x128xf32, #tpu.memory_space<vmem>>, %arg12: memref<1x128xf32, #tpu.memory_space<vmem>>, %arg13: memref<16x128xf32, #tpu.memory_space<vmem>>) attributes {dimension_semantics = [#tpu.dimension_semantics<arbitrary>], iteration_bounds = array<i64: 2>, scalar_prefetch = 0 : i64, scratch_operands = 0 : i64, tpu.core_type = #tpu.core_type<tc>, window_params = [{pipeline_mode = #tpu.pipeline_mode<synchronous>, transform_indices = @transform_0, window_bounds = array<i64: 16, 128>}, {pipeline_mode = #tpu.pipeline_mode<synchronous>, transform_indices = @transform_1, window_bounds = array<i64: 16, 128>}, {transform_indices = @transform_2, window_bounds = array<i64: 1, 128, 384>}, {transform_indices = @transform_3, window_bounds = array<i64: 1, 128, 128>}, {transform_indices = @transform_4, window_bounds = array<i64: 1, 128, 128>}, {transform_indices = @transform_5, window_bounds = array<i64: 1, 128, 256>}, {transform_indices = @transform_6, window_bounds = array<i64: 1, 128, 128>}, {transform_indices = @transform_7, window_bounds = array<i64: 1, 128, 256>}, {transform_indices = @transform_8, window_bounds = array<i64: 1, 256, 128>}, {transform_indices = @transform_9, window_bounds = array<i64: 1, 13, 384>}, {pipeline_mode = #tpu.pipeline_mode<synchronous>, transform_indices = @transform_10, window_bounds = array<i64: 1, 128>}, {pipeline_mode = #tpu.pipeline_mode<synchronous>, transform_indices = @transform_11, window_bounds = array<i64: 1, 128>}, {pipeline_mode = #tpu.pipeline_mode<synchronous>, transform_indices = @transform_12, window_bounds = array<i64: 16, 128>}]} {
    %c0_i32 = arith.constant 0 : i32
    %0 = arith.cmpi eq, %arg0, %c0_i32 : i32
    %1 = arith.extui %0 : i1 to i32
    %c0_i32_0 = arith.constant 0 : i32
    %2 = arith.cmpi ne, %1, %c0_i32_0 : i32
    scf.if %2 {
      %c0_87 = arith.constant 0 : index
      %c0_88 = arith.constant 0 : index
      %291 = vector.load %arg1[%c0_87, %c0_88] : memref<16x128xf32, #tpu.memory_space<vmem>>, vector<16x128xf32>
      %c0_89 = arith.constant 0 : index
      %c0_90 = arith.constant 0 : index
      %292 = vector.load %arg13[%c0_89, %c0_90] : memref<16x128xf32, #tpu.memory_space<vmem>>, vector<16x128xf32>
      tpu.vector_store %arg13[%c0_89, %c0_90], %291 {strides = array<i32>} : memref<16x128xf32, #tpu.memory_space<vmem>>, vector<16x128xf32>,
    } else {
    }
    %c0 = arith.constant 0 : index
    %c0_1 = arith.constant 0 : index
    %3 = vector.load %arg13[%c0, %c0_1] : memref<16x128xf32, #tpu.memory_space<vmem>>, vector<16x128xf32>
    %c0_2 = arith.constant 0 : index
    %c0_3 = arith.constant 0 : index
    %4 = vector.load %arg2[%c0_2, %c0_3] : memref<16x128xbf16, #tpu.memory_space<vmem>>, vector<16x128xbf16>
    %c0_4 = arith.constant 0 : index
    %c0_5 = arith.constant 0 : index
    %c0_6 = arith.constant 0 : index
    %5 = vector.load %arg10[%c0_4, %c0_5, %c0_6] : memref<1x13x384xf32, #tpu.memory_space<vmem>>, vector<1x13x384xf32>
    %6 = vector.shape_cast %5 : vector<1x13x384xf32> to vector<13x384xf32>
    %7 = vector.extract_strided_slice %6 {offsets = [0, 0], sizes = [1, 384], strides = [1, 1]} : vector<13x384xf32> to vector<1x384xf32>
    %8 = arith.truncf %3 : vector<16x128xf32> to vector<16x128xbf16>
    %c0_7 = arith.constant 0 : index
    %c0_8 = arith.constant 0 : index
    %c0_9 = arith.constant 0 : index
    %9 = vector.load %arg3[%c0_7, %c0_8, %c0_9] : memref<1x128x384xbf16, #tpu.memory_space<vmem>>, vector<1x128x384xbf16>
    %10 = vector.shape_cast %9 : vector<1x128x384xbf16> to vector<128x384xbf16>
    %cst = arith.constant dense<0.000000e+00> : vector<16x384xf32>
    %11 = tpu.matmul %8, %10, %cst {dimension_numbers = #tpu.dot_dimension_numbers<[1], [0], [0], [1], [0, 0, 1, 1], [], []>} : vector<16x128xbf16>, vector<128x384xbf16>, vector<16x384xf32> -> vector<16x384xf32>
    %12 = vector.broadcast %7 : vector<1x384xf32> to vector<16x384xf32>
    %13 = arith.addf %11, %12 : vector<16x384xf32>
    %14 = vector.extract_strided_slice %13 {offsets = [0, 0], sizes = [16, 128], strides = [1, 1]} : vector<16x384xf32> to vector<16x128xf32>
    %15 = vector.extract_strided_slice %13 {offsets = [0, 128], sizes = [16, 128], strides = [1, 1]} : vector<16x384xf32> to vector<16x128xf32>
    %16 = vector.extract_strided_slice %13 {offsets = [0, 256], sizes = [16, 128], strides = [1, 1]} : vector<16x384xf32> to vector<16x128xf32>
    %cst_10 = arith.constant 0.176776692 : f32
    %17 = vector.broadcast %cst_10 : f32 to vector<16x128xf32>
    %18 = arith.mulf %14, %17 : vector<16x128xf32>
    %19 = vector.shape_cast %18 : vector<16x128xf32> to vector<2x8x128xf32>
    %20 = arith.truncf %19 : vector<2x8x128xf32> to vector<2x8x128xbf16>
    %21 = vector.shape_cast %15 : vector<16x128xf32> to vector<2x8x128xf32>
    %22 = arith.truncf %21 : vector<2x8x128xf32> to vector<2x8x128xbf16>
    %23 = vector.shape_cast %16 : vector<16x128xf32> to vector<2x8x128xf32>
    %24 = arith.truncf %23 : vector<2x8x128xf32> to vector<2x8x128xbf16>
    %25 = vector.extract_strided_slice %20 {offsets = [0, 0, 0], sizes = [2, 8, 32], strides = [1, 1, 1]} : vector<2x8x128xbf16> to vector<2x8x32xbf16>
    %26 = vector.extract_strided_slice %22 {offsets = [0, 0, 0], sizes = [2, 8, 32], strides = [1, 1, 1]} : vector<2x8x128xbf16> to vector<2x8x32xbf16>
    %27 = vector.extract_strided_slice %24 {offsets = [0, 0, 0], sizes = [2, 8, 32], strides = [1, 1, 1]} : vector<2x8x128xbf16> to vector<2x8x32xbf16>
    "tpu.trace_start"() <{level = 10 : i32, message = "bqd,bkd->bqk"}> : () -> ()
    %cst_11 = arith.constant dense<0.000000e+00> : vector<2x8x8xf32>
    %28 = tpu.matmul %25, %26, %cst_11 {dimension_numbers = #tpu.dot_dimension_numbers<[2], [2], [1], [1], [0, 0, 0, 1, 1, 1], [0], [0]>} : vector<2x8x32xbf16>, vector<2x8x32xbf16>, vector<2x8x8xf32> -> vector<2x8x8xf32>
    "tpu.trace_stop"() : () -> ()
    %cst_12 = arith.constant dense<0xFF800000> : vector<2x8xf32>
    %29 = vector.multi_reduction <maximumf>, %28, %cst_12 [2] : vector<2x8x8xf32> to vector<2x8xf32>
    %30 = vector.shape_cast %29 : vector<2x8xf32> to vector<2x8x1xf32>
    %31 = vector.broadcast %30 : vector<2x8x1xf32> to vector<2x8x8xf32>
    %32 = arith.subf %28, %31 : vector<2x8x8xf32>
    %33 = math.exp %32 : vector<2x8x8xf32>
    %cst_13 = arith.constant dense<0.000000e+00> : vector<2x8xf32>
    %34 = vector.multi_reduction <add>, %33, %cst_13 [2] : vector<2x8x8xf32> to vector<2x8xf32>
    %35 = vector.shape_cast %34 : vector<2x8xf32> to vector<2x8x1xf32>
    %36 = tpu.reciprocal %35 {approx = true} : vector<2x8x1xf32> -> vector<2x8x1xf32>
    %37 = vector.broadcast %36 : vector<2x8x1xf32> to vector<2x8x8xf32>
    %38 = arith.mulf %33, %37 : vector<2x8x8xf32>
    %39 = arith.truncf %38 : vector<2x8x8xf32> to vector<2x8x8xbf16>
    "tpu.trace_start"() <{level = 10 : i32, message = "bqk,bkd->bqd"}> : () -> ()
    %cst_14 = arith.constant dense<0.000000e+00> : vector<2x8x32xf32>
    %40 = tpu.matmul %39, %27, %cst_14 {dimension_numbers = #tpu.dot_dimension_numbers<[2], [1], [1], [2], [0, 0, 0, 1, 1, 2], [0], [0]>} : vector<2x8x8xbf16>, vector<2x8x32xbf16>, vector<2x8x32xf32> -> vector<2x8x32xf32>
    "tpu.trace_stop"() : () -> ()
    %41 = vector.extract_strided_slice %20 {offsets = [0, 0, 32], sizes = [2, 8, 32], strides = [1, 1, 1]} : vector<2x8x128xbf16> to vector<2x8x32xbf16>
    %42 = vector.extract_strided_slice %22 {offsets = [0, 0, 32], sizes = [2, 8, 32], strides = [1, 1, 1]} : vector<2x8x128xbf16> to vector<2x8x32xbf16>
    %43 = vector.extract_strided_slice %24 {offsets = [0, 0, 32], sizes = [2, 8, 32], strides = [1, 1, 1]} : vector<2x8x128xbf16> to vector<2x8x32xbf16>
    "tpu.trace_start"() <{level = 10 : i32, message = "bqd,bkd->bqk"}> : () -> ()
    %cst_15 = arith.constant dense<0.000000e+00> : vector<2x8x8xf32>
    %44 = tpu.matmul %41, %42, %cst_15 {dimension_numbers = #tpu.dot_dimension_numbers<[2], [2], [1], [1], [0, 0, 0, 1, 1, 1], [0], [0]>} : vector<2x8x32xbf16>, vector<2x8x32xbf16>, vector<2x8x8xf32> -> vector<2x8x8xf32>
    "tpu.trace_stop"() : () -> ()
    %cst_16 = arith.constant dense<0xFF800000> : vector<2x8xf32>
    %45 = vector.multi_reduction <maximumf>, %44, %cst_16 [2] : vector<2x8x8xf32> to vector<2x8xf32>
    %46 = vector.shape_cast %45 : vector<2x8xf32> to vector<2x8x1xf32>
    %47 = vector.broadcast %46 : vector<2x8x1xf32> to vector<2x8x8xf32>
    %48 = arith.subf %44, %47 : vector<2x8x8xf32>
    %49 = math.exp %48 : vector<2x8x8xf32>
    %cst_17 = arith.constant dense<0.000000e+00> : vector<2x8xf32>
    %50 = vector.multi_reduction <add>, %49, %cst_17 [2] : vector<2x8x8xf32> to vector<2x8xf32>
    %51 = vector.shape_cast %50 : vector<2x8xf32> to vector<2x8x1xf32>
    %52 = tpu.reciprocal %51 {approx = true} : vector<2x8x1xf32> -> vector<2x8x1xf32>
    %53 = vector.broadcast %52 : vector<2x8x1xf32> to vector<2x8x8xf32>
    %54 = arith.mulf %49, %53 : vector<2x8x8xf32>
    %55 = arith.truncf %54 : vector<2x8x8xf32> to vector<2x8x8xbf16>
    "tpu.trace_start"() <{level = 10 : i32, message = "bqk,bkd->bqd"}> : () -> ()
    %cst_18 = arith.constant dense<0.000000e+00> : vector<2x8x32xf32>
    %56 = tpu.matmul %55, %43, %cst_18 {dimension_numbers = #tpu.dot_dimension_numbers<[2], [1], [1], [2], [0, 0, 0, 1, 1, 2], [0], [0]>} : vector<2x8x8xbf16>, vector<2x8x32xbf16>, vector<2x8x32xf32> -> vector<2x8x32xf32>
    "tpu.trace_stop"() : () -> ()
    %57 = vector.extract_strided_slice %20 {offsets = [0, 0, 64], sizes = [2, 8, 32], strides = [1, 1, 1]} : vector<2x8x128xbf16> to vector<2x8x32xbf16>
    %58 = vector.extract_strided_slice %22 {offsets = [0, 0, 64], sizes = [2, 8, 32], strides = [1, 1, 1]} : vector<2x8x128xbf16> to vector<2x8x32xbf16>
    %59 = vector.extract_strided_slice %24 {offsets = [0, 0, 64], sizes = [2, 8, 32], strides = [1, 1, 1]} : vector<2x8x128xbf16> to vector<2x8x32xbf16>
    "tpu.trace_start"() <{level = 10 : i32, message = "bqd,bkd->bqk"}> : () -> ()
    %cst_19 = arith.constant dense<0.000000e+00> : vector<2x8x8xf32>
    %60 = tpu.matmul %57, %58, %cst_19 {dimension_numbers = #tpu.dot_dimension_numbers<[2], [2], [1], [1], [0, 0, 0, 1, 1, 1], [0], [0]>} : vector<2x8x32xbf16>, vector<2x8x32xbf16>, vector<2x8x8xf32> -> vector<2x8x8xf32>
    "tpu.trace_stop"() : () -> ()
    %cst_20 = arith.constant dense<0xFF800000> : vector<2x8xf32>
    %61 = vector.multi_reduction <maximumf>, %60, %cst_20 [2] : vector<2x8x8xf32> to vector<2x8xf32>
    %62 = vector.shape_cast %61 : vector<2x8xf32> to vector<2x8x1xf32>
    %63 = vector.broadcast %62 : vector<2x8x1xf32> to vector<2x8x8xf32>
    %64 = arith.subf %60, %63 : vector<2x8x8xf32>
    %65 = math.exp %64 : vector<2x8x8xf32>
    %cst_21 = arith.constant dense<0.000000e+00> : vector<2x8xf32>
    %66 = vector.multi_reduction <add>, %65, %cst_21 [2] : vector<2x8x8xf32> to vector<2x8xf32>
    %67 = vector.shape_cast %66 : vector<2x8xf32> to vector<2x8x1xf32>
    %68 = tpu.reciprocal %67 {approx = true} : vector<2x8x1xf32> -> vector<2x8x1xf32>
    %69 = vector.broadcast %68 : vector<2x8x1xf32> to vector<2x8x8xf32>
    %70 = arith.mulf %65, %69 : vector<2x8x8xf32>
    %71 = arith.truncf %70 : vector<2x8x8xf32> to vector<2x8x8xbf16>
    "tpu.trace_start"() <{level = 10 : i32, message = "bqk,bkd->bqd"}> : () -> ()
    %cst_22 = arith.constant dense<0.000000e+00> : vector<2x8x32xf32>
    %72 = tpu.matmul %71, %59, %cst_22 {dimension_numbers = #tpu.dot_dimension_numbers<[2], [1], [1], [2], [0, 0, 0, 1, 1, 2], [0], [0]>} : vector<2x8x8xbf16>, vector<2x8x32xbf16>, vector<2x8x32xf32> -> vector<2x8x32xf32>
    "tpu.trace_stop"() : () -> ()
    %73 = vector.extract_strided_slice %20 {offsets = [0, 0, 96], sizes = [2, 8, 32], strides = [1, 1, 1]} : vector<2x8x128xbf16> to vector<2x8x32xbf16>
    %74 = vector.extract_strided_slice %22 {offsets = [0, 0, 96], sizes = [2, 8, 32], strides = [1, 1, 1]} : vector<2x8x128xbf16> to vector<2x8x32xbf16>
    %75 = vector.extract_strided_slice %24 {offsets = [0, 0, 96], sizes = [2, 8, 32], strides = [1, 1, 1]} : vector<2x8x128xbf16> to vector<2x8x32xbf16>
    "tpu.trace_start"() <{level = 10 : i32, message = "bqd,bkd->bqk"}> : () -> ()
    %cst_23 = arith.constant dense<0.000000e+00> : vector<2x8x8xf32>
    %76 = tpu.matmul %73, %74, %cst_23 {dimension_numbers = #tpu.dot_dimension_numbers<[2], [2], [1], [1], [0, 0, 0, 1, 1, 1], [0], [0]>} : vector<2x8x32xbf16>, vector<2x8x32xbf16>, vector<2x8x8xf32> -> vector<2x8x8xf32>
    "tpu.trace_stop"() : () -> ()
    %cst_24 = arith.constant dense<0xFF800000> : vector<2x8xf32>
    %77 = vector.multi_reduction <maximumf>, %76, %cst_24 [2] : vector<2x8x8xf32> to vector<2x8xf32>
    %78 = vector.shape_cast %77 : vector<2x8xf32> to vector<2x8x1xf32>
    %79 = vector.broadcast %78 : vector<2x8x1xf32> to vector<2x8x8xf32>
    %80 = arith.subf %76, %79 : vector<2x8x8xf32>
    %81 = math.exp %80 : vector<2x8x8xf32>
    %cst_25 = arith.constant dense<0.000000e+00> : vector<2x8xf32>
    %82 = vector.multi_reduction <add>, %81, %cst_25 [2] : vector<2x8x8xf32> to vector<2x8xf32>
    %83 = vector.shape_cast %82 : vector<2x8xf32> to vector<2x8x1xf32>
    %84 = tpu.reciprocal %83 {approx = true} : vector<2x8x1xf32> -> vector<2x8x1xf32>
    %85 = vector.broadcast %84 : vector<2x8x1xf32> to vector<2x8x8xf32>
    %86 = arith.mulf %81, %85 : vector<2x8x8xf32>
    %87 = arith.truncf %86 : vector<2x8x8xf32> to vector<2x8x8xbf16>
    "tpu.trace_start"() <{level = 10 : i32, message = "bqk,bkd->bqd"}> : () -> ()
    %cst_26 = arith.constant dense<0.000000e+00> : vector<2x8x32xf32>
    %88 = tpu.matmul %87, %75, %cst_26 {dimension_numbers = #tpu.dot_dimension_numbers<[2], [1], [1], [2], [0, 0, 0, 1, 1, 2], [0], [0]>} : vector<2x8x8xbf16>, vector<2x8x32xbf16>, vector<2x8x32xf32> -> vector<2x8x32xf32>
    "tpu.trace_stop"() : () -> ()
    %89 = tpu.concatenate %40, %56, %72, %88 in 2 : vector<2x8x32xf32>, vector<2x8x32xf32>, vector<2x8x32xf32>, vector<2x8x32xf32> -> vector<2x8x128xf32>
    %90 = vector.shape_cast %89 : vector<2x8x128xf32> to vector<16x128xf32>
    %91 = vector.extract_strided_slice %6 {offsets = [3, 0], sizes = [1, 128], strides = [1, 1]} : vector<13x384xf32> to vector<1x128xf32>
    %92 = arith.truncf %90 : vector<16x128xf32> to vector<16x128xbf16>
    %c0_27 = arith.constant 0 : index
    %c0_28 = arith.constant 0 : index
    %c0_29 = arith.constant 0 : index
    %93 = vector.load %arg4[%c0_27, %c0_28, %c0_29] : memref<1x128x128xbf16, #tpu.memory_space<vmem>>, vector<1x128x128xbf16>
    %94 = vector.shape_cast %93 : vector<1x128x128xbf16> to vector<128x128xbf16>
    %cst_30 = arith.constant dense<0.000000e+00> : vector<16x128xf32>
    %95 = tpu.matmul %92, %94, %cst_30 {dimension_numbers = #tpu.dot_dimension_numbers<[1], [0], [0], [1], [0, 0, 1, 1], [], []>} : vector<16x128xbf16>, vector<128x128xbf16>, vector<16x128xf32> -> vector<16x128xf32>
    %96 = vector.broadcast %91 : vector<1x128xf32> to vector<16x128xf32>
    %97 = arith.addf %95, %96 : vector<16x128xf32>
    %98 = arith.addf %3, %97 : vector<16x128xf32>
    %99 = vector.extract_strided_slice %6 {offsets = [4, 0], sizes = [1, 128], strides = [1, 1]} : vector<13x384xf32> to vector<1x128xf32>
    %100 = vector.extract_strided_slice %6 {offsets = [5, 0], sizes = [1, 128], strides = [1, 1]} : vector<13x384xf32> to vector<1x128xf32>
    %cst_31 = arith.constant dense<0.000000e+00> : vector<16xf32>
    %101 = vector.multi_reduction <add>, %98, %cst_31 [1] : vector<16x128xf32> to vector<16xf32>
    %102 = vector.shape_cast %101 : vector<16xf32> to vector<16x1xf32>
    %cst_32 = arith.constant 1.280000e+02 : f32
    %103 = vector.broadcast %cst_32 : f32 to vector<16x1xf32>
    %104 = arith.divf %102, %103 : vector<16x1xf32>
    %105 = vector.broadcast %104 : vector<16x1xf32> to vector<16x128xf32>
    %106 = arith.subf %98, %105 : vector<16x128xf32>
    %107 = arith.mulf %106, %106 : vector<16x128xf32>
    %cst_33 = arith.constant dense<0.000000e+00> : vector<16xf32>
    %108 = vector.multi_reduction <add>, %107, %cst_33 [1] : vector<16x128xf32> to vector<16xf32>
    %109 = vector.shape_cast %108 : vector<16xf32> to vector<16x1xf32>
    %cst_34 = arith.constant 1.280000e+02 : f32
    %110 = vector.broadcast %cst_34 : f32 to vector<16x1xf32>
    %111 = arith.divf %109, %110 : vector<16x1xf32>
    %112 = vector.broadcast %104 : vector<16x1xf32> to vector<16x128xf32>
    %113 = arith.subf %98, %112 : vector<16x128xf32>
    %cst_35 = arith.constant 9.99999974E-6 : f32
    %114 = vector.broadcast %cst_35 : f32 to vector<16x1xf32>
    %115 = arith.addf %111, %114 : vector<16x1xf32>
    %116 = math.rsqrt %115 : vector<16x1xf32>
    %117 = vector.broadcast %116 : vector<16x1xf32> to vector<16x128xf32>
    %118 = arith.mulf %113, %117 : vector<16x128xf32>
    %119 = vector.broadcast %99 : vector<1x128xf32> to vector<16x128xf32>
    %120 = arith.mulf %118, %119 : vector<16x128xf32>
    %121 = vector.broadcast %100 : vector<1x128xf32> to vector<16x128xf32>
    %122 = arith.addf %120, %121 : vector<16x128xf32>
    %123 = vector.extract_strided_slice %6 {offsets = [6, 0], sizes = [1, 128], strides = [1, 1]} : vector<13x384xf32> to vector<1x128xf32>
    %124 = arith.truncf %122 : vector<16x128xf32> to vector<16x128xbf16>
    %c0_36 = arith.constant 0 : index
    %c0_37 = arith.constant 0 : index
    %c0_38 = arith.constant 0 : index
    %125 = vector.load %arg5[%c0_36, %c0_37, %c0_38] : memref<1x128x128xbf16, #tpu.memory_space<vmem>>, vector<1x128x128xbf16>
    %126 = vector.shape_cast %125 : vector<1x128x128xbf16> to vector<128x128xbf16>
    %cst_39 = arith.constant dense<0.000000e+00> : vector<16x128xf32>
    %127 = tpu.matmul %124, %126, %cst_39 {dimension_numbers = #tpu.dot_dimension_numbers<[1], [0], [0], [1], [0, 0, 1, 1], [], []>} : vector<16x128xbf16>, vector<128x128xbf16>, vector<16x128xf32> -> vector<16x128xf32>
    %128 = vector.broadcast %123 : vector<1x128xf32> to vector<16x128xf32>
    %129 = arith.addf %127, %128 : vector<16x128xf32>
    %c0_40 = arith.constant 0 : index
    %c0_41 = arith.constant 0 : index
    %c0_42 = arith.constant 0 : index
    %130 = vector.load %arg6[%c0_40, %c0_41, %c0_42] : memref<1x128x256xbf16, #tpu.memory_space<vmem>>, vector<1x128x256xbf16>
    %131 = vector.shape_cast %130 : vector<1x128x256xbf16> to vector<128x256xbf16>
    %cst_43 = arith.constant dense<0.000000e+00> : vector<16x256xf32>
    %132 = tpu.matmul %4, %131, %cst_43 {dimension_numbers = #tpu.dot_dimension_numbers<[1], [0], [0], [1], [0, 0, 1, 1], [], []>} : vector<16x128xbf16>, vector<128x256xbf16>, vector<16x256xf32> -> vector<16x256xf32>
    %133 = vector.extract_strided_slice %6 {offsets = [1, 0], sizes = [1, 256], strides = [1, 1]} : vector<13x384xf32> to vector<1x256xf32>
    %134 = vector.broadcast %133 : vector<1x256xf32> to vector<16x256xf32>
    %135 = arith.addf %132, %134 : vector<16x256xf32>
    %136 = vector.extract_strided_slice %135 {offsets = [0, 0], sizes = [16, 128], strides = [1, 1]} : vector<16x256xf32> to vector<16x128xf32>
    %137 = vector.extract_strided_slice %135 {offsets = [0, 128], sizes = [16, 128], strides = [1, 1]} : vector<16x256xf32> to vector<16x128xf32>
    %cst_44 = arith.constant 0.176776692 : f32
    %138 = vector.broadcast %cst_44 : f32 to vector<16x128xf32>
    %139 = arith.mulf %129, %138 : vector<16x128xf32>
    %140 = vector.shape_cast %139 : vector<16x128xf32> to vector<2x8x128xf32>
    %141 = arith.truncf %140 : vector<2x8x128xf32> to vector<2x8x128xbf16>
    %142 = vector.shape_cast %136 : vector<16x128xf32> to vector<2x8x128xf32>
    %143 = arith.truncf %142 : vector<2x8x128xf32> to vector<2x8x128xbf16>
    %144 = vector.shape_cast %137 : vector<16x128xf32> to vector<2x8x128xf32>
    %145 = arith.truncf %144 : vector<2x8x128xf32> to vector<2x8x128xbf16>
    %146 = vector.extract_strided_slice %141 {offsets = [0, 0, 0], sizes = [2, 8, 32], strides = [1, 1, 1]} : vector<2x8x128xbf16> to vector<2x8x32xbf16>
    %147 = vector.extract_strided_slice %143 {offsets = [0, 0, 0], sizes = [2, 8, 32], strides = [1, 1, 1]} : vector<2x8x128xbf16> to vector<2x8x32xbf16>
    %148 = vector.extract_strided_slice %145 {offsets = [0, 0, 0], sizes = [2, 8, 32], strides = [1, 1, 1]} : vector<2x8x128xbf16> to vector<2x8x32xbf16>
    "tpu.trace_start"() <{level = 10 : i32, message = "bqd,bkd->bqk"}> : () -> ()
    %cst_45 = arith.constant dense<0.000000e+00> : vector<2x8x8xf32>
    %149 = tpu.matmul %146, %147, %cst_45 {dimension_numbers = #tpu.dot_dimension_numbers<[2], [2], [1], [1], [0, 0, 0, 1, 1, 1], [0], [0]>} : vector<2x8x32xbf16>, vector<2x8x32xbf16>, vector<2x8x8xf32> -> vector<2x8x8xf32>
    "tpu.trace_stop"() : () -> ()
    %cst_46 = arith.constant dense<0xFF800000> : vector<2x8xf32>
    %150 = vector.multi_reduction <maximumf>, %149, %cst_46 [2] : vector<2x8x8xf32> to vector<2x8xf32>
    %151 = vector.shape_cast %150 : vector<2x8xf32> to vector<2x8x1xf32>
    %152 = vector.broadcast %151 : vector<2x8x1xf32> to vector<2x8x8xf32>
    %153 = arith.subf %149, %152 : vector<2x8x8xf32>
    %154 = math.exp %153 : vector<2x8x8xf32>
    %cst_47 = arith.constant dense<0.000000e+00> : vector<2x8xf32>
    %155 = vector.multi_reduction <add>, %154, %cst_47 [2] : vector<2x8x8xf32> to vector<2x8xf32>
    %156 = vector.shape_cast %155 : vector<2x8xf32> to vector<2x8x1xf32>
    %157 = tpu.reciprocal %156 {approx = true} : vector<2x8x1xf32> -> vector<2x8x1xf32>
    %158 = vector.broadcast %157 : vector<2x8x1xf32> to vector<2x8x8xf32>
    %159 = arith.mulf %154, %158 : vector<2x8x8xf32>
    %160 = arith.truncf %159 : vector<2x8x8xf32> to vector<2x8x8xbf16>
    "tpu.trace_start"() <{level = 10 : i32, message = "bqk,bkd->bqd"}> : () -> ()
    %cst_48 = arith.constant dense<0.000000e+00> : vector<2x8x32xf32>
    %161 = tpu.matmul %160, %148, %cst_48 {dimension_numbers = #tpu.dot_dimension_numbers<[2], [1], [1], [2], [0, 0, 0, 1, 1, 2], [0], [0]>} : vector<2x8x8xbf16>, vector<2x8x32xbf16>, vector<2x8x32xf32> -> vector<2x8x32xf32>
    "tpu.trace_stop"() : () -> ()
    %162 = vector.extract_strided_slice %141 {offsets = [0, 0, 32], sizes = [2, 8, 32], strides = [1, 1, 1]} : vector<2x8x128xbf16> to vector<2x8x32xbf16>
    %163 = vector.extract_strided_slice %143 {offsets = [0, 0, 32], sizes = [2, 8, 32], strides = [1, 1, 1]} : vector<2x8x128xbf16> to vector<2x8x32xbf16>
    %164 = vector.extract_strided_slice %145 {offsets = [0, 0, 32], sizes = [2, 8, 32], strides = [1, 1, 1]} : vector<2x8x128xbf16> to vector<2x8x32xbf16>
    "tpu.trace_start"() <{level = 10 : i32, message = "bqd,bkd->bqk"}> : () -> ()
    %cst_49 = arith.constant dense<0.000000e+00> : vector<2x8x8xf32>
    %165 = tpu.matmul %162, %163, %cst_49 {dimension_numbers = #tpu.dot_dimension_numbers<[2], [2], [1], [1], [0, 0, 0, 1, 1, 1], [0], [0]>} : vector<2x8x32xbf16>, vector<2x8x32xbf16>, vector<2x8x8xf32> -> vector<2x8x8xf32>
    "tpu.trace_stop"() : () -> ()
    %cst_50 = arith.constant dense<0xFF800000> : vector<2x8xf32>
    %166 = vector.multi_reduction <maximumf>, %165, %cst_50 [2] : vector<2x8x8xf32> to vector<2x8xf32>
    %167 = vector.shape_cast %166 : vector<2x8xf32> to vector<2x8x1xf32>
    %168 = vector.broadcast %167 : vector<2x8x1xf32> to vector<2x8x8xf32>
    %169 = arith.subf %165, %168 : vector<2x8x8xf32>
    %170 = math.exp %169 : vector<2x8x8xf32>
    %cst_51 = arith.constant dense<0.000000e+00> : vector<2x8xf32>
    %171 = vector.multi_reduction <add>, %170, %cst_51 [2] : vector<2x8x8xf32> to vector<2x8xf32>
    %172 = vector.shape_cast %171 : vector<2x8xf32> to vector<2x8x1xf32>
    %173 = tpu.reciprocal %172 {approx = true} : vector<2x8x1xf32> -> vector<2x8x1xf32>
    %174 = vector.broadcast %173 : vector<2x8x1xf32> to vector<2x8x8xf32>
    %175 = arith.mulf %170, %174 : vector<2x8x8xf32>
    %176 = arith.truncf %175 : vector<2x8x8xf32> to vector<2x8x8xbf16>
    "tpu.trace_start"() <{level = 10 : i32, message = "bqk,bkd->bqd"}> : () -> ()
    %cst_52 = arith.constant dense<0.000000e+00> : vector<2x8x32xf32>
    %177 = tpu.matmul %176, %164, %cst_52 {dimension_numbers = #tpu.dot_dimension_numbers<[2], [1], [1], [2], [0, 0, 0, 1, 1, 2], [0], [0]>} : vector<2x8x8xbf16>, vector<2x8x32xbf16>, vector<2x8x32xf32> -> vector<2x8x32xf32>
    "tpu.trace_stop"() : () -> ()
    %178 = vector.extract_strided_slice %141 {offsets = [0, 0, 64], sizes = [2, 8, 32], strides = [1, 1, 1]} : vector<2x8x128xbf16> to vector<2x8x32xbf16>
    %179 = vector.extract_strided_slice %143 {offsets = [0, 0, 64], sizes = [2, 8, 32], strides = [1, 1, 1]} : vector<2x8x128xbf16> to vector<2x8x32xbf16>
    %180 = vector.extract_strided_slice %145 {offsets = [0, 0, 64], sizes = [2, 8, 32], strides = [1, 1, 1]} : vector<2x8x128xbf16> to vector<2x8x32xbf16>
    "tpu.trace_start"() <{level = 10 : i32, message = "bqd,bkd->bqk"}> : () -> ()
    %cst_53 = arith.constant dense<0.000000e+00> : vector<2x8x8xf32>
    %181 = tpu.matmul %178, %179, %cst_53 {dimension_numbers = #tpu.dot_dimension_numbers<[2], [2], [1], [1], [0, 0, 0, 1, 1, 1], [0], [0]>} : vector<2x8x32xbf16>, vector<2x8x32xbf16>, vector<2x8x8xf32> -> vector<2x8x8xf32>
    "tpu.trace_stop"() : () -> ()
    %cst_54 = arith.constant dense<0xFF800000> : vector<2x8xf32>
    %182 = vector.multi_reduction <maximumf>, %181, %cst_54 [2] : vector<2x8x8xf32> to vector<2x8xf32>
    %183 = vector.shape_cast %182 : vector<2x8xf32> to vector<2x8x1xf32>
    %184 = vector.broadcast %183 : vector<2x8x1xf32> to vector<2x8x8xf32>
    %185 = arith.subf %181, %184 : vector<2x8x8xf32>
    %186 = math.exp %185 : vector<2x8x8xf32>
    %cst_55 = arith.constant dense<0.000000e+00> : vector<2x8xf32>
    %187 = vector.multi_reduction <add>, %186, %cst_55 [2] : vector<2x8x8xf32> to vector<2x8xf32>
    %188 = vector.shape_cast %187 : vector<2x8xf32> to vector<2x8x1xf32>
    %189 = tpu.reciprocal %188 {approx = true} : vector<2x8x1xf32> -> vector<2x8x1xf32>
    %190 = vector.broadcast %189 : vector<2x8x1xf32> to vector<2x8x8xf32>
    %191 = arith.mulf %186, %190 : vector<2x8x8xf32>
    %192 = arith.truncf %191 : vector<2x8x8xf32> to vector<2x8x8xbf16>
    "tpu.trace_start"() <{level = 10 : i32, message = "bqk,bkd->bqd"}> : () -> ()
    %cst_56 = arith.constant dense<0.000000e+00> : vector<2x8x32xf32>
    %193 = tpu.matmul %192, %180, %cst_56 {dimension_numbers = #tpu.dot_dimension_numbers<[2], [1], [1], [2], [0, 0, 0, 1, 1, 2], [0], [0]>} : vector<2x8x8xbf16>, vector<2x8x32xbf16>, vector<2x8x32xf32> -> vector<2x8x32xf32>
    "tpu.trace_stop"() : () -> ()
    %194 = vector.extract_strided_slice %141 {offsets = [0, 0, 96], sizes = [2, 8, 32], strides = [1, 1, 1]} : vector<2x8x128xbf16> to vector<2x8x32xbf16>
    %195 = vector.extract_strided_slice %143 {offsets = [0, 0, 96], sizes = [2, 8, 32], strides = [1, 1, 1]} : vector<2x8x128xbf16> to vector<2x8x32xbf16>
    %196 = vector.extract_strided_slice %145 {offsets = [0, 0, 96], sizes = [2, 8, 32], strides = [1, 1, 1]} : vector<2x8x128xbf16> to vector<2x8x32xbf16>
    "tpu.trace_start"() <{level = 10 : i32, message = "bqd,bkd->bqk"}> : () -> ()
    %cst_57 = arith.constant dense<0.000000e+00> : vector<2x8x8xf32>
    %197 = tpu.matmul %194, %195, %cst_57 {dimension_numbers = #tpu.dot_dimension_numbers<[2], [2], [1], [1], [0, 0, 0, 1, 1, 1], [0], [0]>} : vector<2x8x32xbf16>, vector<2x8x32xbf16>, vector<2x8x8xf32> -> vector<2x8x8xf32>
    "tpu.trace_stop"() : () -> ()
    %cst_58 = arith.constant dense<0xFF800000> : vector<2x8xf32>
    %198 = vector.multi_reduction <maximumf>, %197, %cst_58 [2] : vector<2x8x8xf32> to vector<2x8xf32>
    %199 = vector.shape_cast %198 : vector<2x8xf32> to vector<2x8x1xf32>
    %200 = vector.broadcast %199 : vector<2x8x1xf32> to vector<2x8x8xf32>
    %201 = arith.subf %197, %200 : vector<2x8x8xf32>
    %202 = math.exp %201 : vector<2x8x8xf32>
    %cst_59 = arith.constant dense<0.000000e+00> : vector<2x8xf32>
    %203 = vector.multi_reduction <add>, %202, %cst_59 [2] : vector<2x8x8xf32> to vector<2x8xf32>
    %204 = vector.shape_cast %203 : vector<2x8xf32> to vector<2x8x1xf32>
    %205 = tpu.reciprocal %204 {approx = true} : vector<2x8x1xf32> -> vector<2x8x1xf32>
    %206 = vector.broadcast %205 : vector<2x8x1xf32> to vector<2x8x8xf32>
    %207 = arith.mulf %202, %206 : vector<2x8x8xf32>
    %208 = arith.truncf %207 : vector<2x8x8xf32> to vector<2x8x8xbf16>
    "tpu.trace_start"() <{level = 10 : i32, message = "bqk,bkd->bqd"}> : () -> ()
    %cst_60 = arith.constant dense<0.000000e+00> : vector<2x8x32xf32>
    %209 = tpu.matmul %208, %196, %cst_60 {dimension_numbers = #tpu.dot_dimension_numbers<[2], [1], [1], [2], [0, 0, 0, 1, 1, 2], [0], [0]>} : vector<2x8x8xbf16>, vector<2x8x32xbf16>, vector<2x8x32xf32> -> vector<2x8x32xf32>
    "tpu.trace_stop"() : () -> ()
    %210 = tpu.concatenate %161, %177, %193, %209 in 2 : vector<2x8x32xf32>, vector<2x8x32xf32>, vector<2x8x32xf32>, vector<2x8x32xf32> -> vector<2x8x128xf32>
    %211 = vector.shape_cast %210 : vector<2x8x128xf32> to vector<16x128xf32>
    %212 = vector.extract_strided_slice %6 {offsets = [7, 0], sizes = [1, 128], strides = [1, 1]} : vector<13x384xf32> to vector<1x128xf32>
    %213 = arith.truncf %211 : vector<16x128xf32> to vector<16x128xbf16>
    %c0_61 = arith.constant 0 : index
    %c0_62 = arith.constant 0 : index
    %c0_63 = arith.constant 0 : index
    %214 = vector.load %arg7[%c0_61, %c0_62, %c0_63] : memref<1x128x128xbf16, #tpu.memory_space<vmem>>, vector<1x128x128xbf16>
    %215 = vector.shape_cast %214 : vector<1x128x128xbf16> to vector<128x128xbf16>
    %cst_64 = arith.constant dense<0.000000e+00> : vector<16x128xf32>
    %216 = tpu.matmul %213, %215, %cst_64 {dimension_numbers = #tpu.dot_dimension_numbers<[1], [0], [0], [1], [0, 0, 1, 1], [], []>} : vector<16x128xbf16>, vector<128x128xbf16>, vector<16x128xf32> -> vector<16x128xf32>
    %217 = vector.broadcast %212 : vector<1x128xf32> to vector<16x128xf32>
    %218 = arith.addf %216, %217 : vector<16x128xf32>
    %219 = arith.addf %122, %218 : vector<16x128xf32>
    %220 = vector.extract_strided_slice %6 {offsets = [8, 0], sizes = [1, 128], strides = [1, 1]} : vector<13x384xf32> to vector<1x128xf32>
    %221 = vector.extract_strided_slice %6 {offsets = [9, 0], sizes = [1, 128], strides = [1, 1]} : vector<13x384xf32> to vector<1x128xf32>
    %cst_65 = arith.constant dense<0.000000e+00> : vector<16xf32>
    %222 = vector.multi_reduction <add>, %219, %cst_65 [1] : vector<16x128xf32> to vector<16xf32>
    %223 = vector.shape_cast %222 : vector<16xf32> to vector<16x1xf32>
    %cst_66 = arith.constant 1.280000e+02 : f32
    %224 = vector.broadcast %cst_66 : f32 to vector<16x1xf32>
    %225 = arith.divf %223, %224 : vector<16x1xf32>
    %226 = vector.broadcast %225 : vector<16x1xf32> to vector<16x128xf32>
    %227 = arith.subf %219, %226 : vector<16x128xf32>
    %228 = arith.mulf %227, %227 : vector<16x128xf32>
    %cst_67 = arith.constant dense<0.000000e+00> : vector<16xf32>
    %229 = vector.multi_reduction <add>, %228, %cst_67 [1] : vector<16x128xf32> to vector<16xf32>
    %230 = vector.shape_cast %229 : vector<16xf32> to vector<16x1xf32>
    %cst_68 = arith.constant 1.280000e+02 : f32
    %231 = vector.broadcast %cst_68 : f32 to vector<16x1xf32>
    %232 = arith.divf %230, %231 : vector<16x1xf32>
    %233 = vector.broadcast %225 : vector<16x1xf32> to vector<16x128xf32>
    %234 = arith.subf %219, %233 : vector<16x128xf32>
    %cst_69 = arith.constant 9.99999974E-6 : f32
    %235 = vector.broadcast %cst_69 : f32 to vector<16x1xf32>
    %236 = arith.addf %232, %235 : vector<16x1xf32>
    %237 = math.rsqrt %236 : vector<16x1xf32>
    %238 = vector.broadcast %237 : vector<16x1xf32> to vector<16x128xf32>
    %239 = arith.mulf %234, %238 : vector<16x128xf32>
    %240 = vector.broadcast %220 : vector<1x128xf32> to vector<16x128xf32>
    %241 = arith.mulf %239, %240 : vector<16x128xf32>
    %242 = vector.broadcast %221 : vector<1x128xf32> to vector<16x128xf32>
    %243 = arith.addf %241, %242 : vector<16x128xf32>
    %244 = vector.extract_strided_slice %6 {offsets = [2, 0], sizes = [1, 256], strides = [1, 1]} : vector<13x384xf32> to vector<1x256xf32>
    %245 = arith.truncf %243 : vector<16x128xf32> to vector<16x128xbf16>
    %c0_70 = arith.constant 0 : index
    %c0_71 = arith.constant 0 : index
    %c0_72 = arith.constant 0 : index
    %246 = vector.load %arg8[%c0_70, %c0_71, %c0_72] : memref<1x128x256xbf16, #tpu.memory_space<vmem>>, vector<1x128x256xbf16>
    %247 = vector.shape_cast %246 : vector<1x128x256xbf16> to vector<128x256xbf16>
    %cst_73 = arith.constant dense<0.000000e+00> : vector<16x256xf32>
    %248 = tpu.matmul %245, %247, %cst_73 {dimension_numbers = #tpu.dot_dimension_numbers<[1], [0], [0], [1], [0, 0, 1, 1], [], []>} : vector<16x128xbf16>, vector<128x256xbf16>, vector<16x256xf32> -> vector<16x256xf32>
    %249 = vector.broadcast %244 : vector<1x256xf32> to vector<16x256xf32>
    %250 = arith.addf %248, %249 : vector<16x256xf32>
    %cst_74 = arith.constant 0.000000e+00 : f32
    %251 = vector.broadcast %cst_74 : f32 to vector<16x256xf32>
    %252 = arith.maximumf %250, %251 : vector<16x256xf32>
    %253 = vector.extract_strided_slice %6 {offsets = [10, 0], sizes = [1, 128], strides = [1, 1]} : vector<13x384xf32> to vector<1x128xf32>
    %254 = arith.truncf %252 : vector<16x256xf32> to vector<16x256xbf16>
    %c0_75 = arith.constant 0 : index
    %c0_76 = arith.constant 0 : index
    %c0_77 = arith.constant 0 : index
    %255 = vector.load %arg9[%c0_75, %c0_76, %c0_77] : memref<1x256x128xbf16, #tpu.memory_space<vmem>>, vector<1x256x128xbf16>
    %256 = vector.shape_cast %255 : vector<1x256x128xbf16> to vector<256x128xbf16>
    %cst_78 = arith.constant dense<0.000000e+00> : vector<16x128xf32>
    %257 = tpu.matmul %254, %256, %cst_78 {dimension_numbers = #tpu.dot_dimension_numbers<[1], [0], [0], [1], [0, 0, 1, 1], [], []>} : vector<16x256xbf16>, vector<256x128xbf16>, vector<16x128xf32> -> vector<16x128xf32>
    %258 = vector.broadcast %253 : vector<1x128xf32> to vector<16x128xf32>
    %259 = arith.addf %257, %258 : vector<16x128xf32>
    %260 = arith.addf %243, %259 : vector<16x128xf32>
    %261 = vector.extract_strided_slice %6 {offsets = [11, 0], sizes = [1, 128], strides = [1, 1]} : vector<13x384xf32> to vector<1x128xf32>
    %262 = vector.extract_strided_slice %6 {offsets = [12, 0], sizes = [1, 128], strides = [1, 1]} : vector<13x384xf32> to vector<1x128xf32>
    %cst_79 = arith.constant dense<0.000000e+00> : vector<16xf32>
    %263 = vector.multi_reduction <add>, %260, %cst_79 [1] : vector<16x128xf32> to vector<16xf32>
    %264 = vector.shape_cast %263 : vector<16xf32> to vector<16x1xf32>
    %cst_80 = arith.constant 1.280000e+02 : f32
    %265 = vector.broadcast %cst_80 : f32 to vector<16x1xf32>
    %266 = arith.divf %264, %265 : vector<16x1xf32>
    %267 = vector.broadcast %266 : vector<16x1xf32> to vector<16x128xf32>
    %268 = arith.subf %260, %267 : vector<16x128xf32>
    %269 = arith.mulf %268, %268 : vector<16x128xf32>
    %cst_81 = arith.constant dense<0.000000e+00> : vector<16xf32>
    %270 = vector.multi_reduction <add>, %269, %cst_81 [1] : vector<16x128xf32> to vector<16xf32>
    %271 = vector.shape_cast %270 : vector<16xf32> to vector<16x1xf32>
    %cst_82 = arith.constant 1.280000e+02 : f32
    %272 = vector.broadcast %cst_82 : f32 to vector<16x1xf32>
    %273 = arith.divf %271, %272 : vector<16x1xf32>
    %274 = vector.broadcast %266 : vector<16x1xf32> to vector<16x128xf32>
    %275 = arith.subf %260, %274 : vector<16x128xf32>
    %cst_83 = arith.constant 9.99999974E-6 : f32
    %276 = vector.broadcast %cst_83 : f32 to vector<16x1xf32>
    %277 = arith.addf %273, %276 : vector<16x1xf32>
    %278 = math.rsqrt %277 : vector<16x1xf32>
    %279 = vector.broadcast %278 : vector<16x1xf32> to vector<16x128xf32>
    %280 = arith.mulf %275, %279 : vector<16x128xf32>
    %281 = vector.broadcast %261 : vector<1x128xf32> to vector<16x128xf32>
    %282 = arith.mulf %280, %281 : vector<16x128xf32>
    %283 = vector.broadcast %262 : vector<1x128xf32> to vector<16x128xf32>
    %284 = arith.addf %282, %283 : vector<16x128xf32>
    %c1_i32 = arith.constant 1 : i32
    %285 = arith.cmpi ne, %arg0, %c1_i32 : i32
    %286 = arith.extui %285 : i1 to i32
    %c0_i32_84 = arith.constant 0 : i32
    %287 = arith.cmpi ne, %286, %c0_i32_84 : i32
    scf.if %287 {
      %c0_87 = arith.constant 0 : index
      %c0_88 = arith.constant 0 : index
      %291 = vector.load %arg13[%c0_87, %c0_88] : memref<16x128xf32, #tpu.memory_space<vmem>>, vector<16x128xf32>
      tpu.vector_store %arg13[%c0_87, %c0_88], %284 {strides = array<i32>} : memref<16x128xf32, #tpu.memory_space<vmem>>, vector<16x128xf32>,
    } else {
    }
    %c1_i32_85 = arith.constant 1 : i32
    %288 = arith.cmpi eq, %arg0, %c1_i32_85 : i32
    %289 = arith.extui %288 : i1 to i32
    %c0_i32_86 = arith.constant 0 : i32
    %290 = arith.cmpi ne, %289, %c0_i32_86 : i32
    scf.if %290 {
      %c0_87 = arith.constant 0 : index
      %c0_88 = arith.constant 0 : index
      %291 = vector.load %arg11[%c0_87, %c0_88] : memref<1x128xf32, #tpu.memory_space<vmem>>, vector<1x128xf32>
      %c0_89 = arith.constant 0 : index
      %c0_90 = arith.constant 0 : index
      %292 = vector.load %arg12[%c0_89, %c0_90] : memref<1x128xf32, #tpu.memory_space<vmem>>, vector<1x128xf32>
      %cst_91 = arith.constant dense<0.000000e+00> : vector<16xf32>
      %293 = vector.multi_reduction <add>, %284, %cst_91 [1] : vector<16x128xf32> to vector<16xf32>
      %294 = vector.shape_cast %293 : vector<16xf32> to vector<16x1xf32>
      %cst_92 = arith.constant 1.280000e+02 : f32
      %295 = vector.broadcast %cst_92 : f32 to vector<16x1xf32>
      %296 = arith.divf %294, %295 : vector<16x1xf32>
      %297 = vector.broadcast %296 : vector<16x1xf32> to vector<16x128xf32>
      %298 = arith.subf %284, %297 : vector<16x128xf32>
      %299 = arith.mulf %298, %298 : vector<16x128xf32>
      %cst_93 = arith.constant dense<0.000000e+00> : vector<16xf32>
      %300 = vector.multi_reduction <add>, %299, %cst_93 [1] : vector<16x128xf32> to vector<16xf32>
      %301 = vector.shape_cast %300 : vector<16xf32> to vector<16x1xf32>
      %cst_94 = arith.constant 1.280000e+02 : f32
      %302 = vector.broadcast %cst_94 : f32 to vector<16x1xf32>
      %303 = arith.divf %301, %302 : vector<16x1xf32>
      %304 = vector.broadcast %296 : vector<16x1xf32> to vector<16x128xf32>
      %305 = arith.subf %284, %304 : vector<16x128xf32>
      %cst_95 = arith.constant 9.99999974E-6 : f32
      %306 = vector.broadcast %cst_95 : f32 to vector<16x1xf32>
      %307 = arith.addf %303, %306 : vector<16x1xf32>
      %308 = math.rsqrt %307 : vector<16x1xf32>
      %309 = vector.broadcast %308 : vector<16x1xf32> to vector<16x128xf32>
      %310 = arith.mulf %305, %309 : vector<16x128xf32>
      %311 = vector.broadcast %291 : vector<1x128xf32> to vector<16x128xf32>
      %312 = arith.mulf %310, %311 : vector<16x128xf32>
      %313 = vector.broadcast %292 : vector<1x128xf32> to vector<16x128xf32>
      %314 = arith.addf %312, %313 : vector<16x128xf32>
      %c0_96 = arith.constant 0 : index
      %c0_97 = arith.constant 0 : index
      %315 = vector.load %arg13[%c0_96, %c0_97] : memref<16x128xf32, #tpu.memory_space<vmem>>, vector<16x128xf32>
      tpu.vector_store %arg13[%c0_96, %c0_97], %314 {strides = array<i32>} : memref<16x128xf32, #tpu.memory_space<vmem>>, vector<16x128xf32>,
    } else {
    }
    return
  }
  func.func @transform_0(%arg0: i32) -> (i32, i32) {
    %c0_i32 = arith.constant 0 : i32
    %c0_i32_0 = arith.constant 0 : i32
    %c0_i32_1 = arith.constant 0 : i32
    return %c0_i32, %c0_i32_0 : i32, i32
  }
  func.func @transform_1(%arg0: i32) -> (i32, i32) {
    %c0_i32 = arith.constant 0 : i32
    %c0_i32_0 = arith.constant 0 : i32
    %c0_i32_1 = arith.constant 0 : i32
    return %c0_i32, %c0_i32_0 : i32, i32
  }
  func.func @transform_2(%arg0: i32) -> (i32, i32, i32) {
    %c0_i32 = arith.constant 0 : i32
    %c0_i32_0 = arith.constant 0 : i32
    %c0_i32_1 = arith.constant 0 : i32
    return %arg0, %c0_i32, %c0_i32_0 : i32, i32, i32
  }
  func.func @transform_3(%arg0: i32) -> (i32, i32, i32) {
    %c0_i32 = arith.constant 0 : i32
    %c0_i32_0 = arith.constant 0 : i32
    %c0_i32_1 = arith.constant 0 : i32
    return %arg0, %c0_i32, %c0_i32_0 : i32, i32, i32
  }
  func.func @transform_4(%arg0: i32) -> (i32, i32, i32) {
    %c0_i32 = arith.constant 0 : i32
    %c0_i32_0 = arith.constant 0 : i32
    %c0_i32_1 = arith.constant 0 : i32
    return %arg0, %c0_i32, %c0_i32_0 : i32, i32, i32
  }
  func.func @transform_5(%arg0: i32) -> (i32, i32, i32) {
    %c0_i32 = arith.constant 0 : i32
    %c0_i32_0 = arith.constant 0 : i32
    %c0_i32_1 = arith.constant 0 : i32
    return %arg0, %c0_i32, %c0_i32_0 : i32, i32, i32
  }
  func.func @transform_6(%arg0: i32) -> (i32, i32, i32) {
    %c0_i32 = arith.constant 0 : i32
    %c0_i32_0 = arith.constant 0 : i32
    %c0_i32_1 = arith.constant 0 : i32
    return %arg0, %c0_i32, %c0_i32_0 : i32, i32, i32
  }
  func.func @transform_7(%arg0: i32) -> (i32, i32, i32) {
    %c0_i32 = arith.constant 0 : i32
    %c0_i32_0 = arith.constant 0 : i32
    %c0_i32_1 = arith.constant 0 : i32
    return %arg0, %c0_i32, %c0_i32_0 : i32, i32, i32
  }
  func.func @transform_8(%arg0: i32) -> (i32, i32, i32) {
    %c0_i32 = arith.constant 0 : i32
    %c0_i32_0 = arith.constant 0 : i32
    %c0_i32_1 = arith.constant 0 : i32
    return %arg0, %c0_i32, %c0_i32_0 : i32, i32, i32
  }
  func.func @transform_9(%arg0: i32) -> (i32, i32, i32) {
    %c0_i32 = arith.constant 0 : i32
    %c0_i32_0 = arith.constant 0 : i32
    %c0_i32_1 = arith.constant 0 : i32
    return %arg0, %c0_i32, %c0_i32_0 : i32, i32, i32
  }
  func.func @transform_10(%arg0: i32) -> (i32, i32) {
    %c0_i32 = arith.constant 0 : i32
    %c0_i32_0 = arith.constant 0 : i32
    %c0_i32_1 = arith.constant 0 : i32
    return %c0_i32, %c0_i32_0 : i32, i32
  }
  func.func @transform_11(%arg0: i32) -> (i32, i32) {
    %c0_i32 = arith.constant 0 : i32
    %c0_i32_0 = arith.constant 0 : i32
    %c0_i32_1 = arith.constant 0 : i32
    return %c0_i32, %c0_i32_0 : i32, i32
  }
  func.func @transform_12(%arg0: i32) -> (i32, i32) {
    %c0_i32 = arith.constant 0 : i32
    %c0_i32_0 = arith.constant 0 : i32
    %c0_i32_1 = arith.constant 0 : i32
    return %c0_i32, %c0_i32_0 : i32, i32
  }
}

</mosaic_0001>

<bundles_post_ra>
// kernel: decoder_forward.1
= control target key start
LH: loop header
LB: loop body
LE: loop exit
PB: predicated region body
PF: predicated region fallthrough
CT: control target
= control target key end

     0   :  { %s4745_s0 = inlined_call_operand.vmem [shape: f32[16,128], index: 0, kind: input, shape index: {}]   ;;  %s4746_s1 = inlined_call_operand.vmem [shape: bf16[16,128], index: 1, kind: input, shape index: {}]   ;;  %s4747_s2 = inlined_call_operand.hbm [shape: bf16[2,128,384], index: 2, kind: input, shape index: {}]   ;;  %s4748_s3 = inlined_call_operand.vmem [shape: bf16[2,128,128], index: 3, kind: input, shape index: {}]   ;;  %s4749_s4 = inlined_call_operand.hbm [shape: bf16[2,128,128], index: 4, kind: input, shape index: {}]   ;;  %s4750_s5 = inlined_call_operand.hbm [shape: bf16[2,128,256], index: 5, kind: input, shape index: {}]   ;;  %s4751_s6 = inlined_call_operand.hbm [shape: bf16[2,128,128], index: 6, kind: input, shape index: {}]   ;;  %s4752_s7 = inlined_call_operand.hbm [shape: bf16[2,128,256], index: 7, kind: input, shape index: {}]   ;;  %s4753_s8 = inlined_call_operand.hbm [shape: bf16[2,256,128], index: 8, kind: input, shape index: {}]   ;;  %s4754_s9 = inlined_call_operand.vmem [shape: f32[2,13,384], index: 9, kind: input, shape index: {}]   ;;  %s4755_s10 = inlined_call_operand.vmem [shape: f32[1,128], index: 10, kind: input, shape index: {}]   ;;  %s4756_s11 = inlined_call_operand.vmem [shape: f32[1,128], index: 11, kind: input, shape index: {}]   ;;  %s4757_s12 = inlined_call_operand.hbm [shape: f32[16,128], index: 12, kind: output, shape index: {}]  }
   0x1   :  { %4768 = sst [smem:[#allocation22_spill]] %s4745_s0 }
   0x2   :  { %4769 = sst [smem:[#allocation23_spill]] %s4746_s1 }
   0x3   :  { %4770 = sst [smem:[#allocation24_spill]] %s4747_s2 }
   0x4   :  { %4771 = sst [smem:[#allocation25_spill]] %s4749_s4 }
   0x5   :  { %4772 = sst [smem:[#allocation26_spill]] %s4751_s6 }
   0x6   :  { %4773 = sst [smem:[#allocation27_spill]] %s4754_s9 }
   0x7   :  { %4774 = sst [smem:[#allocation28_spill]] %s4755_s10 }
   0x8   :  { %4775 = sst [smem:[#allocation29_spill]] %s4756_s11 }
   0x9   :  { %4776 = sst [smem:[#allocation30_spill]] %s4757_s12 }
   0xa   :  { %17 = vsyncpa [#allocation3], 0 }
   0xb   :  { %19 = vsyncpa [#allocation3 + $0x1], 0 }
   0xc   :  { %20 = vsyncpa [#allocation6], 0 }
   0xd   :  { %22 = vsyncpa [#allocation6 + $0x1], 0 }
   0xe   :  { %23 = vsyncpa [#allocation9], 0 }
   0xf   :  { %25 = vsyncpa [#allocation9 + $0x1], 0 }
  0x10   :  { %26 = vsyncpa [#allocation12], 0 }
  0x11   :  { %28 = vsyncpa [#allocation12 + $0x1], 0 }
  0x12   :  { %29 = vsyncpa [#allocation4], 0  ;;  %s4048_s21 = smov 0   ;;  %s4050_s22 = smov 0  }
  0x13   :  { %s4052_s23 = smov 0   ;;  %s4054_s24 = smov 0  }
  0x14 LB: > { %4777 = sst [smem:[#allocation19_spill]] %s3964_s23  ;;  %s4067_s25 = sadd.s32 4294967295, %s3968_s24   ;;  %s3968_s24 = sphi %s4054_s24, %s4797_s24   ;;  %s3964_s23 = sphi %s4052_s23, %s4799_s23   ;;  %s3960_s22 = sphi %s4050_s22, %s4801_s22   ;;  %s3956_s21 = sphi %s4048_s21, %s4800_s21  }
  0x15   : > { %s4070_s26 = sadd.s32 1, %s3968_s24   ;;  %s84_s28 = sadd.s32 1, %s3964_s23 }
  0x16   : > { %4778 = sst [smem:[#allocation20_spill]] %s4070_s26  ;;  %s81_s27 = ssub.s32 %s3968_s24, %s4070_s26 }
  0x17   : > { %p82_p0 = scmp.eq.s32.totalorder %s81_s27, 0  ;;  %p91_p1 = scmp.ne.s32.totalorder %s3964_s23, %s3960_s22 }
  0x18   : > { %p92_p2 = scmp.eq.s32.totalorder %s3968_s24, 0  ;;  %p97_p3 = scmp.ne.s32.totalorder %s3960_s22, %s3956_s21 }
  0x19   : > { %s4080_s29 = scalar_select %p82_p0, %s3964_s23, %s84_s28  }
  0x1a   : > { %p93_p4 = por %p92_p2, %p91_p1  ;;  %p98_p5 = scmp.eq.s32.totalorder %s4067_s25, 0 }
  0x1b   : > { %4779 = sst [smem:[#allocation21_spill]] %s4080_s29  ;;  %p3546_p6 = scmp.lt.s32.totalorder %s3968_s24, 2 }
  0x1c   : > { %p4084_p7 = por %p98_p5, %p97_p3  ;;  %s4089_s13 = sand.u32 1, %s3964_s23  }
  0x1d   : > { %p4091_p8 = pnand %p3546_p6, %p93_p4  ;;  %s4761_s15 = sand.u32 1, %s3968_s24  }
  0x1e   : > { %s4762_s16 = sshll.u32 %s4089_s13, 6  ;;  %s3404_s17 = sshll.u32 %s3968_s24, 6 }
  0x1f   : > { %s412_s18 = scalar_lea.vmem [#allocation5], %s4762_s16  ;;  %s4782_s4 = sld [smem:[#allocation25_spill]] }
  0x20   : > { %s420_s19 = sshll.u32 %s412_s18, 4  ;;  %s4105_s29 = scalar_lea.sflag [#allocation6], %s4761_s15  ;;  %s421_s19 = int_to_ptr.vmem [resolvable:$true] %s420_s19 }
  0x21   : > { %p4109_p10 = pneg %p4091_p8 }
  0x25   : > { %s417_s27 = scalar_lea.hbm %s4782_s4, %s3404_s17  ;;  %s3717_s21 = scalar_lea.hbm %s4782_s4, 128 }
  0x26   : > { %s418_s28 = sshll.u32 %s417_s27, 4  ;;  %s419_s28 = int_to_ptr.hbm [resolvable:$true] %s418_s28 }
  0x27   : > { %s3710_s23 = sshra.s32 %s419_s28, 4  ;;  %s3711_s23 = int_to_ptr.hbm [resolvable:$true] %s3710_s23 }
  0x28   : > { %s3712_s26 = scalar_lea.hbm %s3711_s23, 64  ;;  %p3718_p13 = scmp.lt.s32.totalorder %s3711_s23, %s4782_s4 }
  0x29   : > { %p3713_p9 = scmp.ne.s32.totalorder %s3711_s23, %s3712_s26  ;;  %p3719_p0 = scmp.lt.s32.totalorder %s3717_s21, %s3712_s26 }
  0x2b   : > { %p3715_p11 = pnand %p4109_p10, %p3713_p9  ;;  %p3720_p1 = por %p3719_p0, %p3718_p13 }
  0x2d   : > { %p3716_p12 = pneg %p3715_p11 }
  0x2f   : > { %p3721_p2 = pnand %p3720_p1, %p3716_p12 }
  0x31   : > { %3724 = shalt.err (!%p3721_p2)
}
  0x32   : > { %s4763_s16 = smov 64   ;;  %s4765_s11 = smov 4  }
  0x33   : > { %3533 = dma.hbm_to_vmem [thread:$0]  (!%p4091_p8), %s419_s28, 1024, %s421_s19, %s4105_s29, %s4763_s16, %s4763_s16, %s4765_s11  }
  0x34   : > { %p2968_p3 = scmp.ge.s32.totalorder %s3968_s24, 1  ;;  %p524_p4 = scmp.lt.s32.totalorder %s3968_s24, 3 }
  0x35   : > { %s4785_s6 = sld [smem:[#allocation26_spill]]  ;;  %s4786_s21 = sshll.u32 %s4089_s13, 6 }
  0x36   : > { %p4129_p5 = pnand %p2968_p3, %p524_p4  ;;  %s456_s27 = scalar_lea.vmem [#allocation8], %s4786_s21 }
  0x37   : > { %s464_s4 = sshll.u32 %s456_s27, 4  ;;  %s4787_s10 = sand.u32 1, %s3968_s24   ;;  %s465_s4 = int_to_ptr.vmem [resolvable:$true] %s464_s4 }
  0x38   : > { %s4140_s1 = scalar_lea.sflag [#allocation9], %s4787_s10 }
  0x3b   : > { %s461_s18 = scalar_lea.hbm %s4785_s6, %s3404_s17  ;;  %s3747_s17 = scalar_lea.hbm %s4785_s6, 128 }
  0x3c   : > { %s462_s20 = sshll.u32 %s461_s18, 4  ;;  %s463_s20 = int_to_ptr.hbm [resolvable:$true] %s462_s20 }
  0x3d   : > { %s3740_s19 = sshra.s32 %s463_s20, 4  ;;  %s3741_s19 = int_to_ptr.hbm [resolvable:$true] %s3740_s19 }
  0x3e   : > { %s3742_s28 = scalar_lea.hbm %s3741_s19, 64  ;;  %p3748_p12 = scmp.lt.s32.totalorder %s3741_s19, %s4785_s6 }
  0x3f   : > { %p3743_p6 = scmp.ne.s32.totalorder %s3741_s19, %s3742_s28  ;;  %p3749_p13 = scmp.lt.s32.totalorder %s3747_s17, %s3742_s28 }
  0x41   : > { %p3745_p9 = pnand %p3743_p6, %p4109_p10  ;;  %p3750_p0 = por %p3749_p13, %p3748_p12 }
  0x43   : > { %p3746_p11 = pneg %p3745_p9 }
  0x45   : > { %p3751_p1 = pnand %p3750_p0, %p3746_p11 }
  0x47   : > { %3754 = shalt.err (!%p3751_p1)
}
  0x48   : > { %s4788_s10 = smov 4   ;;  %s4789_s18 = smov 64  }
  0x49   : > { %3539 = dma.hbm_to_vmem [thread:$0]  (!%p4091_p8), %s463_s20, 1024, %s465_s4, %s4140_s1, %s4789_s18, %s4789_s18, %s4788_s10  }
  0x4a   : > { %s3507_s11 = smul.u32 192, %s4089_s13  ;;  %s4790_s2 = sld [smem:[#allocation24_spill]] }
  0x4b   : > { %s3508_s16 = smul.u32 192, %s3968_s24  ;;  %s4162_s15 = sshll.u32 %s4089_s13, 7 }
  0x4c   : > { %s382_s28 = scalar_lea.vmem [#allocation2], %s3507_s11  ;;  %s379_s6 = scalar_lea.sflag [#allocation3], %s4089_s13 }
  0x4d   : > { %s390_s17 = sshll.u32 %s382_s28, 4  ;;  %s391_s17 = int_to_ptr.vmem [resolvable:$true] %s390_s17 }
  0x50   : > { %s387_s19 = scalar_lea.hbm %s4790_s2, %s3508_s16  ;;  %s3777_s21 = scalar_lea.hbm %s4790_s2, 384 }
  0x51   : > { %s388_s26 = sshll.u32 %s387_s19, 4  ;;  %s389_s26 = int_to_ptr.hbm [resolvable:$true] %s388_s26 }
  0x52   : > { %s3770_s0 = sshra.s32 %s389_s26, 4  ;;  %s3771_s0 = int_to_ptr.hbm [resolvable:$true] %s3770_s0 }
  0x53   : > { %s3772_s9 = scalar_lea.hbm %s3771_s0, 192  ;;  %p3778_p6 = scmp.lt.s32.totalorder %s3771_s0, %s4790_s2 }
  0x54   : > { %p3773_p2 = scmp.ne.s32.totalorder %s3771_s0, %s3772_s9  ;;  %p3779_p9 = scmp.lt.s32.totalorder %s3777_s21, %s3772_s9 }
  0x56   : > { %p3775_p3 = pnand %p3773_p2, %p4109_p10  ;;  %p3780_p11 = por %p3779_p9, %p3778_p6 }
  0x58   : > { %p3776_p4 = pneg %p3775_p3 }
  0x5a   : > { %p3781_p12 = pnand %p3780_p11, %p3776_p4 }
  0x5c   : > { %3784 = shalt.err (!%p3781_p12)
}
  0x5d   : > { %s3972_s27 = smov 192   ;;  %s3973_s19 = smov 12  }
  0x5e   : > { %3530 = dma.hbm_to_vmem [thread:$0]  (!%p4091_p8), %s389_s26, 3072, %s391_s17, %s379_s6, %s3972_s27, %s3972_s27, %s3973_s19  }
  0x5f   : > { %s4176_s28 = sshll.u32 %s3968_s24, 7  ;;  %s434_s0 = scalar_lea.vmem [#allocation7], %s4162_s15 }
  0x60   : > { %s439_s16 = scalar_lea.hbm %s4750_s5, %s4176_s28  ;;  %s442_s9 = sshll.u32 %s434_s0, 4  ;;  %s443_s9 = int_to_ptr.vmem [resolvable:$true] %s442_s9 }
  0x61   : > { %s440_s21 = sshll.u32 %s439_s16, 4  ;;  %s3807_s17 = scalar_lea.hbm %s4750_s5, 256  ;;  %s441_s21 = int_to_ptr.hbm [resolvable:$true] %s440_s21 }
  0x62   : > { %s3800_s11 = sshra.s32 %s441_s21, 4  ;;  %s3801_s11 = int_to_ptr.hbm [resolvable:$true] %s3800_s11 }
  0x63   : > { %s3802_s2 = scalar_lea.hbm %s3801_s11, 128  ;;  %p3808_p2 = scmp.lt.s32.totalorder %s3801_s11, %s4750_s5 }
  0x64   : > { %p3803_p13 = scmp.ne.s32.totalorder %s3801_s11, %s3802_s2  ;;  %p3809_p3 = scmp.lt.s32.totalorder %s3807_s17, %s3802_s2 }
  0x66   : > { %p3805_p0 = pnand %p3803_p13, %p4109_p10  ;;  %p3810_p4 = por %p3809_p3, %p3808_p2 }
  0x68   : > { %p3806_p1 = pneg %p3805_p0 }
  0x6a   : > { %p3811_p6 = pnand %p3810_p4, %p3806_p1 }
  0x6c   : > { %3814 = shalt.err (!%p3811_p6)
}
  0x6d   : > { %s3974_s19 = smov 128   ;;  %s3975_s4 = smov 8  }
  0x6e   : > { %3536 = dma.hbm_to_vmem [thread:$0]  (!%p4091_p8), %s441_s21, 2048, %s443_s9, %s4105_s29, %s3974_s19, %s3974_s19, %s3975_s4  }
  0x6f   : > { %s483_s0 = scalar_lea.hbm %s4752_s7, %s4176_s28  ;;  %s478_s6 = scalar_lea.vmem [#allocation10], %s4162_s15 }
  0x70   : > { %s486_s24 = sshll.u32 %s478_s6, 4  ;;  %s484_s11 = sshll.u32 %s483_s0, 4  ;;  %s487_s24 = int_to_ptr.vmem [resolvable:$true] %s486_s24  ;;  %s485_s11 = int_to_ptr.hbm [resolvable:$true] %s484_s11 }
  0x71   : > { %s3830_s2 = sshra.s32 %s485_s11, 4  ;;  %s3837_s29 = scalar_lea.hbm %s4752_s7, 256  ;;  %s3831_s2 = int_to_ptr.hbm [resolvable:$true] %s3830_s2 }
  0x72   : > { %s3832_s17 = scalar_lea.hbm %s3831_s2, 128  ;;  %p3838_p13 = scmp.lt.s32.totalorder %s3831_s2, %s4752_s7 }
  0x73   : > { %p3833_p9 = scmp.ne.s32.totalorder %s3831_s2, %s3832_s17  ;;  %p3839_p0 = scmp.lt.s32.totalorder %s3837_s29, %s3832_s17 }
  0x75   : > { %p3835_p11 = pnand %p3833_p9, %p4109_p10  ;;  %p3840_p1 = por %p3839_p0, %p3838_p13 }
  0x77   : > { %p3836_p12 = pneg %p3835_p11 }
  0x79   : > { %p3841_p2 = pnand %p3840_p1, %p3836_p12 }
  0x7b   : > { %3844 = shalt.err (!%p3841_p2)
}
  0x7c   : > { %3542 = dma.hbm_to_vmem [thread:$0]  (!%p4091_p8), %s485_s11, 2048, %s487_s24, %s4140_s1, %s3974_s19, %s3974_s19, %s3975_s4  }
  0x7d   : > { %s505_s0 = scalar_lea.hbm %s4753_s8, %s4176_s28  ;;  %s500_s26 = scalar_lea.vmem [#allocation11], %s4162_s15 }
  0x7e   : > { %s506_s6 = sshll.u32 %s505_s0, 4  ;;  %s508_s27 = sshll.u32 %s500_s26, 4  ;;  %s507_s6 = int_to_ptr.hbm [resolvable:$true] %s506_s6  ;;  %s509_s27 = int_to_ptr.vmem [resolvable:$true] %s508_s27 }
  0x7f   : > { %s497_s2 = scalar_lea.sflag [#allocation12], %s4089_s13  ;;  %s3860_s17 = sshra.s32 %s507_s6, 4  ;;  %s3861_s17 = int_to_ptr.hbm [resolvable:$true] %s3860_s17 }
  0x80   : > { %s3862_s29 = scalar_lea.hbm %s3861_s17, 128  ;;  %s3867_s1 = scalar_lea.hbm %s4753_s8, 256 }
  0x81   : > { %p3863_p3 = scmp.ne.s32.totalorder %s3861_s17, %s3862_s29  ;;  %p3868_p9 = scmp.lt.s32.totalorder %s3861_s17, %s4753_s8 }
  0x82   : > { %p3869_p11 = scmp.lt.s32.totalorder %s3867_s1, %s3862_s29 }
  0x83   : > { %p3865_p4 = pnand %p3863_p3, %p4109_p10 }
  0x84   : > { %p3870_p12 = por %p3869_p11, %p3868_p9 }
  0x85   : > { %p3866_p6 = pneg %p3865_p4 }
  0x87   : > { %p3871_p13 = pnand %p3870_p12, %p3866_p6 }
  0x89   : > { %3874 = shalt.err (!%p3871_p13)
}
  0x8a   : > { %3545 = dma.hbm_to_vmem [thread:$0]  (!%p4091_p8), %s507_s6, 2048, %s509_s27, %s497_s2, %s4789_s18, %s4789_s18, %s4788_s10  }
  0x8b   : > { %528 = sbr.rel (%p4129_p5) target bundleno = 3744 (0xea0), region = 68  ;;  %s530_s12 = sand.u32 (!%p4129_p5), 1, %s3960_s22  }
  0x8c   : > { %s3509_s13 = smul.u32 (!%p4129_p5), 192, %s530_s12  ;;  %s531_s15 = scalar_lea.sflag (!%p4129_p5), [#allocation3], %s530_s12 }
  0x8e   : > { %s4232_s28 = scalar_lea.vmem (!%p4129_p5), [#allocation2], %s3509_s13 }
  0x90   : > { %3935 = dma.done.wait (%p4084_p7), %s531_s15, 3072  }
  0x91   : > { %3937 = vsyncadd (%p4084_p7), %s531_s15, 4294964224  ;;  %s540_s14 = sand.u32 1, %s4067_s25   ;;  %s2969_s24 = sshll.u32 %s530_s12, 6 }
  0x92   : > { %s541_s10 = scalar_lea.sflag [#allocation6], %s540_s14  ;;  %s4239_s18 = scalar_lea.vmem [#allocation5], %s2969_s24 }
  0x93   : > { %3939 = dma.done.wait (%p4084_p7), %s541_s10, 3072  }
  0x94   : > { %3941 = vsyncadd (%p4084_p7), %s541_s10, 4294964224  ;;  %s2970_s23 = sshll.u32 %s530_s12, 7  ;;  %s561_s20 = scalar_lea.sflag [#allocation9], %s540_s14 }
  0x95   : > { %s4245_s11 = scalar_lea.vmem [#allocation7], %s2970_s23  ;;  %s4247_s16 = scalar_lea.vmem [#allocation8], %s2969_s24 }
  0x96   : > { %3943 = dma.done.wait (%p4084_p7), %s561_s20, 3072  }
  0x97   : > { %3945 = vsyncadd (%p4084_p7), %s561_s20, 4294964224  ;;  %s4253_s0 = scalar_lea.vmem [#allocation10], %s2970_s23  ;;  %s581_s6 = scalar_lea.sflag [#allocation12], %s530_s12 }
  0x98   : > { %s4255_s26 = scalar_lea.vmem [#allocation11], %s2970_s23 }
  0x99   : > { %3947 = dma.done.wait (%p4084_p7), %s581_s6, 2048  }
  0x9a   : > { %3949 = vsyncadd (%p4084_p7), %s581_s6, 4294965248  ;;  %p656_p8 = scmp.lt.s32.totalorder %s4067_s25, 1  ;;  %s4791_s4 = sld [smem:[#allocation27_spill]] }
  0x9b   : > { %p2977_p10 = scmp.ne.s32.totalorder %s4067_s25, 0 }
  0x9c   : > { %s657_s27 = scalar_select %p656_p8, %s4067_s25, 1 }
  0x9d   : > { %670 = sbr.rel (%p2977_p10) target bundleno = 166 (0xa6), region = 96  ;;  %s4792_s15 = sld [smem:[#allocation22_spill]] (!%p2977_p10) }
  0x9e   : > { %s3409_s2 = sshll.u32 %s657_s27, 6  ;;  %s3510_s17 = smul.u32 48, %s657_s27 }
  0x9f   : > { %s4266_s21 = scalar_lea.vmem %s4748_s3, %s3409_s2 }
  0xa0   : > { %s4271_s12 = scalar_lea.vmem %s4791_s4, %s3510_s17 }
  0xa3   : > { %v671_v0 = vld [vmem:[%s4792_s15] sm:$0xff]  ;;  %v672_v1 = vld [vmem:[%s4792_s15 + $0x8] sm:$0xff] }
  0xa4   : > { %673 = vst [vmem:[#allocation13] sm:$0xff] %v671_v0 }
  0xa5   : > { %674 = vst [vmem:[#allocation13 + $0x8] sm:$0xff] %v672_v1 }
  0xa6 PF: > { %v3064_v2 = vld [vmem:[%s4232_s28 + $0xa8] sm:$0xf]  ;;  %v3433_v3 = vld [vmem:[%s4232_s28 + $0xb0] sm:$0xf0]  ;;  %v3432_v4 = vld [vmem:[%s4232_s28 + $0xac] sm:$0xf] }
  0xa7   : > { %v3065_v5 = vor.u32 %v3433_v3, %v3064_v2  ;;  %v3066_v6 = vld [vmem:[%s4232_s28 + $0xb4] sm:$0xf0]  ;;  %v3052_v7 = vld [vmem:[%s4232_s28 + $0x90] sm:$0xf]  ;;  %v3430_v8 = vld [vmem:[%s4232_s28 + $0x98] sm:$0xf0] }
  0xa8   : > { %v3069_v9 = vor.u32 %v3432_v4, %v3066_v6  ;;  %v3429_v10 = vld [vmem:[%s4232_s28 + $0x94] sm:$0xf]  ;;  %v3054_v11 = vld [vmem:[%s4232_s28 + $0x9c] sm:$0xf0]  ;;  %v3053_v12 = vor.u32 %v3430_v8, %v3052_v7  ;;  %v3040_v14 = vld [vmem:[%s4232_s28 + $0x78] sm:$0xf] }
  0xa9   : > { %847 = vmatpush.bf16.msra.mxu0 %v3065_v5  ;;  %v3057_v13 = vor.u32 %v3429_v10, %v3054_v11  ;;  %v3427_v15 = vld [vmem:[%s4232_s28 + $0x80] sm:$0xf0]  ;;  %v3426_v16 = vld [vmem:[%s4232_s28 + $0x7c] sm:$0xf]  ;;  %v3042_v17 = vld [vmem:[%s4232_s28 + $0x84] sm:$0xf0] }
  0xaa   : > { %861 = vmatpush.bf16.msra.mxu1 %v3069_v9  ;;  %v3041_v18 = vor.u32 %v3427_v15, %v3040_v14  ;;  %v3045_v19 = vor.u32 %v3426_v16, %v3042_v17  ;;  %v3028_v20 = vld [vmem:[%s4232_s28 + $0x60] sm:$0xf]  ;;  %v3424_v21 = vld [vmem:[%s4232_s28 + $0x68] sm:$0xf0]  ;;  %v3423_v22 = vld [vmem:[%s4232_s28 + $0x64] sm:$0xf] }
  0xab   : > { %v3030_v23 = vld [vmem:[%s4232_s28 + $0x6c] sm:$0xf0]  ;;  %v3029_v24 = vor.u32 %v3424_v21, %v3028_v20  ;;  %v3016_v26 = vld [vmem:[%s4232_s28 + $0x48] sm:$0xf]  ;;  %v3421_v27 = vld [vmem:[%s4232_s28 + $0x50] sm:$0xf0] }
  0xac   : > { %v3033_v25 = vor.u32 %v3423_v22, %v3030_v23  ;;  %v3420_v28 = vld [vmem:[%s4232_s28 + $0x4c] sm:$0xf]  ;;  %v3018_v29 = vld [vmem:[%s4232_s28 + $0x54] sm:$0xf0]  ;;  %v3017_v30 = vor.u32 %v3421_v27, %v3016_v26  ;;  %v3004_v32 = vld [vmem:[%s4232_s28 + $0x30] sm:$0xf] }
  0xad   : > { %848 = vmatpush.bf16.msra.mxu0 %v3053_v12  ;;  %v3021_v31 = vor.u32 %v3420_v28, %v3018_v29  ;;  %v3418_v33 = vld [vmem:[%s4232_s28 + $0x38] sm:$0xf0]  ;;  %v3417_v34 = vld [vmem:[%s4232_s28 + $0x34] sm:$0xf]  ;;  %v3006_v35 = vld [vmem:[%s4232_s28 + $0x3c] sm:$0xf0] }
  0xae   : > { %862 = vmatpush.bf16.msra.mxu1 %v3057_v13  ;;  %v3005_v36 = vor.u32 %v3418_v33, %v3004_v32  ;;  %v3009_v37 = vor.u32 %v3417_v34, %v3006_v35  ;;  %v2992_v38 = vld [vmem:[%s4232_s28 + $0x18] sm:$0xf]  ;;  %v3415_v39 = vld [vmem:[%s4232_s28 + $0x20] sm:$0xf0]  ;;  %v3414_v40 = vld [vmem:[%s4232_s28 + $0x1c] sm:$0xf] }
  0xaf   : > { %v2994_v41 = vld [vmem:[%s4232_s28 + $0x24] sm:$0xf0]  ;;  %v2993_v42 = vor.u32 %v3415_v39, %v2992_v38  ;;  %v2980_v44 = vld [vmem:[%s4232_s28] sm:$0xf]  ;;  %v3412_v45 = vld [vmem:[%s4232_s28 + $0x8] sm:$0xf0] }
  0xb0   : > { %v2997_v43 = vor.u32 %v3414_v40, %v2994_v41  ;;  %v3411_v46 = vld [vmem:[%s4232_s28 + $0x4] sm:$0xf]  ;;  %v2982_v47 = vld [vmem:[%s4232_s28 + $0xc] sm:$0xf0]  ;;  %v2981_v48 = vor.u32 %v3412_v45, %v2980_v44  ;;  %v4314_v50 = vld [vmem:[#allocation13 + $0x8] sm:$0xff]  ;;  %vm897_vm0 = vcmask 261120  }
  0xb1   : > { %849 = vmatpush.bf16.msra.mxu0 %v3041_v18  ;;  %v4312_v49 = vld [vmem:[#allocation13] sm:$0xff]  ;;  %v2985_v51 = vor.u32 %v3411_v46, %v2982_v47  ;;  %v680_v54 = vld [vmem:[%s4271_s12 + $0x8] sm:$0xff]  ;;  %s3976_s10 = smov 64   ;;  %s3977_s23 = smov 96   ;;  %v3072_v7 = vld [vmem:[%s4232_s28 + $0xb0] sm:$0xf] }
  0xb2   : > { %863 = vmatpush.bf16.msra.mxu1 %v3045_v19  ;;  %v4318_v52 = vpack.c.bf16 %v4314_v50, %v4312_v49  ;;  %v4323_v53 = vld [vmem:[%s4271_s12] sm:$0xff]  ;;  %v717_v56 = vperm.slane %v680_v54, 0  ;;  %v3434_v8 = vld [vmem:[%s4232_s28 + $0xb8] sm:$0xf0]  ;;  %v3060_v11 = vld [vmem:[%s4232_s28 + $0x98] sm:$0xf] }
  0xb3   : > { %v716_v55 = vperm.slane %v4323_v53, 0  ;;  %v3073_v10 = vor.u32 %v3434_v8, %v3072_v7  ;;  %v3431_v12 = vld [vmem:[%s4232_s28 + $0xa0] sm:$0xf0]  ;;  %v3048_v18 = vld [vmem:[%s4232_s28 + $0x80] sm:$0xf]  ;;  %s3978_s20 = smov 32  }
  0xb4   : > { %v3061_v15 = vor.u32 %v3431_v12, %v3060_v11  ;;  %v3428_v19 = vld [vmem:[%s4232_s28 + $0x88] sm:$0xf0]  ;;  %v3024_v28 = vld [vmem:[%s4232_s28 + $0x50] sm:$0xf]  ;;  %v3422_v29 = vld [vmem:[%s4232_s28 + $0x58] sm:$0xf0] }
  0xb5   : > { %850 = vmatpush.bf16.msra.mxu0 %v3029_v24  ;;  %875 = vmatpush.bf16.msra.mxu2 %v3073_v10  ;;  %v3049_v23 = vor.u32 %v3428_v19, %v3048_v18  ;;  %v3036_v24 = vld [vmem:[%s4232_s28 + $0x68] sm:$0xf]  ;;  %v3012_v32 = vld [vmem:[%s4232_s28 + $0x38] sm:$0xf]  ;;  %v3419_v33 = vld [vmem:[%s4232_s28 + $0x40] sm:$0xf0] }
  0xb6   : > { %864 = vmatpush.bf16.msra.mxu1 %v3033_v25  ;;  %v3425_v25 = vld [vmem:[%s4232_s28 + $0x70] sm:$0xf0]  ;;  %v3013_v34 = vor.u32 %v3419_v33, %v3012_v32  ;;  %v3000_v35 = vld [vmem:[%s4232_s28 + $0x20] sm:$0xf]  ;;  %v2988_v38 = vld [vmem:[%s4232_s28 + $0x8] sm:$0xf] }
  0xb7   : > { %v3037_v27 = vor.u32 %v3425_v25, %v3036_v24  ;;  %v3413_v39 = vld [vmem:[%s4232_s28 + $0x10] sm:$0xf0]  ;;  %vm936_vm1 = vcmask 64512   ;;  %vm964_vm2 = vcmask 1043456   ;;  %vm1380_vm3 = vcmask 523264   ;;  %s4793_s27 = sld [smem:[#allocation23_spill]] }
  0xb8   : > { %v2989_v40 = vor.u32 %v3413_v39, %v2988_v38  ;;  %vm1383_vm4 = vcmask 785408   ;;  %p3398_p7 = scmp.eq.s32.totalorder %s4067_s25, 1 }
  0xb9   : > { %851 = vmatpush.bf16.msra.mxu0 %v3017_v30  ;;  %876 = vmatpush.bf16.msra.mxu2 %v3061_v15 }
  0xba   : > { %865 = vmatpush.bf16.msra.mxu1 %v3021_v31  ;;  %v3025_v31 = vor.u32 %v3422_v29, %v3024_v28 }
  0xbd   : > { %852 = vmatpush.bf16.msra.mxu0 %v3005_v36  ;;  %877 = vmatpush.bf16.msra.mxu2 %v3049_v23  ;;  %v3416_v36 = vld [vmem:[%s4232_s28 + $0x28] sm:$0xf0] }
  0xbe   : > { %866 = vmatpush.bf16.msra.mxu1 %v3009_v37  ;;  %v3001_v37 = vor.u32 %v3416_v36, %v3000_v35 }
  0xc1   : > { %853 = vmatpush.bf16.msra.mxu0 %v2993_v42  ;;  %878 = vmatpush.bf16.msra.mxu2 %v3037_v27 }
  0xc2   : > { %867 = vmatpush.bf16.msra.mxu1 %v2997_v43 }
  0xc5   : > { %854 = vmatpush.bf16.msra.mxu0 %v2981_v48  ;;  %879 = vmatpush.bf16.msra.mxu2 %v3025_v31 }
  0xc6   : > { %868 = vmatpush.bf16.msra.mxu1 %v2985_v51 }
  0xc8   : > { %855 = vmatmul.bf16.vlgmr.msra.gmra.mxu0 %v4318_v52 }
  0xc9   : > { %869 = vmatmul.bf16.vlgmr.msra.gmra.mxu1 %v4318_v52  ;;  %880 = vmatpush.bf16.msra.mxu2 %v3013_v34 }
  0xcd   : > { %881 = vmatpush.bf16.msra.mxu2 %v3001_v37 }
  0xd1   : > { %882 = vmatpush.bf16.msra.mxu2 %v2989_v40 }
  0xd4   : > { %883 = vmatmul.bf16.vlgmr.msra.gmra.mxu2 %v4318_v52 }
 0x145   : > { %v856_v57 = vpop.f32.mrf.mxu0 }
 0x146   : > { %v857_v58 = vadd.f32 %v856_v57, %v716_v55  ;;  %v870_v59 = vpop.f32.mrf.mxu1 }
 0x147   : > { %v871_v60 = vadd.f32 %v870_v59, %v717_v56 }
 0x148   : > { %v889_v61 = vmul.f32 0.17677669, %v857_v58 }
 0x149   : > { %v893_v62 = vpack.c.bf16 %v871_v60, %v871_v60 }
 0x14a   : > { %v891_v1 = vpack.c.bf16 %v889_v61, %v889_v61 }
 0x14b   : > { %v1006_v63 = vunpack.c.l.b16 %v893_v62  ;;  %v902_v0 = vsel %vm897_vm0, %v893_v62, 0 }
 0x14c   : > { %911 = vmatpush.bf16.xpose.msra.mxu3 %v902_v0  ;;  %v1001_v9 = vunpack.c.l.b16 %v891_v1 }
 0x14d   : > { %v1007_v2 = vpack.c.b16 %v1006_v63, %v1006_v63  ;;  %v858_v3 = vpop.f32.mrf.mxu0 }
 0x14e   : > { %v859_v4 = vadd.f32 %v858_v3, %v716_v55  ;;  %v872_v5 = vpop.f32.mrf.mxu1  ;;  %v1002_v20 = vpack.c.b16 %v1001_v9, %v1001_v9 }
 0x14f   : > { %v873_v6 = vadd.f32 %v872_v5, %v717_v56  ;;  %1132 = vrot.lane.b32.xlu2 %v1007_v2, %s3976_s10  ;;  %1008 = vrot.lane.b32.xlu0 %v1007_v2, %s3977_s23 }
 0x150   : > { %v890_v13 = vmul.f32 0.17677669, %v859_v4  ;;  %v681_v4 = vld [vmem:[%s4271_s12 + $0x10] sm:$0xff] }
 0x151   : > { %v894_v14 = vpack.c.bf16 %v873_v6, %v873_v6  ;;  %v718_v5 = vperm.slane %v681_v4, 0 }
 0x152   : > { %v892_v21 = vpack.c.bf16 %v890_v13, %v890_v13 }
 0x153   : > { %v1035_v16 = vunpack.c.l.b16 %v894_v14  ;;  %3074 = vmatmul.msk.bf16.vlgmr.msra.gmra.mxu3 %vm897_vm0, %v891_v1  ;;  %v921_v17 = vsel %vm897_vm0, %v894_v14, 0 }
 0x154   : > { %930 = vmatpush.bf16.xpose.msrb.mxu3 %v921_v17  ;;  %v1030_v26 = vunpack.c.l.b16 %v892_v21 }
 0x155   : > { %v1036_v22 = vpack.c.b16 %v1035_v16, %v1035_v16 }
 0x156   : > { %v1031_v30 = vpack.c.b16 %v1030_v26, %v1030_v26 }
 0x157   : > { %1037 = vrot.lane.b32.xlu1 %v1036_v22, %s3977_s23  ;;  %1155 = vrot.lane.b32.xlu2 %v1036_v22, %s3976_s10  ;;  %v884_v6 = vpop.f32.mrf.mxu2 }
 0x158   : > { %1003 = vrot.lane.b32.xlu0 %v1002_v20, %s3977_s23  ;;  %v885_v7 = vadd.f32 %v884_v6, %v718_v5 }
 0x15a   : > { %v895_v8 = vpack.c.bf16 %v885_v7, %v885_v7 }
 0x15c   : > { %v966_v9 = vsel %vm964_vm2, %v895_v8, 0  ;;  %v1083_v10 = vunpack.c.l.b16 %v895_v8 }
 0x15d   : > { %975 = vmatpush.bf16.msra.mxu3 %v966_v9 }
 0x15e   : > { %v4376_v11 = vpack.c.b16 %v1083_v10, %v1083_v10 }
 0x15f   : > { %1244 = vrot.lane.b32.xlu2 %v1007_v2, %s3978_s20  ;;  %1032 = vrot.lane.b32.xlu1 %v1031_v30, %s3977_s23  ;;  %v886_v12 = vpop.f32.mrf.mxu2 }
 0x160   : > { %1130 = vrot.lane.b32.xlu0 %v1002_v20, %s3976_s10  ;;  %v887_v13 = vadd.f32 %v886_v12, %v718_v5 }
 0x162   : > { %v896_v14 = vpack.c.bf16 %v887_v13, %v887_v13 }
 0x163   : > { %3075 = vmatmul.msk.bf16.vlgmr.msrb.gmra.mxu3 %vm897_vm0, %v892_v21 }
 0x164   : > { %v985_v15 = vsel %vm964_vm2, %v896_v14, 0  ;;  %v1107_v35 = vunpack.c.l.b16 %v896_v14 }
 0x165   : > { %994 = vmatpush.bf16.msrb.mxu0 %v985_v15 }
 0x166   : > { %v4386_v38 = vpack.c.b16 %v1107_v35, %v1107_v35 }
 0x167   : > { %1265 = vrot.lane.b32.xlu2 %v1031_v30, %s3978_s20  ;;  %1153 = vrot.lane.b32.xlu1 %v1031_v30, %s3976_s10 }
 0x168   : > { %1267 = vrot.lane.b32.xlu0 %v1036_v22, %s3978_s20 }
 0x16f   : > { %1242 = vrot.lane.b32.xlu1 %v1002_v20, %s3978_s20 }
 0x1a9   : > { %v1133_v41 = vpop.permute.xlu2 %1132 }
 0x1aa   : > { %v1138_v42 = vsel %vm897_vm0, %v1133_v41, 0 }
 0x1ab   : > { %1147 = vmatpush.bf16.xpose.msrb.mxu1 %v1138_v42 }
 0x1b1   : > { %v1156_v43 = vpop.permute.xlu2 %1155 }
 0x1b2   : > { %v1161_v52 = vsel %vm897_vm0, %v1156_v43, 0 }
 0x1b9   : > { %v1245_v44 = vpop.permute.xlu2 %1244 }
 0x1ba   : > { %v1250_v45 = vsel %vm897_vm0, %v1245_v44, 0 }
 0x1bb   : > { %1259 = vmatpush.bf16.xpose.msra.mxu1 %v1250_v45 }
 0x1c1   : > { %v1009_v46 = vpop.permute.xlu0 %1008  ;;  %v1266_v3 = vpop.permute.xlu2 %1265 }
 0x1c2   : > { %v1014_v47 = vsel %vm897_vm0, %v1009_v46, 0 }
 0x1c3   : > { %1023 = vmatpush.bf16.xpose.msrb.mxu2 %v1014_v47 }
 0x1c9   : > { %v1038_v48 = vpop.permute.xlu1 %1037 }
 0x1ca   : > { %v1043_v51 = vsel %vm897_vm0, %v1038_v48, 0  ;;  %v1004_v54 = vpop.permute.xlu0 %1003 }
 0x1cb   : > { %3078 = vmatmul.msk.bf16.vlgmr.msrb.gmra.mxu2 %vm897_vm0, %v1004_v54 }
 0x1cc   : > { %1052 = vmatpush.bf16.xpose.msra.mxu2 %v1043_v51 }
 0x1d1   : > { %v1033_v55 = vpop.permute.xlu1 %1032 }
 0x1d2   : > { %v1131_v56 = vpop.permute.xlu0 %1130 }
 0x1d3   : > { %3082 = vmatmul.msk.bf16.vlgmr.msrb.gmra.mxu1 %vm897_vm0, %v1131_v56 }
 0x1d4   : > { %1170 = vmatpush.bf16.xpose.msrb.mxu2 %v1161_v52 }
 0x1d6   : > { %v913_v57 = vpop.f32.mrf.mxu3 }
 0x1d7   : > { %v937_v58 = vsel %vm936_vm1, %v913_v57, -inf }
 0x1d8   : > { %938 = vmax.xlane.f32.xlu0 %v937_v58 }
 0x1d9   : > { %v1154_v59 = vpop.permute.xlu1 %1153 }
 0x1da   : > { %v1268_v60 = vpop.permute.xlu0 %1267 }
 0x1db   : > { %v1273_v61 = vsel %vm897_vm0, %v1268_v60, 0  ;;  %3079 = vmatmul.msk.bf16.vlgmr.msra.gmra.mxu2 %vm897_vm0, %v1033_v55 }
 0x1dc   : > { %1282 = vmatpush.bf16.xpose.msra.mxu2 %v1273_v61 }
 0x1de   : > { %v915_v62 = vpop.f32.mrf.mxu3 }
 0x1e1   : > { %v1243_v63 = vpop.permute.xlu1 %1242 }
 0x1e3   : > { %3086 = vmatmul.msk.bf16.vlgmr.msra.gmra.mxu1 %vm897_vm0, %v1243_v63 }
 0x1e6   : > { %v932_v0 = vpop.f32.mrf.mxu3 }
 0x1e7   : > { %v940_v1 = vsel %vm936_vm1, %v932_v0, -inf }
 0x1e8   : > { %941 = vmax.xlane.f32.xlu1 %v940_v1 }
 0x1eb   : > { %3083 = vmatmul.msk.bf16.vlgmr.msrb.gmra.mxu2 %vm897_vm0, %v1154_v59 }
 0x1ee   : > { %v934_v2 = vpop.f32.mrf.mxu3 }
 0x1fb   : > { %3087 = vmatmul.msk.bf16.vlgmr.msra.gmra.mxu2 %vm897_vm0, %v1266_v3 }
 0x201   : > { %1200 = vrot.lane.b32.xlu1 %v4376_v11, %s3976_s10 }
 0x24b   : > { %v939_v16 = vpop.xlane.xlu0 %938 }
 0x24c   : > { %v943_v17 = vsub.f32 %v913_v57, %v939_v16 }
 0x24e   : > { %v945_v18 = vmul.f32 1.442695, %v943_v17  ;;  %v1025_v19 = vpop.f32.mrf.mxu2 }
 0x24f   : > { %v1058_v20 = vsel %vm936_vm1, %v1025_v19, -inf }
 0x250   : > { %3624 = vpow2.f32 %v945_v18  ;;  %1059 = vmax.xlane.f32.xlu2 %v1058_v20  ;;  %v1149_v21 = vpop.f32.mrf.mxu1 }
 0x251   : > { %v1176_v22 = vsel %vm936_vm1, %v1149_v21, -inf }
 0x252   : > { %1177 = vmax.xlane.f32.xlu0 %v1176_v22 }
 0x256   : > { %v3625_v23 = vpop.eup %3624  ;;  %v1027_v24 = vpop.f32.mrf.mxu2 }
 0x257   : > { %v949_v25 = vsel %vm936_vm1, %v3625_v23, 0.0 }
 0x258   : > { %v1151_v26 = vpop.f32.mrf.mxu1 }
 0x25a   : > { %950 = vadd.xlane.f32.xlu0 %v949_v25 }
 0x25b   : > { %v942_v27 = vpop.xlane.xlu1 %941 }
 0x25c   : > { %v944_v28 = vsub.f32 %v932_v0, %v942_v27 }
 0x25e   : > { %v1054_v29 = vpop.f32.mrf.mxu2  ;;  %v947_v32 = vmul.f32 1.442695, %v944_v28 }
 0x25f   : > { %v1061_v30 = vsel %vm936_vm1, %v1054_v29, -inf }
 0x260   : > { %1062 = vmax.xlane.f32.xlu2 %v1061_v30  ;;  %v1261_v31 = vpop.f32.mrf.mxu1  ;;  %3626 = vpow2.f32 %v947_v32 }
 0x261   : > { %v1288_v34 = vsel %vm936_vm1, %v1261_v31, -inf }
 0x266   : > { %v1056_v33 = vpop.f32.mrf.mxu2  ;;  %v3627_v37 = vpop.eup %3626 }
 0x267   : > { %v952_v41 = vsel %vm936_vm1, %v3627_v37, 0.0 }
 0x268   : > { %1289 = vmax.xlane.f32.xlu2 %v1288_v34  ;;  %v1263_v36 = vpop.f32.mrf.mxu1 }
 0x26e   : > { %v1172_v39 = vpop.f32.mrf.mxu2  ;;  %1109 = vrot.lane.b32.xlu0 %v4386_v38, %s3977_s23 }
 0x26f   : > { %v1179_v40 = vsel %vm936_vm1, %v1172_v39, -inf }
 0x270   : > { %1180 = vmax.xlane.f32.xlu1 %v1179_v40  ;;  %953 = vadd.xlane.f32.xlu2 %v952_v41 }
 0x273   : > { %v1201_v2 = vpop.permute.xlu1 %1200 }
 0x276   : > { %v1174_v42 = vpop.f32.mrf.mxu2 }
 0x27e   : > { %v4392_v43 = vpop.f32.mrf.mxu2 }
 0x27f   : > { %v1291_v44 = vsel %vm936_vm1, %v4392_v43, -inf }
 0x280   : > { %1292 = vmax.xlane.f32.xlu1 %v1291_v44 }
 0x286   : > { %v1286_v45 = vpop.f32.mrf.mxu2 }
 0x288   : > { %1085 = vrot.lane.b32.xlu2 %v4376_v11, %s3977_s23 }
 0x2c3   : > { %v1060_v46 = vpop.xlane.xlu2 %1059 }
 0x2c4   : > { %v1064_v47 = vsub.f32 %v1025_v19, %v1060_v46 }
 0x2c5   : > { %v1178_v48 = vpop.xlane.xlu0 %1177 }
 0x2c6   : > { %v1066_v51 = vmul.f32 1.442695, %v1064_v47  ;;  %v1182_v54 = vsub.f32 %v1149_v21, %v1178_v48  ;;  %v1206_v21 = vsel %vm964_vm2, %v1201_v2, 0 }
 0x2c8   : > { %3628 = vpow2.f32 %v1066_v51  ;;  %v1184_v52 = vmul.f32 1.442695, %v1182_v54 }
 0x2ca   : > { %3630 = vpow2.f32 %v1184_v52 }
 0x2cd   : > { %v951_v55 = vpop.xlane.xlu0 %950 }
 0x2ce   : > { %v3629_v56 = vpop.eup %3628  ;;  %3632 = vrcp.f32 %v951_v55 }
 0x2cf   : > { %v1070_v57 = vsel %vm936_vm1, %v3629_v56, 0.0 }
 0x2d0   : > { %v4399_v58 = vpop.eup %3630  ;;  %1071 = vadd.xlane.f32.xlu0 %v1070_v57 }
 0x2d1   : > { %v1188_v59 = vsel %vm936_vm1, %v4399_v58, 0.0 }
 0x2d2   : > { %1189 = vadd.xlane.f32.xlu1 %v1188_v59 }
 0x2d3   : > { %v1063_v60 = vpop.xlane.xlu2 %1062 }
 0x2d4   : > { %v3633_v61 = vpop.eup %3632  ;;  %v1065_v62 = vsub.f32 %v1054_v29, %v1063_v60 }
 0x2d5   : > { %v957_v63 = vmul.f32 %v3633_v61, %v3625_v23 }
 0x2d6   : > { %v1068_v0 = vmul.f32 1.442695, %v1065_v62 }
 0x2d7   : > { %v959_v1 = vpack.c.bf16 %v957_v63, %v957_v63 }
 0x2d8   : > { %3634 = vpow2.f32 %v1068_v0 }
 0x2d9   : > { %3076 = vmatmul.msk.bf16.vlgmr.msra.gmra.mxu3 %vm936_vm1, %v959_v1 }
 0x2db   : > { %v1290_v3 = vpop.xlane.xlu2 %1289 }
 0x2dc   : > { %v1294_v4 = vsub.f32 %v1261_v31, %v1290_v3 }
 0x2de   : > { %v3635_v5 = vpop.eup %3634  ;;  %v1296_v6 = vmul.f32 1.442695, %v1294_v4 }
 0x2df   : > { %v1073_v7 = vsel %vm936_vm1, %v3635_v5, 0.0 }
 0x2e0   : > { %3636 = vpow2.f32 %v1296_v6  ;;  %v1110_v8 = vpop.permute.xlu0 %1109  ;;  %1074 = vadd.xlane.f32.xlu1 %v1073_v7 }
 0x2e1   : > { %v1115_v9 = vsel %vm964_vm2, %v1110_v8, 0 }
 0x2e2   : > { %1124 = vmatpush.bf16.msra.mxu0 %v1115_v9 }
 0x2e3   : > { %v954_v10 = vpop.xlane.xlu2 %953  ;;  %v1181_v12 = vpop.xlane.xlu1 %1180 }
 0x2e4   : > { %3638 = vrcp.f32 %v954_v10  ;;  %v1183_v13 = vsub.f32 %v1172_v39, %v1181_v12  ;;  %1221 = vrot.lane.b32.xlu0 %v4386_v38, %s3976_s10 }
 0x2e6   : > { %v3637_v14 = vpop.eup %3636  ;;  %v1186_v15 = vmul.f32 1.442695, %v1183_v13 }
 0x2e7   : > { %v1300_v16 = vsel %vm936_vm1, %v3637_v14, 0.0 }
 0x2e8   : > { %3640 = vpow2.f32 %v1186_v15  ;;  %1301 = vadd.xlane.f32.xlu2 %v1300_v16 }
 0x2ea   : > { %v3639_v17 = vpop.eup %3638 }
 0x2eb   : > { %v958_v18 = vmul.f32 %v3639_v17, %v3627_v37  ;;  %v1086_v19 = vpop.permute.xlu2 %1085 }
 0x2ec   : > { %v1091_v20 = vsel %vm964_vm2, %v1086_v19, 0  ;;  %v3441_v19 = vld [vmem:[%s4266_s21 + $0x30] sm:$0xff] }
 0x2ed   : > { %1100 = vmatpush.bf16.msrb.mxu3 %v1091_v20  ;;  %v960_v22 = vpack.c.bf16 %v958_v18, %v958_v18  ;;  %v3442_v18 = vld [vmem:[%s4266_s21 + $0x38] sm:$0xff]  ;;  %v3440_v20 = vld [vmem:[%s4266_s21 + $0x28] sm:$0xff] }
 0x2ee   : > { %v3641_v23 = vpop.eup %3640  ;;  %1452 = vmatpush.bf16.msrb.mxu1 %v3442_v18  ;;  %v3160_v18 = vld [vmem:[%s4245_s11] sm:$0xf] }
 0x2ef   : > { %3077 = vmatmul.msk.bf16.vlgmr.msrb.gmra.mxu0 %vm936_vm1, %v960_v22  ;;  %v1191_v24 = vsel %vm936_vm1, %v3641_v23, 0.0  ;;  %v3438_v22 = vld [vmem:[%s4266_s21 + $0x18] sm:$0xff] }
 0x2f0   : > { %1192 = vadd.xlane.f32.xlu1 %v1191_v24  ;;  %v3436_v24 = vld [vmem:[%s4266_s21 + $0x8] sm:$0xff] }
 0x2f1   : > { %1215 = vmatpush.bf16.msra.mxu3 %v1206_v21  ;;  %v3439_v21 = vld [vmem:[%s4266_s21 + $0x20] sm:$0xff] }
 0x2f2   : > { %1453 = vmatpush.bf16.msrb.mxu1 %v3441_v19  ;;  %v3452_v19 = vld [vmem:[%s4245_s11 + $0x4] sm:$0xf0] }
 0x2f3   : > { %v1293_v25 = vpop.xlane.xlu1 %1292 }
 0x2f4   : > { %v1295_v26 = vsub.f32 %v4392_v43, %v1293_v25  ;;  %v3435_v25 = vld [vmem:[%s4266_s21] sm:$0xff] }
 0x2f6   : > { %v1298_v27 = vmul.f32 1.442695, %v1295_v26  ;;  %1454 = vmatpush.bf16.msrb.mxu1 %v3440_v20 }
 0x2f8   : > { %3642 = vpow2.f32 %v1298_v27 }
 0x2fa   : > { %1455 = vmatpush.bf16.msrb.mxu1 %v3439_v21 }
 0x2fe   : > { %v3643_v28 = vpop.eup %3642  ;;  %1456 = vmatpush.bf16.msrb.mxu1 %v3438_v22  ;;  %v3161_v22 = vor.u32 %v3452_v19, %v3160_v18 }
 0x2ff   : > { %v1303_v29 = vsel %vm936_vm1, %v3643_v28, 0.0 }
 0x309   : > { %1312 = vrot.lane.b32.xlu1 %v4376_v11, %s3978_s20 }
 0x30e   : > { %1304 = vadd.xlane.f32.xlu0 %v1303_v29 }
 0x311   : > { %1333 = vrot.lane.b32.xlu1 %v4386_v38, %s3978_s20 }
 0x343   : > { %v1072_v30 = vpop.xlane.xlu0 %1071 }
 0x344   : > { %3644 = vrcp.f32 %v1072_v30 }
 0x345   : > { %v1190_v33 = vpop.xlane.xlu1 %1189 }
 0x346   : > { %3646 = vrcp.f32 %v1190_v33 }
 0x34a   : > { %v3645_v31 = vpop.eup %3644 }
 0x34b   : > { %v1078_v32 = vmul.f32 %v3645_v31, %v3629_v56 }
 0x34c   : > { %v3647_v36 = vpop.eup %3646 }
 0x34d   : > { %v1080_v34 = vpack.c.bf16 %v1078_v32, %v1078_v32  ;;  %v1196_v39 = vmul.f32 %v3647_v36, %v4399_v58 }
 0x34f   : > { %3080 = vmatmul.msk.bf16.vlgmr.msrb.gmra.mxu3 %vm936_vm1, %v1080_v34  ;;  %v1198_v42 = vpack.c.bf16 %v1196_v39, %v1196_v39 }
 0x353   : > { %v1075_v35 = vpop.xlane.xlu1 %1074 }
 0x354   : > { %3648 = vrcp.f32 %v1075_v35 }
 0x356   : > { %v1222_v11 = vpop.permute.xlu0 %1221 }
 0x357   : > { %v1227_v37 = vsel %vm964_vm2, %v1222_v11, 0 }
 0x358   : > { %1236 = vmatpush.bf16.msrb.mxu0 %v1227_v37 }
 0x35a   : > { %v3649_v40 = vpop.eup %3648 }
 0x35b   : > { %v1079_v38 = vmul.f32 %v3649_v40, %v3635_v5  ;;  %v1302_v54 = vpop.xlane.xlu2 %1301 }
 0x35c   : > { %v4422_v41 = vpop.f32.mrf.mxu3 }
 0x35d   : > { %v1081_v43 = vpack.c.bf16 %v1079_v38, %v1079_v38 }
 0x35f   : > { %3081 = vmatmul.msk.bf16.vlgmr.msra.gmra.mxu0 %vm936_vm1, %v1081_v43  ;;  %3084 = vmatmul.msk.bf16.vlgmr.msra.gmra.mxu3 %vm936_vm1, %v1198_v42 }
 0x363   : > { %v1193_v44 = vpop.xlane.xlu1 %1192 }
 0x364   : > { %3650 = vrcp.f32 %v1193_v44  ;;  %v979_v45 = vpop.f32.mrf.mxu3 }
 0x365   : > { %3652 = vrcp.f32 %v1302_v54 }
 0x36a   : > { %v3651_v46 = vpop.eup %3650 }
 0x36b   : > { %v1197_v47 = vmul.f32 %v3651_v46, %v3641_v23  ;;  %v3653_v55 = vpop.eup %3652  ;;  %v3437_v23 = vld [vmem:[%s4266_s21 + $0x10] sm:$0xff] }
 0x36c   : > { %v996_v48 = vpop.f32.mrf.mxu0  ;;  %v1308_v56 = vmul.f32 %v3653_v55, %v3637_v14  ;;  %1457 = vmatpush.bf16.msrb.mxu1 %v3437_v23  ;;  %v3466_v55 = vld [vmem:[%s4245_s11 + $0x74] sm:$0xf0] }
 0x36d   : > { %v1199_v51 = vpack.c.bf16 %v1197_v47, %v1197_v47 }
 0x36e   : > { %v1310_v59 = vpack.c.bf16 %v1308_v56, %v1308_v56  ;;  %v3208_v56 = vld [vmem:[%s4245_s11 + $0x60] sm:$0xf] }
 0x36f   : > { %3085 = vmatmul.msk.bf16.vlgmr.msrb.gmra.mxu0 %vm936_vm1, %v1199_v51 }
 0x370   : > { %1458 = vmatpush.bf16.msrb.mxu1 %v3436_v24 }
 0x374   : > { %v998_v52 = vpop.f32.mrf.mxu0  ;;  %1459 = vmatpush.bf16.msrb.mxu1 %v3435_v25  ;;  %v4475_v25 = vld [vmem:[%s4793_s27] sm:$0xff] }
 0x375   : > { %v3216_v52 = vld [vmem:[%s4245_s11 + $0x70] sm:$0xf] }
 0x37b   : > { %v1313_v57 = vpop.permute.xlu1 %1312 }
 0x37c   : > { %v1318_v58 = vsel %vm964_vm2, %v1313_v57, 0  ;;  %v3217_v57 = vor.u32 %v3466_v55, %v3216_v52 }
 0x37d   : > { %1327 = vmatpush.bf16.msrb.mxu3 %v1318_v58 }
 0x380   : > { %3088 = vmatmul.msk.bf16.vlgmr.msrb.gmra.mxu3 %vm936_vm1, %v1310_v59 }
 0x381   : > { %v1305_v60 = vpop.xlane.xlu0 %1304  ;;  %1705 = vmatpush.bf16.msra.mxu3 %v3217_v57  ;;  %v1515_v57 = vperm.slane %v4323_v53, 4 }
 0x382   : > { %3654 = vrcp.f32 %v1305_v60  ;;  %v3200_v60 = vld [vmem:[%s4245_s11 + $0x50] sm:$0xf] }
 0x383   : > { %v1334_v61 = vpop.permute.xlu1 %1333 }
 0x384   : > { %v1339_v62 = vsel %vm964_vm2, %v1334_v61, 0 }
 0x385   : > { %1348 = vmatpush.bf16.msra.mxu0 %v1339_v62 }
 0x388   : > { %v3655_v63 = vpop.eup %3654 }
 0x389   : > { %v1309_v0 = vmul.f32 %v3655_v63, %v3643_v28  ;;  %v3192_v63 = vld [vmem:[%s4245_s11 + $0x40] sm:$0xf] }
 0x38b   : > { %v1311_v1 = vpack.c.bf16 %v1309_v0, %v1309_v0  ;;  %v3460_v0 = vld [vmem:[%s4245_s11 + $0x44] sm:$0xf0] }
 0x38d   : > { %3089 = vmatmul.msk.bf16.vlgmr.msra.gmra.mxu0 %vm936_vm1, %v1311_v1 }
 0x3d2   : > { %v1102_v2 = vpop.f32.mrf.mxu3 }
 0x3da   : > { %v1104_v3 = vpop.f32.mrf.mxu3 }
 0x3db   : > { %v3184_v3 = vld [vmem:[%s4245_s11 + $0x30] sm:$0xf] }
 0x3dc   : > { %v1126_v4 = vpop.f32.mrf.mxu0 }
 0x3dd   : > { %v3594_v5 = vpack.i.bf16 %v1126_v4, %v1102_v2  ;;  %v3193_v2 = vor.u32 %v3460_v0, %v3192_v63  ;;  %v3458_v4 = vld [vmem:[%s4245_s11 + $0x34] sm:$0xf0] }
 0x3df   : > { %3595 = vrot.lane.b32.xlu1 %v3594_v5, %s3978_s20 }
 0x3e2   : > { %v1217_v6 = vpop.f32.mrf.mxu3 }
 0x3e4   : > { %v1128_v7 = vpop.f32.mrf.mxu0 }
 0x3e5   : > { %v3176_v7 = vld [vmem:[%s4245_s11 + $0x20] sm:$0xf] }
 0x3ea   : > { %v1219_v8 = vpop.f32.mrf.mxu3 }
 0x3eb   : > { %v3456_v8 = vld [vmem:[%s4245_s11 + $0x24] sm:$0xf0] }
 0x3ec   : > { %v1238_v9 = vpop.f32.mrf.mxu0 }
 0x3ed   : > { %v3599_v10 = vpack.i.bf16 %v1238_v9, %v1217_v6  ;;  %v3185_v6 = vor.u32 %v3458_v4, %v3184_v3 }
 0x3ef   : > { %3600 = vrot.lane.b32.xlu2 %v3599_v10, %s3976_s10 }
 0x3f4   : > { %v1240_v12 = vpop.f32.mrf.mxu0 }
 0x3f5   : > { %v3177_v12 = vor.u32 %v3456_v8, %v3176_v7 }
 0x403   : > { %v1329_v13 = vpop.f32.mrf.mxu3 }
 0x40a   : > { %v1350_v14 = vpop.f32.mrf.mxu0 }
 0x40b   : > { %v3604_v15 = vpack.i.bf16 %v1350_v14, %v1329_v13  ;;  %v1331_v16 = vpop.f32.mrf.mxu3  ;;  %v3168_v14 = vld [vmem:[%s4245_s11 + $0x10] sm:$0xf] }
 0x40d   : > { %3605 = vrot.lane.b32.xlu1 %v3604_v15, %s3977_s23  ;;  %v3454_v15 = vld [vmem:[%s4245_s11 + $0x14] sm:$0xf0] }
 0x412   : > { %v1352_v17 = vpop.f32.mrf.mxu0 }
 0x413   : > { %v3169_v17 = vor.u32 %v3454_v15, %v3168_v14  ;;  %v1538_v14 = vperm.slane %v4323_v53, 6 }
 0x449   : > { %v3601_v29 = vpop.permute.xlu2 %3600 }
 0x44a   : > { %v3603_v32 = vunpack.i.h.bf16 %v3601_v29  ;;  %v3602_v33 = vunpack.i.l.bf16 %v3601_v29  ;;  %v3447_v29 = vld [vmem:[%s4239_s18 + $0x20] sm:$0xff] }
 0x451   : > { %v3596_v26 = vpop.permute.xlu1 %3595 }
 0x452   : > { %v3598_v27 = vunpack.i.h.bf16 %v3596_v26  ;;  %v3597_v28 = vunpack.i.l.bf16 %v3596_v26  ;;  %v3450_v26 = vld [vmem:[%s4239_s18 + $0x38] sm:$0xff] }
 0x453   : > { %1587 = vmatpush.bf16.msrb.mxu2 %v3450_v26 }
 0x454   : > { %v1379_v30 = vsel %vm897_vm0, %v996_v48, %v3598_v27  ;;  %v1378_v31 = vsel %vm897_vm0, %v4422_v41, %v3597_v28  ;;  %v1403_v41 = vperm.slane %v4323_v53, 3  ;;  %v3979_v48 = vmov 128.0   ;;  %v3449_v27 = vld [vmem:[%s4239_s18 + $0x30] sm:$0xff]  ;;  %v3448_v28 = vld [vmem:[%s4239_s18 + $0x28] sm:$0xff] }
 0x455   : > { %v1381_v11 = vsel %vm1380_vm3, %v1378_v31, %v3602_v33  ;;  %v1382_v37 = vsel %vm1380_vm3, %v1379_v30, %v3603_v32  ;;  %3656 = vrcp.f32 %v3979_v48  ;;  %v3446_v30 = vld [vmem:[%s4239_s18 + $0x18] sm:$0xff]  ;;  %v3445_v31 = vld [vmem:[%s4239_s18 + $0x10] sm:$0xff]  ;;  %v3444_v32 = vld [vmem:[%s4239_s18 + $0x8] sm:$0xff] }
 0x457   : > { %1588 = vmatpush.bf16.msrb.mxu2 %v3449_v27 }
 0x45b   : > { %v3657_v51 = vpop.eup %3656  ;;  %1589 = vmatpush.bf16.msrb.mxu2 %v3448_v28 }
 0x45c   : > { %v1473_v54 = vmul.f32 128.0, %v3657_v51  ;;  %vm1477_vm5 = vweird.f32 %v3657_v51 }
 0x45e   : > { %v1474_v58 = vsub.f32 1.0, %v1473_v54  ;;  %v1617_v54 = vperm.slane %v4323_v53, 1 }
 0x45f   : > { %1590 = vmatpush.bf16.msrb.mxu2 %v3447_v29  ;;  %v3465_v29 = vld [vmem:[%s4245_s11 + $0x74] sm:$0xf] }
 0x460   : > { %v1475_v61 = vmul.f32 %v3657_v51, %v1474_v58 }
 0x462   : > { %v1476_v1 = vadd.f32 %v3657_v51, %v1475_v61 }
 0x463   : > { %1591 = vmatpush.bf16.msrb.mxu2 %v3446_v30  ;;  %v3218_v30 = vld [vmem:[%s4245_s11 + $0x78] sm:$0xf0] }
 0x464   : > { %v4462_v5 = vsel %vm1477_vm5, %v3657_v51, %v1476_v1 }
 0x467   : > { %1592 = vmatpush.bf16.msrb.mxu2 %v3445_v31 }
 0x46b   : > { %1593 = vmatpush.bf16.msrb.mxu2 %v3444_v32 }
 0x47f   : > { %v3606_v34 = vpop.permute.xlu1 %3605 }
 0x480   : > { %v3608_v35 = vunpack.i.h.bf16 %v3606_v34  ;;  %v3607_v36 = vunpack.i.l.bf16 %v3606_v34  ;;  %v3443_v34 = vld [vmem:[%s4239_s18] sm:$0xff] }
 0x481   : > { %1594 = vmatpush.bf16.msrb.mxu2 %v3443_v34 }
 0x482   : > { %v1385_v39 = vsel %vm1383_vm4, %v1382_v37, %v3608_v35  ;;  %v1384_v40 = vsel %vm1383_vm4, %v1381_v11, %v3607_v36 }
 0x483   : > { %v1386_v38 = vpack.c.bf16 %v1385_v39, %v1384_v40 }
 0x485   : > { %1460 = vmatmul.bf16.vlgmr.msrb.gmra.mxu1 %v1386_v38 }
 0x502   : > { %v1461_v42 = vpop.f32.mrf.mxu1 }
 0x503   : > { %v1462_v43 = vadd.f32 %v1461_v42, %v1403_v41 }
 0x505   : > { %v1466_v44 = vadd.f32 %v1462_v43, %v4312_v49  ;;  %v3464_v49 = vld [vmem:[%s4245_s11 + $0x64] sm:$0xf0] }
 0x506   : > { %v3209_v59 = vor.u32 %v3464_v49, %v3208_v56 }
 0x507   : > { %1468 = vadd.xlane.f32.xlu0 %v1466_v44 }
 0x508   : > { %1706 = vmatpush.bf16.msra.mxu3 %v3209_v59 }
 0x50a   : > { %v1463_v45 = vpop.f32.mrf.mxu1 }
 0x50b   : > { %v1464_v46 = vadd.f32 %v1463_v45, %v1403_v41 }
 0x50d   : > { %v1467_v47 = vadd.f32 %v1464_v46, %v4314_v50  ;;  %v3462_v50 = vld [vmem:[%s4245_s11 + $0x54] sm:$0xf0] }
 0x50e   : > { %v3201_v62 = vor.u32 %v3462_v50, %v3200_v60  ;;  %v1518_v50 = vperm.slane %v4323_v53, 5 }
 0x50f   : > { %1470 = vadd.xlane.f32.xlu1 %v1467_v47 }
 0x510   : > { %1707 = vmatpush.bf16.msra.mxu3 %v3201_v62 }
 0x514   : > { %1708 = vmatpush.bf16.msra.mxu3 %v3193_v2 }
 0x518   : > { %1709 = vmatpush.bf16.msra.mxu3 %v3185_v6 }
 0x51c   : > { %1710 = vmatpush.bf16.msra.mxu3 %v3177_v12 }
 0x520   : > { %1711 = vmatpush.bf16.msra.mxu3 %v3169_v17 }
 0x524   : > { %1712 = vmatpush.bf16.msra.mxu3 %v3161_v22 }
 0x527   : > { %1713 = vmatmul.bf16.vlgmr.msra.gmra.mxu3 %v4475_v25 }
 0x57a   : > { %v1469_v9 = vpop.xlane.xlu0 %1468 }
 0x57b   : > { %v1479_v10 = vmul.f32 %v4462_v5, %v1469_v9 }
 0x57d   : > { %v1481_v13 = vsub.f32 %v1466_v44, %v1479_v10 }
 0x57f   : > { %v1483_v16 = vmul.f32 %v1481_v13, %v1481_v13 }
 0x581   : > { %1485 = vadd.xlane.f32.xlu0 %v1483_v16 }
 0x582   : > { %v1471_v20 = vpop.xlane.xlu1 %1470 }
 0x583   : > { %v1480_v21 = vmul.f32 %v4462_v5, %v1471_v20 }
 0x585   : > { %v1482_v23 = vsub.f32 %v1467_v47, %v1480_v21 }
 0x587   : > { %v1484_v24 = vmul.f32 %v1482_v23, %v1482_v23 }
 0x589   : > { %1487 = vadd.xlane.f32.xlu0 %v1484_v24 }
 0x5aa   : > { %v1714_v55 = vpop.f32.mrf.mxu3 }
 0x5ab   : > { %v1715_v49 = vadd.f32 %v1714_v55, %v1617_v54 }
 0x5ad   : > { %v1737_v59 = vpack.c.bf16 %v1715_v49, %v1715_v49 }
 0x5af   : > { %v1745_v63 = vsel %vm897_vm0, %v1737_v59, 0  ;;  %v1847_v0 = vunpack.c.l.b16 %v1737_v59 }
 0x5b0   : > { %1754 = vmatpush.bf16.xpose.msra.mxu1 %v1745_v63 }
 0x5b1   : > { %v1848_v2 = vpack.c.b16 %v1847_v0, %v1847_v0 }
 0x5b2   : > { %v1716_v3 = vpop.f32.mrf.mxu3 }
 0x5b3   : > { %v1717_v7 = vadd.f32 %v1716_v3, %v1617_v54  ;;  %1849 = vrot.lane.b32.xlu2 %v1848_v2, %s3977_s23  ;;  %v3453_v54 = vld [vmem:[%s4245_s11 + $0x14] sm:$0xf] }
 0x5b5   : > { %v1738_v9 = vpack.c.bf16 %v1717_v7, %v1717_v7 }
 0x5b7   : > { %v1764_v10 = vsel %vm897_vm0, %v1738_v9, 0  ;;  %v1876_v12 = vunpack.c.l.b16 %v1738_v9 }
 0x5b8   : > { %1773 = vmatpush.bf16.xpose.msra.mxu2 %v1764_v10 }
 0x5f4   : > { %v1486_v33 = vpop.xlane.xlu0 %1485 }
 0x5f5   : > { %v1489_v35 = vmul.f32 %v1486_v33, %v4462_v5  ;;  %v3221_v33 = vor.u32 %v3465_v29, %v3218_v30 }
 0x5f7   : > { %v1491_v36 = vadd.f32 1e-05, %v1489_v35  ;;  %1719 = vmatpush.bf16.msrb.mxu0 %v3221_v33 }
 0x5f9   : > { %3658 = vrsqrt.f32 %v1491_v36  ;;  %vm1499_vm7 = vweird.f32 %v1491_v36 }
 0x5fc   : > { %v1488_v11 = vpop.xlane.xlu0 %1487 }
 0x5fd   : > { %v1490_v37 = vmul.f32 %v1488_v11, %v4462_v5  ;;  %v3210_v11 = vld [vmem:[%s4245_s11 + $0x68] sm:$0xf0] }
 0x5ff   : > { %v3659_v39 = vpop.eup %3658  ;;  %v1492_v40 = vadd.f32 1e-05, %v1490_v37 }
 0x600   : > { %v1494_v38 = vmul.f32 %v3659_v39, %v1491_v36  ;;  %vm1500_vm6 = vweird.f32 %v3659_v39  ;;  %v3463_v36 = vld [vmem:[%s4245_s11 + $0x64] sm:$0xf] }
 0x601   : > { %3660 = vrsqrt.f32 %v1492_v40  ;;  %vm1501_vm8 = vmor %vm1499_vm7, %vm1500_vm6  ;;  %vm1509_vm10 = vweird.f32 %v1492_v40  ;;  %v3213_v37 = vor.u32 %v3463_v36, %v3210_v11 }
 0x602   : > { %v1495_v41 = vmul.f32 %v3659_v39, %v1494_v38 }
 0x603   : > { %1720 = vmatpush.bf16.msrb.mxu0 %v3213_v37 }
 0x604   : > { %v1496_v42 = vmul.f32 0.5, %v1495_v41  ;;  %v3459_v41 = vld [vmem:[%s4245_s11 + $0x44] sm:$0xf] }
 0x606   : > { %v1497_v43 = vsub.f32 1.5, %v1496_v42  ;;  %v3194_v42 = vld [vmem:[%s4245_s11 + $0x48] sm:$0xf0] }
 0x607   : > { %v3661_v44 = vpop.eup %3660 }
 0x608   : > { %v1498_v45 = vmul.f32 %v3659_v39, %v1497_v43  ;;  %v1504_v46 = vmul.f32 %v3661_v44, %v1492_v40  ;;  %vm1510_vm9 = vweird.f32 %v3661_v44  ;;  %v3202_v40 = vld [vmem:[%s4245_s11 + $0x58] sm:$0xf0]  ;;  %v3197_v43 = vor.u32 %v3459_v41, %v3194_v42 }
 0x609   : > { %vm1511_vm11 = vmor %vm1509_vm10, %vm1510_vm9 }
 0x60a   : > { %v1505_v47 = vmul.f32 %v3661_v44, %v1504_v46  ;;  %v1502_v48 = vsel %vm1501_vm8, %v3659_v39, %v1498_v45  ;;  %v3461_v39 = vld [vmem:[%s4245_s11 + $0x54] sm:$0xf]  ;;  %v3186_v45 = vld [vmem:[%s4245_s11 + $0x38] sm:$0xf0] }
 0x60b   : > { %v1513_v56 = vmul.f32 %v1502_v48, %v1481_v13  ;;  %v1877_v13 = vpack.c.b16 %v1876_v12, %v1876_v12  ;;  %v3205_v38 = vor.u32 %v3461_v39, %v3202_v40  ;;  %v3178_v48 = vld [vmem:[%s4245_s11 + $0x28] sm:$0xf0] }
 0x60c   : > { %v1506_v51 = vmul.f32 0.5, %v1505_v47  ;;  %v3455_v47 = vld [vmem:[%s4245_s11 + $0x24] sm:$0xf] }
 0x60d   : > { %v1516_v62 = vmul.f32 %v1515_v57, %v1513_v56  ;;  %1878 = vrot.lane.b32.xlu0 %v1877_v13, %s3977_s23  ;;  %v1850_v27 = vpop.permute.xlu2 %1849  ;;  %1721 = vmatpush.bf16.msrb.mxu0 %v3205_v38  ;;  %v3451_v56 = vld [vmem:[%s4245_s11 + $0x4] sm:$0xf] }
 0x60e   : > { %v1507_v52 = vsub.f32 1.5, %v1506_v51  ;;  %v1855_v31 = vsel %vm897_vm0, %v1850_v27, 0  ;;  %v3181_v51 = vor.u32 %v3455_v47, %v3178_v48 }
 0x60f   : > { %v4492_v4 = vadd.f32 %v1518_v50, %v1516_v62  ;;  %1864 = vmatpush.bf16.xpose.msrb.mxu1 %v1855_v31 }
 0x610   : > { %v1508_v58 = vmul.f32 %v3661_v44, %v1507_v52  ;;  %v3170_v52 = vld [vmem:[%s4245_s11 + $0x18] sm:$0xf0] }
 0x611   : > { %1722 = vmatpush.bf16.msrb.mxu0 %v3197_v43  ;;  %v3173_v55 = vor.u32 %v3453_v54, %v3170_v52 }
 0x612   : > { %v1512_v60 = vsel %vm1511_vm11, %v3661_v44, %v1508_v58  ;;  %v3457_v44 = vld [vmem:[%s4245_s11 + $0x34] sm:$0xf] }
 0x613   : > { %v1514_v61 = vmul.f32 %v1512_v60, %v1482_v23  ;;  %v3189_v46 = vor.u32 %v3457_v44, %v3186_v45 }
 0x615   : > { %v1517_v1 = vmul.f32 %v1515_v57, %v1514_v61  ;;  %1996 = vrot.lane.b32.xlu0 %v1877_v13, %s3976_s10  ;;  %1723 = vmatpush.bf16.msrb.mxu0 %v3189_v46  ;;  %v3162_v57 = vld [vmem:[%s4245_s11 + $0x8] sm:$0xf0] }
 0x616   : > { %v3165_v49 = vor.u32 %v3451_v56, %v3162_v57 }
 0x617   : > { %v4494_v6 = vadd.f32 %v1518_v50, %v1517_v1 }
 0x619   : > { %v1521_v8 = vpack.c.bf16 %v4494_v6, %v4492_v4  ;;  %1724 = vmatpush.bf16.msrb.mxu0 %v3181_v51 }
 0x61b   : > { %1595 = vmatmul.bf16.vlgmr.msrb.gmra.mxu2 %v1521_v8 }
 0x61d   : > { %2085 = vrot.lane.b32.xlu0 %v1848_v2, %s3978_s20  ;;  %1725 = vmatpush.bf16.msrb.mxu0 %v3173_v55 }
 0x621   : > { %1726 = vmatpush.bf16.msrb.mxu0 %v3165_v49 }
 0x624   : > { %1727 = vmatmul.bf16.vlgmr.msrb.gmra.mxu0 %v4475_v25 }
 0x67f   : > { %v1879_v28 = vpop.permute.xlu0 %1878 }
 0x680   : > { %v1884_v32 = vsel %vm897_vm0, %v1879_v28, 0 }
 0x681   : > { %1893 = vmatpush.bf16.xpose.msrb.mxu2 %v1884_v32 }
 0x687   : > { %v1997_v34 = vpop.permute.xlu0 %1996 }
 0x688   : > { %v2002_v35 = vsel %vm897_vm0, %v1997_v34, 0 }
 0x68f   : > { %v2086_v60 = vpop.permute.xlu0 %2085 }
 0x690   : > { %v2091_v62 = vsel %vm897_vm0, %v2086_v60, 0 }
 0x69e   : > { %v1596_v15 = vpop.f32.mrf.mxu2 }
 0x69f   : > { %v1597_v16 = vadd.f32 %v1596_v15, %v1538_v14  ;;  %v4546_v15 = vld [vmem:[%s4271_s12 + $0x8] sm:$0xff] }
 0x6a1   : > { %v1733_v17 = vmul.f32 0.17677669, %v1597_v16  ;;  %v1618_v16 = vperm.slane %v4546_v15, 1 }
 0x6a3   : > { %v1735_v18 = vpack.c.bf16 %v1733_v17, %v1733_v17 }
 0x6a5   : > { %v1842_v19 = vunpack.c.l.b16 %v1735_v18  ;;  %3222 = vmatmul.msk.bf16.vlgmr.msra.gmra.mxu1 %vm897_vm0, %v1735_v18 }
 0x6a6   : > { %v1598_v20 = vpop.f32.mrf.mxu2 }
 0x6a7   : > { %v1599_v21 = vadd.f32 %v1598_v20, %v1538_v14  ;;  %v1843_v22 = vpack.c.b16 %v1842_v19, %v1842_v19  ;;  %v1728_v14 = vpop.f32.mrf.mxu0 }
 0x6a8   : > { %v1729_v18 = vadd.f32 %v1728_v14, %v1618_v16 }
 0x6a9   : > { %v1734_v23 = vmul.f32 0.17677669, %v1599_v21  ;;  %1971 = vrot.lane.b32.xlu1 %v1843_v22, %s3976_s10  ;;  %2083 = vrot.lane.b32.xlu0 %v1843_v22, %s3978_s20 }
 0x6aa   : > { %1844 = vrot.lane.b32.xlu2 %v1843_v22, %s3977_s23  ;;  %v1739_v20 = vpack.c.bf16 %v1729_v18, %v1729_v18 }
 0x6ab   : > { %v1736_v53 = vpack.c.bf16 %v1734_v23, %v1734_v23 }
 0x6ac   : > { %v1807_v23 = vsel %vm964_vm2, %v1739_v20, 0  ;;  %v1924_v34 = vunpack.c.l.b16 %v1739_v20 }
 0x6ad   : > { %v1871_v24 = vunpack.c.l.b16 %v1736_v53  ;;  %3223 = vmatmul.msk.bf16.vlgmr.msra.gmra.mxu2 %vm897_vm0, %v1736_v53  ;;  %1816 = vmatpush.bf16.msrb.mxu3 %v1807_v23 }
 0x6ae   : > { %2011 = vmatpush.bf16.xpose.msra.mxu2 %v2002_v35  ;;  %v4554_v37 = vpack.c.b16 %v1924_v34, %v1924_v34 }
 0x6af   : > { %v1872_v26 = vpack.c.b16 %v1871_v24, %v1871_v24  ;;  %v1730_v17 = vpop.f32.mrf.mxu0 }
 0x6b0   : > { %v1731_v19 = vadd.f32 %v1730_v17, %v1618_v16 }
 0x6b2   : > { %1873 = vrot.lane.b32.xlu2 %v1872_v26, %s3977_s23  ;;  %v1740_v21 = vpack.c.bf16 %v1731_v19, %v1731_v19 }
 0x6b4   : > { %v1826_v53 = vsel %vm964_vm2, %v1740_v21, 0  ;;  %v1948_v54 = vunpack.c.l.b16 %v1740_v21 }
 0x6b5   : > { %1835 = vmatpush.bf16.msra.mxu0 %v1826_v53 }
 0x6b6   : > { %v4563_v52 = vpack.c.b16 %v1948_v54, %v1948_v54 }
 0x6ba   : > { %1973 = vrot.lane.b32.xlu2 %v1848_v2, %s3976_s10 }
 0x6c2   : > { %1994 = vrot.lane.b32.xlu2 %v1872_v26, %s3976_s10 }
 0x6ca   : > { %2108 = vrot.lane.b32.xlu2 %v1877_v13, %s3978_s20 }
 0x6d2   : > { %2106 = vrot.lane.b32.xlu2 %v1872_v26, %s3978_s20 }
 0x704   : > { %v1845_v58 = vpop.permute.xlu2 %1844 }
 0x705   : > { %3226 = vmatmul.msk.bf16.vlgmr.msrb.gmra.mxu1 %vm897_vm0, %v1845_v58 }
 0x70c   : > { %v1874_v59 = vpop.permute.xlu2 %1873 }
 0x70d   : > { %3227 = vmatmul.msk.bf16.vlgmr.msrb.gmra.mxu2 %vm897_vm0, %v1874_v59 }
 0x714   : > { %v1974_v50 = vpop.permute.xlu2 %1973 }
 0x715   : > { %v1979_v61 = vsel %vm897_vm0, %v1974_v50, 0 }
 0x716   : > { %1988 = vmatpush.bf16.xpose.msra.mxu1 %v1979_v61 }
 0x71b   : > { %v1972_v63 = vpop.permute.xlu1 %1971  ;;  %v2084_v8 = vpop.permute.xlu0 %2083 }
 0x71c   : > { %v1995_v0 = vpop.permute.xlu2 %1994 }
 0x71d   : > { %3230 = vmatmul.msk.bf16.vlgmr.msra.gmra.mxu1 %vm897_vm0, %v1972_v63  ;;  %3231 = vmatmul.msk.bf16.vlgmr.msra.gmra.mxu2 %vm897_vm0, %v1995_v0 }
 0x71e   : > { %2100 = vmatpush.bf16.xpose.msrb.mxu1 %v2091_v62 }
 0x722   : > { %v1756_v25 = vpop.f32.mrf.mxu1 }
 0x723   : > { %v1779_v1 = vsel %vm936_vm1, %v1756_v25, -inf }
 0x724   : > { %v2109_v2 = vpop.permute.xlu2 %2108  ;;  %1780 = vmax.xlane.f32.xlu0 %v1779_v1 }
 0x725   : > { %v2114_v3 = vsel %vm897_vm0, %v2109_v2, 0 }
 0x726   : > { %2123 = vmatpush.bf16.xpose.msrb.mxu2 %v2114_v3 }
 0x72a   : > { %v1758_v7 = vpop.f32.mrf.mxu1 }
 0x72c   : > { %v2107_v9 = vpop.permute.xlu2 %2106 }
 0x72d   : > { %3234 = vmatmul.msk.bf16.vlgmr.msrb.gmra.mxu1 %vm897_vm0, %v2084_v8  ;;  %3235 = vmatmul.msk.bf16.vlgmr.msrb.gmra.mxu2 %vm897_vm0, %v2107_v9 }
 0x730   : > { %v1775_v10 = vpop.f32.mrf.mxu2 }
 0x731   : > { %v1782_v12 = vsel %vm936_vm1, %v1775_v10, -inf }
 0x732   : > { %1783 = vmax.xlane.f32.xlu1 %v1782_v12 }
 0x738   : > { %v1777_v13 = vpop.f32.mrf.mxu2 }
 0x782   : > { %v1866_v22 = vpop.f32.mrf.mxu1 }
 0x783   : > { %v1899_v24 = vsel %vm936_vm1, %v1866_v22, -inf }
 0x784   : > { %1900 = vmax.xlane.f32.xlu2 %v1899_v24 }
 0x78a   : > { %v1868_v26 = vpop.f32.mrf.mxu1 }
 0x790   : > { %v1895_v27 = vpop.f32.mrf.mxu2 }
 0x791   : > { %v1902_v28 = vsel %vm936_vm1, %v1895_v27, -inf }
 0x792   : > { %1903 = vmax.xlane.f32.xlu0 %v1902_v28 }
 0x797   : > { %v1781_v29 = vpop.xlane.xlu0 %1780 }
 0x798   : > { %v1897_v30 = vpop.f32.mrf.mxu2  ;;  %v1785_v31 = vsub.f32 %v1756_v25, %v1781_v29 }
 0x79a   : > { %v1787_v32 = vmul.f32 1.442695, %v1785_v31  ;;  %v1990_v33 = vpop.f32.mrf.mxu1 }
 0x79b   : > { %v2017_v42 = vsel %vm936_vm1, %v1990_v33, -inf }
 0x79c   : > { %3662 = vpow2.f32 %v1787_v32 }
 0x7a0   : > { %v2013_v35 = vpop.f32.mrf.mxu2 }
 0x7a1   : > { %v2020_v36 = vsel %vm936_vm1, %v2013_v35, -inf }
 0x7a2   : > { %v3663_v11 = vpop.eup %3662  ;;  %2021 = vmax.xlane.f32.xlu2 %v2020_v36  ;;  %v1992_v39 = vpop.f32.mrf.mxu1 }
 0x7a3   : > { %v1791_v40 = vsel %vm936_vm1, %v3663_v11, 0.0 }
 0x7a4   : > { %1792 = vadd.xlane.f32.xlu1 %v1791_v40 }
 0x7a5   : > { %v1784_v47 = vpop.xlane.xlu1 %1783 }
 0x7a6   : > { %1926 = vrot.lane.b32.xlu0 %v4554_v37, %s3977_s23  ;;  %v1786_v48 = vsub.f32 %v1775_v10, %v1784_v47 }
 0x7a8   : > { %v2015_v38 = vpop.f32.mrf.mxu2  ;;  %v1789_v51 = vmul.f32 1.442695, %v1786_v48 }
 0x7aa   : > { %v4559_v41 = vpop.f32.mrf.mxu1  ;;  %3664 = vpow2.f32 %v1789_v51 }
 0x7ab   : > { %v2129_v57 = vsel %vm936_vm1, %v4559_v41, -inf }
 0x7ac   : > { %2018 = vmax.xlane.f32.xlu1 %v2017_v42 }
 0x7b0   : > { %v2125_v43 = vpop.f32.mrf.mxu2  ;;  %v3665_v55 = vpop.eup %3664 }
 0x7b1   : > { %v2132_v44 = vsel %vm936_vm1, %v2125_v43, -inf  ;;  %v1794_v56 = vsel %vm936_vm1, %v3665_v55, 0.0 }
 0x7b2   : > { %2133 = vmax.xlane.f32.xlu2 %v2132_v44  ;;  %v2104_v45 = vpop.f32.mrf.mxu1 }
 0x7b8   : > { %v2127_v46 = vpop.f32.mrf.mxu2 }
 0x7ca   : > { %2062 = vrot.lane.b32.xlu2 %v4563_v52, %s3976_s10 }
 0x7d0   : > { %1795 = vadd.xlane.f32.xlu0 %v1794_v56 }
 0x7d8   : > { %2130 = vmax.xlane.f32.xlu0 %v2129_v57 }
 0x7ec   : > { %2041 = vrot.lane.b32.xlu0 %v4554_v37, %s3976_s10 }
 0x7f7   : > { %v1901_v49 = vpop.xlane.xlu2 %1900 }
 0x7f8   : > { %v1905_v58 = vsub.f32 %v1866_v22, %v1901_v49 }
 0x7fa   : > { %v1907_v59 = vmul.f32 1.442695, %v1905_v58 }
 0x7fc   : > { %3666 = vpow2.f32 %v1907_v59 }
 0x802   : > { %v4572_v60 = vpop.eup %3666 }
 0x803   : > { %v1911_v50 = vsel %vm936_vm1, %v4572_v60, 0.0 }
 0x804   : > { %1912 = vadd.xlane.f32.xlu1 %v1911_v50 }
 0x805   : > { %v1904_v61 = vpop.xlane.xlu0 %1903 }
 0x806   : > { %v1906_v62 = vsub.f32 %v1895_v27, %v1904_v61 }
 0x808   : > { %v1909_v63 = vmul.f32 1.442695, %v1906_v62 }
 0x80a   : > { %3668 = vpow2.f32 %v1909_v63 }
 0x810   : > { %v3669_v0 = vpop.eup %3668 }
 0x811   : > { %v1914_v25 = vsel %vm936_vm1, %v3669_v0, 0.0 }
 0x812   : > { %1915 = vadd.xlane.f32.xlu2 %v1914_v25 }
 0x815   : > { %v2022_v7 = vpop.xlane.xlu2 %2021 }
 0x816   : > { %v2024_v13 = vsub.f32 %v2013_v35, %v2022_v7 }
 0x817   : > { %v1793_v1 = vpop.xlane.xlu1 %1792 }
 0x818   : > { %3670 = vrcp.f32 %v1793_v1  ;;  %v1927_v2 = vpop.permute.xlu0 %1926  ;;  %v2027_v17 = vmul.f32 1.442695, %v2024_v13 }
 0x819   : > { %v1932_v3 = vsel %vm964_vm2, %v1927_v2, 0 }
 0x81a   : > { %1941 = vmatpush.bf16.msra.mxu3 %v1932_v3 }
 0x81d   : > { %1950 = vrot.lane.b32.xlu1 %v4563_v52, %s3977_s23 }
 0x81e   : > { %v3671_v8 = vpop.eup %3670 }
 0x81f   : > { %v1799_v9 = vmul.f32 %v3671_v8, %v3663_v11  ;;  %v2019_v10 = vpop.xlane.xlu1 %2018 }
 0x820   : > { %v2023_v12 = vsub.f32 %v1990_v33, %v2019_v10 }
 0x821   : > { %v1801_v14 = vpack.c.bf16 %v1799_v9, %v1799_v9 }
 0x822   : > { %v2025_v16 = vmul.f32 1.442695, %v2023_v12 }
 0x823   : > { %3224 = vmatmul.msk.bf16.vlgmr.msrb.gmra.mxu3 %vm936_vm1, %v1801_v14 }
 0x824   : > { %3672 = vpow2.f32 %v2025_v16 }
 0x825   : > { %v2134_v18 = vpop.xlane.xlu2 %2133  ;;  %3674 = vpow2.f32 %v2027_v17 }
 0x826   : > { %v2136_v19 = vsub.f32 %v2125_v43, %v2134_v18 }
 0x828   : > { %v2139_v20 = vmul.f32 1.442695, %v2136_v19 }
 0x82a   : > { %v3673_v21 = vpop.eup %3672  ;;  %3676 = vpow2.f32 %v2139_v20 }
 0x82b   : > { %v2029_v22 = vsel %vm936_vm1, %v3673_v21, 0.0  ;;  %v3675_v23 = vpop.eup %3674 }
 0x82c   : > { %2030 = vadd.xlane.f32.xlu2 %v2029_v22  ;;  %v2032_v26 = vsel %vm936_vm1, %v3675_v23, 0.0 }
 0x82d   : > { %v2063_v40 = vpop.permute.xlu2 %2062 }
 0x82e   : > { %v2068_v47 = vsel %vm964_vm2, %v2063_v40, 0 }
 0x830   : > { %v4582_v53 = vpop.eup %3676 }
 0x831   : > { %v2144_v24 = vsel %vm936_vm1, %v4582_v53, 0.0 }
 0x832   : > { %2145 = vadd.xlane.f32.xlu0 %v2144_v24 }
 0x834   : > { %2033 = vadd.xlane.f32.xlu2 %v2032_v26  ;;  %v3474_v26 = vld [vmem:[%s4247_s16 + $0x38] sm:$0xff] }
 0x835   : > { %2291 = vmatpush.bf16.msra.mxu1 %v3474_v26  ;;  %v3484_v26 = vld [vmem:[%s4253_s0 + $0x44] sm:$0xf0] }
 0x843   : > { %v1796_v27 = vpop.xlane.xlu0 %1795 }
 0x844   : > { %3678 = vrcp.f32 %v1796_v27  ;;  %v3473_v27 = vld [vmem:[%s4247_s16 + $0x30] sm:$0xff] }
 0x845   : > { %2292 = vmatpush.bf16.msra.mxu1 %v3473_v27  ;;  %v3483_v27 = vld [vmem:[%s4253_s0 + $0x44] sm:$0xf] }
 0x84a   : > { %v3679_v28 = vpop.eup %3678 }
 0x84b   : > { %v1800_v29 = vmul.f32 %v3679_v28, %v3665_v55  ;;  %v2131_v30 = vpop.xlane.xlu0 %2130  ;;  %v3472_v28 = vld [vmem:[%s4247_s16 + $0x28] sm:$0xff] }
 0x84c   : > { %v2135_v31 = vsub.f32 %v4559_v41, %v2131_v30  ;;  %2153 = vrot.lane.b32.xlu2 %v4554_v37, %s3978_s20  ;;  %2293 = vmatpush.bf16.msra.mxu1 %v3472_v28 }
 0x84d   : > { %v1802_v32 = vpack.c.bf16 %v1800_v29, %v1800_v29 }
 0x84e   : > { %v2137_v33 = vmul.f32 1.442695, %v2135_v31 }
 0x84f   : > { %3225 = vmatmul.msk.bf16.vlgmr.msra.gmra.mxu0 %vm936_vm1, %v1802_v32  ;;  %v3471_v32 = vld [vmem:[%s4247_s16 + $0x20] sm:$0xff] }
 0x850   : > { %3680 = vpow2.f32 %v2137_v33  ;;  %2294 = vmatpush.bf16.msra.mxu1 %v3471_v32  ;;  %v3470_v33 = vld [vmem:[%s4247_s16 + $0x18] sm:$0xff] }
 0x851   : > { %v3482_v32 = vld [vmem:[%s4253_s0 + $0x34] sm:$0xf0] }
 0x854   : > { %2174 = vrot.lane.b32.xlu2 %v4563_v52, %s3978_s20  ;;  %2295 = vmatpush.bf16.msra.mxu1 %v3470_v33  ;;  %v3481_v33 = vld [vmem:[%s4253_s0 + $0x34] sm:$0xf] }
 0x856   : > { %v3681_v34 = vpop.eup %3680 }
 0x857   : > { %v2141_v35 = vsel %vm936_vm1, %v3681_v34, 0.0 }
 0x858   : > { %2142 = vadd.xlane.f32.xlu1 %v2141_v35  ;;  %v3468_v35 = vld [vmem:[%s4247_s16 + $0x8] sm:$0xff] }
 0x85e   : > { %v2042_v36 = vpop.permute.xlu0 %2041 }
 0x85f   : > { %v2047_v11 = vsel %vm964_vm2, %v2042_v36, 0  ;;  %v3467_v36 = vld [vmem:[%s4247_s16] sm:$0xff] }
 0x860   : > { %2056 = vmatpush.bf16.msrb.mxu3 %v2047_v11 }
 0x877   : > { %v1913_v39 = vpop.xlane.xlu1 %1912 }
 0x878   : > { %3682 = vrcp.f32 %v1913_v39 }
 0x87e   : > { %v3683_v37 = vpop.eup %3682 }
 0x87f   : > { %v1919_v38 = vmul.f32 %v3683_v37, %v4572_v60 }
 0x881   : > { %v1921_v41 = vpack.c.bf16 %v1919_v38, %v1919_v38 }
 0x883   : > { %3228 = vmatmul.msk.bf16.vlgmr.msra.gmra.mxu3 %vm936_vm1, %v1921_v41 }
 0x885   : > { %v1916_v42 = vpop.xlane.xlu2 %1915 }
 0x886   : > { %3684 = vrcp.f32 %v1916_v42 }
 0x88c   : > { %v3685_v43 = vpop.eup %3684 }
 0x88d   : > { %v1920_v44 = vmul.f32 %v3685_v43, %v3669_v0 }
 0x88f   : > { %v1951_v45 = vpop.permute.xlu1 %1950  ;;  %v1922_v48 = vpack.c.bf16 %v1920_v44, %v1920_v44 }
 0x890   : > { %v1956_v46 = vsel %vm964_vm2, %v1951_v45, 0 }
 0x891   : > { %1965 = vmatpush.bf16.msrb.mxu0 %v1956_v46 }
 0x894   : > { %3229 = vmatmul.msk.bf16.vlgmr.msrb.gmra.mxu0 %vm936_vm1, %v1922_v48 }
 0x895   : > { %2077 = vmatpush.bf16.msra.mxu0 %v2068_v47 }
 0x89f   : > { %v2031_v51 = vpop.xlane.xlu2 %2030 }
 0x8a0   : > { %3686 = vrcp.f32 %v2031_v51 }
 0x8a5   : > { %v2146_v61 = vpop.xlane.xlu0 %2145 }
 0x8a6   : > { %v3687_v54 = vpop.eup %3686  ;;  %v4600_v52 = vpop.f32.mrf.mxu3 }
 0x8a7   : > { %v2037_v55 = vmul.f32 %v3687_v54, %v3673_v21  ;;  %v2034_v56 = vpop.xlane.xlu2 %2033 }
 0x8a8   : > { %3688 = vrcp.f32 %v2034_v56  ;;  %v4628_v56 = vld [vmem:[%s4271_s12] sm:$0xff] }
 0x8a9   : > { %v2039_v57 = vpack.c.bf16 %v2037_v55, %v2037_v55  ;;  %3690 = vrcp.f32 %v2146_v61 }
 0x8ab   : > { %3232 = vmatmul.msk.bf16.vlgmr.msrb.gmra.mxu3 %vm936_vm1, %v2039_v57  ;;  %v2242_v57 = vperm.slane %v4628_v56, 7 }
 0x8ae   : > { %v3689_v49 = vpop.eup %3688  ;;  %v1820_v58 = vpop.f32.mrf.mxu3 }
 0x8af   : > { %v2038_v59 = vmul.f32 %v3689_v49, %v3675_v23  ;;  %v2154_v60 = vpop.permute.xlu2 %2153  ;;  %v3691_v25 = vpop.eup %3690 }
 0x8b0   : > { %v2159_v50 = vsel %vm964_vm2, %v2154_v60, 0  ;;  %v2150_v1 = vmul.f32 %v3691_v25, %v4582_v53 }
 0x8b1   : > { %v2040_v62 = vpack.c.bf16 %v2038_v59, %v2038_v59  ;;  %2168 = vmatpush.bf16.msra.mxu3 %v2159_v50 }
 0x8b2   : > { %v2152_v2 = vpack.c.bf16 %v2150_v1, %v2150_v1 }
 0x8b3   : > { %3233 = vmatmul.msk.bf16.vlgmr.msra.gmra.mxu0 %vm936_vm1, %v2040_v62 }
 0x8b7   : > { %v2175_v63 = vpop.permute.xlu2 %2174 }
 0x8b8   : > { %v2180_v0 = vsel %vm964_vm2, %v2175_v63, 0 }
 0x8b9   : > { %2189 = vmatpush.bf16.msrb.mxu0 %v2180_v0 }
 0x8c3   : > { %3237 = vmatmul.msk.bf16.vlgmr.msrb.gmra.mxu0 %vm936_vm1, %v2152_v2  ;;  %v3328_v2 = vld [vmem:[%s4253_s0 + $0x70] sm:$0xf] }
 0x8cb   : > { %v2143_v3 = vpop.xlane.xlu1 %2142 }
 0x8cc   : > { %3692 = vrcp.f32 %v2143_v3  ;;  %v1837_v7 = vpop.f32.mrf.mxu0  ;;  %v3490_v3 = vld [vmem:[%s4253_s0 + $0x74] sm:$0xf0] }
 0x8d2   : > { %v3693_v8 = vpop.eup %3692 }
 0x8d3   : > { %v2149_v9 = vmul.f32 %v3693_v8, %v3681_v34  ;;  %v3469_v34 = vld [vmem:[%s4247_s16 + $0x10] sm:$0xff]  ;;  %v3329_v8 = vor.u32 %v3490_v3, %v3328_v2  ;;  %v3496_v3 = vld [vmem:[%s4255_s26 + $0x28] sm:$0xff] }
 0x8d4   : > { %v1839_v10 = vpop.f32.mrf.mxu0  ;;  %2296 = vmatpush.bf16.msra.mxu1 %v3469_v34 }
 0x8d5   : > { %v2151_v12 = vpack.c.bf16 %v2149_v9, %v2149_v9  ;;  %v3330_v9 = vld [vmem:[%s4253_s0 + $0x78] sm:$0xf0]  ;;  %2452 = vmatpush.bf16.msra.mxu2 %v3329_v8 }
 0x8d7   : > { %3236 = vmatmul.msk.bf16.vlgmr.msra.gmra.mxu3 %vm936_vm1, %v2151_v12  ;;  %v3320_v12 = vld [vmem:[%s4253_s0 + $0x60] sm:$0xf] }
 0x8d8   : > { %2297 = vmatpush.bf16.msra.mxu1 %v3468_v35  ;;  %v3298_v35 = vld [vmem:[%s4253_s0 + $0x38] sm:$0xf0] }
 0x8dc   : > { %2298 = vmatpush.bf16.msra.mxu1 %v3467_v36  ;;  %v3301_v36 = vor.u32 %v3481_v33, %v3298_v35  ;;  %v3494_v33 = vld [vmem:[%s4255_s26 + $0x18] sm:$0xff]  ;;  %v3493_v35 = vld [vmem:[%s4255_s26 + $0x10] sm:$0xff] }
 0x906   : > { %v1943_v13 = vpop.f32.mrf.mxu3 }
 0x90e   : > { %v1945_v14 = vpop.f32.mrf.mxu3 }
 0x90f   : > { %v3487_v14 = vld [vmem:[%s4253_s0 + $0x64] sm:$0xf] }
 0x911   : > { %v1967_v16 = vpop.f32.mrf.mxu0 }
 0x912   : > { %v3609_v17 = vpack.i.bf16 %v1967_v16, %v1943_v13  ;;  %v3488_v13 = vld [vmem:[%s4253_s0 + $0x64] sm:$0xf0] }
 0x913   : > { %v3321_v16 = vor.u32 %v3488_v13, %v3320_v12  ;;  %v3503_v12 = vld [vmem:[%s4255_s26 + $0x60] sm:$0xff] }
 0x914   : > { %3610 = vrot.lane.b32.xlu2 %v3609_v17, %s3978_s20  ;;  %v3322_v17 = vld [vmem:[%s4253_s0 + $0x68] sm:$0xf0] }
 0x915   : > { %2453 = vmatpush.bf16.msra.mxu2 %v3321_v16 }
 0x919   : > { %v1969_v18 = vpop.f32.mrf.mxu0 }
 0x91a   : > { %v3325_v18 = vor.u32 %v3487_v14, %v3322_v17 }
 0x92e   : > { %v2058_v19 = vpop.f32.mrf.mxu3 }
 0x930   : > { %v2079_v20 = vpop.f32.mrf.mxu0 }
 0x931   : > { %v3614_v21 = vpack.i.bf16 %v2079_v20, %v2058_v19  ;;  %v3312_v19 = vld [vmem:[%s4253_s0 + $0x50] sm:$0xf]  ;;  %v3486_v20 = vld [vmem:[%s4253_s0 + $0x54] sm:$0xf0] }
 0x933   : > { %3615 = vrot.lane.b32.xlu1 %v3614_v21, %s3976_s10  ;;  %v3485_v21 = vld [vmem:[%s4253_s0 + $0x54] sm:$0xf] }
 0x936   : > { %v2060_v22 = vpop.f32.mrf.mxu3 }
 0x937   : > { %v3313_v22 = vor.u32 %v3486_v20, %v3312_v19 }
 0x938   : > { %v2081_v23 = vpop.f32.mrf.mxu0 }
 0x939   : > { %v3314_v23 = vld [vmem:[%s4253_s0 + $0x58] sm:$0xf0]  ;;  %2454 = vmatpush.bf16.msra.mxu2 %v3313_v22 }
 0x940   : > { %v2191_v53 = vpop.f32.mrf.mxu0 }
 0x948   : > { %v2193_v24 = vpop.f32.mrf.mxu0 }
 0x949   : > { %v3304_v24 = vld [vmem:[%s4253_s0 + $0x40] sm:$0xf] }
 0x94a   : > { %v3305_v28 = vor.u32 %v3484_v26, %v3304_v24 }
 0x94c   : > { %2455 = vmatpush.bf16.msra.mxu2 %v3305_v28 }
 0x95a   : > { %v2170_v29 = vpop.f32.mrf.mxu3 }
 0x95b   : > { %v3619_v30 = vpack.i.bf16 %v2191_v53, %v2170_v29  ;;  %v3317_v53 = vor.u32 %v3485_v21, %v3314_v23  ;;  %v3306_v29 = vld [vmem:[%s4253_s0 + $0x48] sm:$0xf0]  ;;  %v4686_v21 = vld [vmem:[%s4271_s12 + $0x18] sm:$0x1f] }
 0x95d   : > { %3620 = vrot.lane.b32.xlu2 %v3619_v30, %s3977_s23  ;;  %v3309_v30 = vor.u32 %v3483_v27, %v3306_v29  ;;  %v2350_v29 = vperm.slane %v4686_v21, 1 }
 0x962   : > { %v2172_v31 = vpop.f32.mrf.mxu3 }
 0x963   : > { %v3296_v31 = vld [vmem:[%s4253_s0 + $0x30] sm:$0xf] }
 0x964   : > { %v3297_v34 = vor.u32 %v3482_v32, %v3296_v31 }
 0x966   : > { %2456 = vmatpush.bf16.msra.mxu2 %v3297_v34  ;;  %v3502_v34 = vld [vmem:[%s4255_s26 + $0x58] sm:$0xff] }
 0x96e   : > { %v3611_v11 = vpop.permute.xlu2 %3610 }
 0x96f   : > { %v3613_v40 = vunpack.i.h.bf16 %v3611_v11  ;;  %v3612_v37 = vunpack.i.l.bf16 %v3611_v11  ;;  %v3288_v11 = vld [vmem:[%s4253_s0 + $0x20] sm:$0xf] }
 0x971   : > { %v2220_v43 = vsel %vm897_vm0, %v1837_v7, %v3613_v40  ;;  %v2219_v44 = vsel %vm897_vm0, %v4600_v52, %v3612_v37  ;;  %v3489_v7 = vld [vmem:[%s4253_s0 + $0x74] sm:$0xf]  ;;  %v3479_v40 = vld [vmem:[%s4253_s0 + $0x24] sm:$0xf] }
 0x972   : > { %v3333_v10 = vor.u32 %v3489_v7, %v3330_v9  ;;  %v3504_v7 = vld [vmem:[%s4255_s26 + $0x68] sm:$0xff] }
 0x974   : > { %2466 = vmatpush.bf16.msrb.mxu3 %v3333_v10  ;;  %v3495_v10 = vld [vmem:[%s4255_s26 + $0x20] sm:$0xff] }
 0x978   : > { %2467 = vmatpush.bf16.msrb.mxu3 %v3325_v18 }
 0x97c   : > { %2468 = vmatpush.bf16.msrb.mxu3 %v3317_v53  ;;  %v2347_v53 = vperm.slane %v4686_v21, 0 }
 0x980   : > { %2469 = vmatpush.bf16.msrb.mxu3 %v3309_v30 }
 0x984   : > { %2470 = vmatpush.bf16.msrb.mxu3 %v3301_v36  ;;  %v3501_v36 = vld [vmem:[%s4255_s26 + $0x50] sm:$0xff] }
 0x9a5   : > { %v3616_v39 = vpop.permute.xlu1 %3615 }
 0x9a6   : > { %v3618_v38 = vunpack.i.h.bf16 %v3616_v39  ;;  %v3617_v41 = vunpack.i.l.bf16 %v3616_v39  ;;  %v3480_v39 = vld [vmem:[%s4253_s0 + $0x24] sm:$0xf0] }
 0x9a7   : > { %v3289_v37 = vor.u32 %v3480_v39, %v3288_v11  ;;  %v3500_v11 = vld [vmem:[%s4255_s26 + $0x48] sm:$0xff]  ;;  %v3491_v39 = vld [vmem:[%s4255_s26] sm:$0xff] }
 0x9a8   : > { %v2222_v47 = vsel %vm1380_vm3, %v2220_v43, %v3618_v38  ;;  %v2221_v48 = vsel %vm1380_vm3, %v2219_v44, %v3617_v41  ;;  %v3290_v38 = vld [vmem:[%s4253_s0 + $0x28] sm:$0xf0]  ;;  %v3478_v43 = vld [vmem:[%s4253_s0 + $0x14] sm:$0xf0]  ;;  %v3477_v44 = vld [vmem:[%s4253_s0 + $0x14] sm:$0xf] }
 0x9a9   : > { %v3293_v41 = vor.u32 %v3479_v40, %v3290_v38  ;;  %2457 = vmatpush.bf16.msra.mxu2 %v3289_v37  ;;  %v3499_v40 = vld [vmem:[%s4255_s26 + $0x40] sm:$0xff] }
 0x9ab   : > { %2471 = vmatpush.bf16.msrb.mxu3 %v3293_v41  ;;  %v2370_v41 = vperm.slane %v4628_v56, 2 }
 0x9b7   : > { %v3621_v42 = vpop.permute.xlu2 %3620 }
 0x9b8   : > { %v3623_v45 = vunpack.i.h.bf16 %v3621_v42  ;;  %v3622_v46 = vunpack.i.l.bf16 %v3621_v42  ;;  %v3280_v42 = vld [vmem:[%s4253_s0 + $0x10] sm:$0xf] }
 0x9ba   : > { %v2224_v51 = vsel %vm1383_vm4, %v2222_v47, %v3623_v45  ;;  %v2223_v54 = vsel %vm1383_vm4, %v2221_v48, %v3622_v46  ;;  %v3281_v45 = vor.u32 %v3478_v43, %v3280_v42  ;;  %v3282_v46 = vld [vmem:[%s4253_s0 + $0x18] sm:$0xf0]  ;;  %v3272_v48 = vld [vmem:[%s4253_s0] sm:$0xf]  ;;  %v2371_v42 = vperm.slane %v4546_v15, 2 }
 0x9bb   : > { %v2225_v55 = vpack.c.bf16 %v2224_v51, %v2223_v54  ;;  %v3285_v47 = vor.u32 %v3477_v44, %v3282_v46  ;;  %v3476_v51 = vld [vmem:[%s4253_s0 + $0x4] sm:$0xf0]  ;;  %v3475_v54 = vld [vmem:[%s4253_s0 + $0x4] sm:$0xf] }
 0x9bc   : > { %2458 = vmatpush.bf16.msra.mxu2 %v3281_v45 }
 0x9bd   : > { %2299 = vmatmul.bf16.vlgmr.msra.gmra.mxu1 %v2225_v55  ;;  %2472 = vmatpush.bf16.msrb.mxu3 %v3285_v47 }
 0xa3a   : > { %v2300_v49 = vpop.f32.mrf.mxu1 }
 0xa3b   : > { %v2301_v58 = vadd.f32 %v2300_v49, %v2242_v57  ;;  %v3274_v49 = vld [vmem:[%s4253_s0 + $0x8] sm:$0xf0] }
 0xa3d   : > { %v2305_v52 = vadd.f32 %v2301_v58, %v4492_v4 }
 0xa3f   : > { %2307 = vadd.xlane.f32.xlu0 %v2305_v52 }
 0xa42   : > { %v2302_v59 = vpop.f32.mrf.mxu1 }
 0xa43   : > { %v2303_v60 = vadd.f32 %v2302_v59, %v2242_v57  ;;  %v3273_v57 = vor.u32 %v3476_v51, %v3272_v48 }
 0xa45   : > { %v2306_v50 = vadd.f32 %v2303_v60, %v4494_v6  ;;  %2459 = vmatpush.bf16.msra.mxu2 %v3273_v57  ;;  %v3498_v60 = vld [vmem:[%s4255_s26 + $0x38] sm:$0xff] }
 0xa46   : > { %2615 = vmatpush.bf16.msra.mxu0 %v3498_v60 }
 0xa47   : > { %2309 = vadd.xlane.f32.xlu2 %v2306_v50 }
 0xab2   : > { %v2308_v61 = vpop.xlane.xlu0 %2307 }
 0xab3   : > { %v2311_v62 = vmul.f32 %v2308_v61, %v4462_v5 }
 0xab5   : > { %v4634_v63 = vsub.f32 %v2305_v52, %v2311_v62  ;;  %v3277_v52 = vor.u32 %v3475_v54, %v3274_v49 }
 0xab7   : > { %v2315_v0 = vmul.f32 %v4634_v63, %v4634_v63  ;;  %2473 = vmatpush.bf16.msrb.mxu3 %v3277_v52  ;;  %v2518_v52 = vperm.slane %v4686_v21, 2 }
 0xab9   : > { %2317 = vadd.xlane.f32.xlu0 %v2315_v0  ;;  %v3497_v0 = vld [vmem:[%s4255_s26 + $0x30] sm:$0xff] }
 0xaba   : > { %v2310_v4 = vpop.xlane.xlu2 %2309  ;;  %2616 = vmatpush.bf16.msra.mxu0 %v3497_v0 }
 0xabb   : > { %v2312_v25 = vmul.f32 %v2310_v4, %v4462_v5  ;;  %v3505_v4 = vld [vmem:[%s4255_s26 + $0x70] sm:$0xff] }
 0xabd   : > { %v4639_v1 = vsub.f32 %v2306_v50, %v2312_v25  ;;  %v3506_v50 = vld [vmem:[%s4255_s26 + $0x78] sm:$0xff] }
 0xabe   : > { %2629 = vmatpush.bf16.msrb.mxu1 %v3506_v50  ;;  %2617 = vmatpush.bf16.msra.mxu0 %v3496_v3 }
 0xabf   : > { %v2316_v6 = vmul.f32 %v4639_v1, %v4639_v1 }
 0xac1   : > { %2319 = vadd.xlane.f32.xlu0 %v2316_v6 }
 0xac2   : > { %2630 = vmatpush.bf16.msrb.mxu1 %v3505_v4  ;;  %2618 = vmatpush.bf16.msra.mxu0 %v3495_v10 }
 0xac6   : > { %2631 = vmatpush.bf16.msrb.mxu1 %v3504_v7  ;;  %2619 = vmatpush.bf16.msra.mxu0 %v3494_v33 }
 0xaca   : > { %2632 = vmatpush.bf16.msrb.mxu1 %v3503_v12  ;;  %2620 = vmatpush.bf16.msra.mxu0 %v3493_v35 }
 0xace   : > { %2633 = vmatpush.bf16.msrb.mxu1 %v3502_v34 }
 0xad2   : > { %2634 = vmatpush.bf16.msrb.mxu1 %v3501_v36 }
 0xad6   : > { %2635 = vmatpush.bf16.msrb.mxu1 %v3500_v11 }
 0xada   : > { %2636 = vmatpush.bf16.msrb.mxu1 %v3499_v40 }
 0xb2c   : > { %v2318_v55 = vpop.xlane.xlu0 %2317 }
 0xb2d   : > { %v2321_v58 = vmul.f32 %v2318_v55, %v4462_v5 }
 0xb2f   : > { %v2323_v59 = vadd.f32 1e-05, %v2321_v58 }
 0xb31   : > { %3694 = vrsqrt.f32 %v2323_v59  ;;  %vm2331_vm13 = vweird.f32 %v2323_v59 }
 0xb34   : > { %v2320_v61 = vpop.xlane.xlu0 %2319 }
 0xb35   : > { %v2322_v62 = vmul.f32 %v2320_v61, %v4462_v5 }
 0xb37   : > { %v3695_v25 = vpop.eup %3694  ;;  %v2324_v6 = vadd.f32 1e-05, %v2322_v62 }
 0xb38   : > { %v2326_v2 = vmul.f32 %v3695_v25, %v2323_v59  ;;  %vm2332_vm12 = vweird.f32 %v3695_v25 }
 0xb39   : > { %3696 = vrsqrt.f32 %v2324_v6  ;;  %vm2333_vm14 = vmor %vm2331_vm13, %vm2332_vm12  ;;  %vm2341_vm0 = vweird.f32 %v2324_v6 }
 0xb3a   : > { %v2327_v8 = vmul.f32 %v3695_v25, %v2326_v2 }
 0xb3c   : > { %v2328_v9 = vmul.f32 0.5, %v2327_v8 }
 0xb3e   : > { %v2329_v13 = vsub.f32 1.5, %v2328_v9 }
 0xb3f   : > { %v3697_v14 = vpop.eup %3696 }
 0xb40   : > { %v2330_v16 = vmul.f32 %v3695_v25, %v2329_v13  ;;  %v2336_v17 = vmul.f32 %v3697_v14, %v2324_v6  ;;  %vm2342_vm15 = vweird.f32 %v3697_v14 }
 0xb41   : > { %vm2343_vm1 = vmor %vm2341_vm0, %vm2342_vm15 }
 0xb42   : > { %v2337_v18 = vmul.f32 %v3697_v14, %v2336_v17  ;;  %v2334_v19 = vsel %vm2333_vm14, %v3695_v25, %v2330_v16 }
 0xb43   : > { %v2345_v23 = vmul.f32 %v2334_v19, %v4634_v63 }
 0xb44   : > { %v2338_v20 = vmul.f32 0.5, %v2337_v18 }
 0xb45   : > { %v2348_v28 = vmul.f32 %v2347_v53, %v2345_v23 }
 0xb46   : > { %v2339_v22 = vsub.f32 1.5, %v2338_v20 }
 0xb47   : > { %v2351_v31 = vadd.f32 %v2350_v29, %v2348_v28 }
 0xb48   : > { %v2340_v24 = vmul.f32 %v3697_v14, %v2339_v22 }
 0xb4a   : > { %v2344_v26 = vsel %vm2343_vm1, %v3697_v14, %v2340_v24 }
 0xb4b   : > { %v2346_v27 = vmul.f32 %v2344_v26, %v4639_v1  ;;  %v3492_v1 = vld [vmem:[%s4255_s26 + $0x8] sm:$0xff] }
 0xb4c   : > { %2621 = vmatpush.bf16.msra.mxu0 %v3492_v1 }
 0xb4d   : > { %v2349_v30 = vmul.f32 %v2347_v53, %v2346_v27 }
 0xb4f   : > { %v2352_v32 = vadd.f32 %v2350_v29, %v2349_v30  ;;  %v2685_v29 = vperm.slane %v4686_v21, 3 }
 0xb50   : > { %2622 = vmatpush.bf16.msra.mxu0 %v3491_v39 }
 0xb51   : > { %v2353_v63 = vpack.c.bf16 %v2352_v32, %v2351_v31 }
 0xb53   : > { %2460 = vmatmul.bf16.vlgmr.msra.gmra.mxu2 %v2353_v63  ;;  %2474 = vmatmul.bf16.vlgmr.msrb.gmra.mxu3 %v2353_v63 }
 0xbd6   : > { %v2461_v37 = vpop.f32.mrf.mxu2  ;;  %v2475_v38 = vpop.f32.mrf.mxu3 }
 0xbd7   : > { %v2462_v43 = vadd.f32 %v2461_v37, %v2370_v41  ;;  %v2476_v44 = vadd.f32 %v2475_v38, %v2371_v42 }
 0xbd9   : > { %v2480_v51 = vmax.f32 %v2462_v43, 0.0  ;;  %v2481_v54 = vmax.f32 %v2476_v44, 0.0 }
 0xbde   : > { %v2463_v45 = vpop.f32.mrf.mxu2  ;;  %v2477_v46 = vpop.f32.mrf.mxu3 }
 0xbdf   : > { %v2464_v47 = vadd.f32 %v2463_v45, %v2370_v41  ;;  %v2478_v48 = vadd.f32 %v2477_v46, %v2371_v42 }
 0xbe1   : > { %v2482_v55 = vmax.f32 %v2464_v47, 0.0  ;;  %v2483_v57 = vmax.f32 %v2478_v48, 0.0 }
 0xbe3   : > { %v2484_v49 = vpack.c.bf16 %v2482_v55, %v2480_v51  ;;  %v2485_v58 = vpack.c.bf16 %v2483_v57, %v2481_v54 }
 0xbe5   : > { %2623 = vmatmul.bf16.vlgmr.msra.gmra.mxu0 %v2484_v49  ;;  %2637 = vmatmul.bf16.vlgmr.msrb.gmra.mxu1 %v2485_v58 }
 0xc62   : > { %v2624_v59 = vpop.f32.mrf.mxu0  ;;  %v2638_v56 = vpop.f32.mrf.mxu1 }
 0xc63   : > { %v2625_v60 = vadd.f32 %v2624_v59, %v2518_v52 }
 0xc65   : > { %v2639_v15 = vadd.f32 %v2638_v56, %v2625_v60 }
 0xc67   : > { %v2643_v50 = vadd.f32 %v2639_v15, %v2351_v31 }
 0xc69   : > { %2645 = vadd.xlane.f32.xlu0 %v2643_v50 }
 0xc6a   : > { %v2626_v61 = vpop.f32.mrf.mxu0  ;;  %v2640_v0 = vpop.f32.mrf.mxu1 }
 0xc6b   : > { %v2627_v62 = vadd.f32 %v2626_v61, %v2518_v52 }
 0xc6d   : > { %v2641_v4 = vadd.f32 %v2640_v0, %v2627_v62 }
 0xc6f   : > { %v2644_v25 = vadd.f32 %v2641_v4, %v2352_v32  ;;  %v2688_v32 = vperm.slane %v4686_v21, 4 }
 0xc71   : > { %2647 = vadd.xlane.f32.xlu1 %v2644_v25 }
 0xcdc   : > { %v2646_v6 = vpop.xlane.xlu0 %2645 }
 0xcdd   : > { %v2649_v2 = vmul.f32 %v2646_v6, %v4462_v5 }
 0xcdf   : > { %v2651_v3 = vsub.f32 %v2643_v50, %v2649_v2 }
 0xce1   : > { %v2653_v7 = vmul.f32 %v2651_v3, %v2651_v3 }
 0xce3   : > { %2655 = vadd.xlane.f32.xlu0 %v2653_v7 }
 0xce4   : > { %v2648_v8 = vpop.xlane.xlu1 %2647 }
 0xce5   : > { %v2650_v9 = vmul.f32 %v2648_v8, %v4462_v5 }
 0xce7   : > { %v2652_v10 = vsub.f32 %v2644_v25, %v2650_v9 }
 0xce9   : > { %v2654_v12 = vmul.f32 %v2652_v10, %v2652_v10 }
 0xceb   : > { %2657 = vadd.xlane.f32.xlu0 %v2654_v12 }
 0xd56   : > { %v2656_v13 = vpop.xlane.xlu0 %2655 }
 0xd57   : > { %v2659_v14 = vmul.f32 %v2656_v13, %v4462_v5 }
 0xd59   : > { %v2661_v16 = vadd.f32 1e-05, %v2659_v14 }
 0xd5b   : > { %3698 = vrsqrt.f32 %v2661_v16  ;;  %vm2669_vm3 = vweird.f32 %v2661_v16 }
 0xd5e   : > { %v2658_v17 = vpop.xlane.xlu0 %2657 }
 0xd5f   : > { %v2660_v18 = vmul.f32 %v2658_v17, %v4462_v5 }
 0xd61   : > { %v3699_v19 = vpop.eup %3698  ;;  %v2662_v20 = vadd.f32 1e-05, %v2660_v18 }
 0xd62   : > { %v2664_v22 = vmul.f32 %v3699_v19, %v2661_v16  ;;  %vm2670_vm2 = vweird.f32 %v3699_v19 }
 0xd63   : > { %3700 = vrsqrt.f32 %v2662_v20  ;;  %vm2671_vm4 = vmor %vm2669_vm3, %vm2670_vm2  ;;  %vm2679_vm6 = vweird.f32 %v2662_v20 }
 0xd64   : > { %v2665_v23 = vmul.f32 %v3699_v19, %v2664_v22 }
 0xd66   : > { %v2666_v53 = vmul.f32 0.5, %v2665_v23 }
 0xd68   : > { %v2667_v24 = vsub.f32 1.5, %v2666_v53 }
 0xd69   : > { %v3701_v26 = vpop.eup %3700 }
 0xd6a   : > { %v2668_v27 = vmul.f32 %v3699_v19, %v2667_v24  ;;  %v2674_v28 = vmul.f32 %v3701_v26, %v2662_v20  ;;  %vm2680_vm5 = vweird.f32 %v3701_v26 }
 0xd6b   : > { %vm2681_vm7 = vmor %vm2679_vm6, %vm2680_vm5 }
 0xd6c   : > { %v2672_v30 = vsel %vm2671_vm4, %v3699_v19, %v2668_v27  ;;  %v2675_v31 = vmul.f32 %v3701_v26, %v2674_v28 }
 0xd6d   : > { %v2683_v63 = vmul.f32 %v2672_v30, %v2651_v3 }
 0xd6e   : > { %v2676_v33 = vmul.f32 0.5, %v2675_v31 }
 0xd6f   : > { %v2686_v34 = vmul.f32 %v2685_v29, %v2683_v63 }
 0xd70   : > { %v2677_v35 = vsub.f32 1.5, %v2676_v33 }
 0xd71   : > { %v2689_v36 = vadd.f32 %v2688_v32, %v2686_v34 }
 0xd72   : > { %v2678_v1 = vmul.f32 %v3701_v26, %v2677_v35 }
 0xd74   : > { %v2682_v11 = vsel %vm2681_vm7, %v3701_v26, %v2678_v1 }
 0xd75   : > { %v2684_v39 = vmul.f32 %v2682_v11, %v2652_v10  ;;  %2694 = sbr.rel (%p3398_p7) target bundleno = 3452 (0xd7c), region = 100 }
 0xd77   : > { %v2687_v40 = vmul.f32 %v2685_v29, %v2684_v39 }
 0xd79   : > { %v2690_v37 = vadd.f32 %v2688_v32, %v2687_v40 }
 0xd7a   : > { %2695 = vst [vmem:[#allocation13] sm:$0xff] %v2689_v36 }
 0xd7b   : > { %2696 = vst [vmem:[#allocation13 + $0x8] sm:$0xff] %v2690_v37 }
 0xd7c PF: > { %p3399_p5 = scmp.ne.s32.totalorder %s4067_s25, 1 }
 0xd7d   : > { %s4794_s16 = sld [smem:[#allocation28_spill]] (!%p3399_p5) }
 0xd7e   : > { %2700 = sbr.rel (%p3399_p5) target bundleno = 3734 (0xe96), region = 104  ;;  %s4795_s2 = sld [smem:[#allocation29_spill]] (!%p3399_p5) }
 0xd83   : > { %2703 = vadd.xlane.f32.xlu0 %v2689_v36  ;;  %v3704_v61 = vld [vmem:[%s4794_s16] ss:$0 sm:$0xff] }
 0xd84   : > { %v3705_v4 = vld [vmem:[%s4795_s2] ss:$0 sm:$0xff] }
 0xd8b   : > { %2705 = vadd.xlane.f32.xlu0 %v2690_v37 }
 0xdf6   : > { %v2704_v21 = vpop.xlane.xlu0 %2703 }
 0xdf7   : > { %v2707_v38 = vmul.f32 %v2704_v21, %v4462_v5 }
 0xdf9   : > { %v2709_v41 = vsub.f32 %v2689_v36, %v2707_v38 }
 0xdfb   : > { %v2711_v42 = vmul.f32 %v2709_v41, %v2709_v41 }
 0xdfd   : > { %2713 = vadd.xlane.f32.xlu1 %v2711_v42 }
 0xdfe   : > { %v2706_v43 = vpop.xlane.xlu0 %2705 }
 0xdff   : > { %v2708_v44 = vmul.f32 %v2706_v43, %v4462_v5 }
 0xe01   : > { %v2710_v45 = vsub.f32 %v2690_v37, %v2708_v44 }
 0xe03   : > { %v2712_v46 = vmul.f32 %v2710_v45, %v2710_v45 }
 0xe05   : > { %2715 = vadd.xlane.f32.xlu1 %v2712_v46 }
 0xe70   : > { %v2714_v47 = vpop.xlane.xlu1 %2713 }
 0xe71   : > { %v2717_v48 = vmul.f32 %v2714_v47, %v4462_v5 }
 0xe73   : > { %v2719_v51 = vadd.f32 1e-05, %v2717_v48 }
 0xe75   : > { %3706 = vrsqrt.f32 %v2719_v51  ;;  %vm2727_vm9 = vweird.f32 %v2719_v51 }
 0xe78   : > { %v2716_v54 = vpop.xlane.xlu1 %2715 }
 0xe79   : > { %v2718_v55 = vmul.f32 %v2716_v54, %v4462_v5 }
 0xe7b   : > { %v3707_v57 = vpop.eup %3706  ;;  %v2720_v49 = vadd.f32 1e-05, %v2718_v55 }
 0xe7c   : > { %v2722_v58 = vmul.f32 %v3707_v57, %v2719_v51  ;;  %vm2728_vm8 = vweird.f32 %v3707_v57 }
 0xe7d   : > { %3708 = vrsqrt.f32 %v2720_v49  ;;  %vm2729_vm10 = vmor %vm2727_vm9, %vm2728_vm8  ;;  %vm2737_vm12 = vweird.f32 %v2720_v49 }
 0xe7e   : > { %v2723_v52 = vmul.f32 %v3707_v57, %v2722_v58 }
 0xe80   : > { %v2724_v59 = vmul.f32 0.5, %v2723_v52 }
 0xe82   : > { %v2725_v56 = vsub.f32 1.5, %v2724_v59 }
 0xe83   : > { %v3709_v60 = vpop.eup %3708 }
 0xe84   : > { %v2726_v15 = vmul.f32 %v3707_v57, %v2725_v56  ;;  %v2732_v50 = vmul.f32 %v3709_v60, %v2720_v49  ;;  %vm2738_vm11 = vweird.f32 %v3709_v60 }
 0xe85   : > { %vm2739_vm13 = vmor %vm2737_vm12, %vm2738_vm11 }
 0xe86   : > { %v2730_v62 = vsel %vm2729_vm10, %v3707_v57, %v2726_v15  ;;  %v2733_v0 = vmul.f32 %v3709_v60, %v2732_v50 }
 0xe87   : > { %v2741_v5 = vmul.f32 %v2730_v62, %v2709_v41 }
 0xe88   : > { %v2734_v25 = vmul.f32 0.5, %v2733_v0 }
 0xe89   : > { %v2746_v6 = vmul.f32 %v3704_v61, %v2741_v5 }
 0xe8a   : > { %v2735_v2 = vsub.f32 1.5, %v2734_v25 }
 0xe8b   : > { %v2751_v3 = vadd.f32 %v3705_v4, %v2746_v6 }
 0xe8c   : > { %v2736_v7 = vmul.f32 %v3709_v60, %v2735_v2 }
 0xe8d   : > { %2753 = vst [vmem:[#allocation13] sm:$0xff] %v2751_v3 }
 0xe8e   : > { %v2740_v8 = vsel %vm2739_vm13, %v3709_v60, %v2736_v7 }
 0xe8f   : > { %v2742_v9 = vmul.f32 %v2740_v8, %v2710_v45 }
 0xe91   : > { %v2747_v10 = vmul.f32 %v3704_v61, %v2742_v9 }
 0xe93   : > { %v2752_v12 = vadd.f32 %v3705_v4, %v2747_v10 }
 0xe95   : > { %2754 = vst [vmem:[#allocation13 + $0x8] sm:$0xff] %v2752_v12 }
 0xe96 PF: > { %s4796_s9 = sld [smem:[#allocation30_spill]]  ;;  %s3980_s1 = smov [#allocation13]  }
 0xe97   : > { %s2760_s19 = sshll.u32 %s3980_s1, 4  ;;  %s3981_s4 = smov 128   ;;  %s2761_s19 = int_to_ptr.vmem [resolvable:$true] %s2760_s19 }
 0xe98   : > { %s3982_s12 = smov 8  }
 0xe9c   : > { %s2762_s21 = sshll.u32 %s4796_s9, 4  ;;  %s2763_s21 = int_to_ptr.hbm [resolvable:$true] %s2762_s21 }
 0xe9d   : > { %3524 = dma.vmem_to_hbm [thread:$0]  (%p3398_p7), %s2761_s19, 256, %s2763_s21, [#allocation4], %s3981_s4, %s3981_s4, %s3982_s12  }
 0xe9e   : > { %3951 = dma.done.wait (%p3398_p7), [#allocation4], 256  }
 0xe9f   : > { %3953 = vsyncadd (%p3398_p7), [#allocation4], 4294967040 }
 0xea0 PF: > { %s4797_s24 = sld [smem:[#allocation20_spill]]  ;;  %s4800_s21 = smov %s3960_s22 }
 0xea1   : > { %s4798_s30 = sld [smem:[#allocation19_spill]] }
 0xea2   : > { %s4799_s23 = sld [smem:[#allocation21_spill]] }
 0xea6   : > { %p32_p0 = scmp.ge.s32.totalorder %s4797_s24, 4  }
 0xea7   : > { %s4801_s22 = smov %s4798_s30 }
 0xea8   :  { %34 = sbr.rel (!%p32_p0) target bundleno = 20 (0x14), region = 184 }
 0xead   :  { %2779 = vsyncpa [#allocation3], 1 }
 0xeae   :  { %2781 = vsyncpa [#allocation3 + $0x1], 1 }
 0xeaf   :  { %2782 = vsyncpa [#allocation6], 1 }
 0xeb0   :  { %2784 = vsyncpa [#allocation6 + $0x1], 1 }
 0xeb1   :  { %2785 = vsyncpa [#allocation9], 1 }
 0xeb2   :  { %2787 = vsyncpa [#allocation9 + $0x1], 1 }
 0xeb3   :  { %2788 = vsyncpa [#allocation12], 1 }
 0xeb4   :  { %2790 = vsyncpa [#allocation12 + $0x1], 1 }
 0xeb5   :  { %2791 = vsyncpa [#allocation4], 1 }
 0xeb6   :  { %2793 = vsyncpa [#allocation4 + $0x1], 1 }

</bundles_post_ra>
